<compile_context>
chip_gen: v7x
topology: tpu7x:2x2x1
jax: 0.10.0
libtpu: 0.0.40
codegen_flags: <defaults>
</compile_context>

<pallas_src>
import functools
import numpy as np

import jax
import jax.numpy as jnp
from jax import lax
from jax.experimental import pallas as pl
from jax.experimental.pallas import tpu as pltpu

# ----------------------------- configuration --------------------------------
PATCH_SIZE = 4
IN_CHANS = 16
NUM_CLASSES = 5
EMBED_DIM = 32
DEPTHS = (2, 2)
NUM_HEADS = (2, 4)
WINDOW_SIZE = 4
MLP_RATIO = 2.0
LN_EPS = 1e-5


# ----------------------------- in-kernel helpers -----------------------------
def _ln(x, g, b):
    """LayerNorm over last dim, PyTorch semantics (biased var, eps=1e-5)."""
    mu = jnp.mean(x, axis=-1, keepdims=True)
    xc = x - mu
    var = jnp.mean(xc * xc, axis=-1, keepdims=True)
    return xc * lax.rsqrt(var + LN_EPS) * g + b


def _erf(x):
    # TODO(synk): exact lax.erf may not lower in Mosaic; use Abramowitz&Stegun 7.1.26
    # (|abs err| <= 1.5e-7, i.e. f32-exact) built only from exp/mul/add.
    a1, a2, a3, a4, a5 = 0.254829592, -0.284496736, 1.421413741, -1.453152027, 1.061405429
    pp = 0.3275911
    sgn = jnp.where(x >= 0, 1.0, -1.0)
    ax = jnp.abs(x)
    t = 1.0 / (1.0 + pp * ax)
    poly = ((((a5 * t + a4) * t + a3) * t + a2) * t + a1) * t
    return sgn * (1.0 - poly * jnp.exp(-ax * ax))


def _gelu_exact(x):
    return 0.5 * x * (1.0 + _erf(x * 0.7071067811865476))


def _bf16(x):
    return x.astype(jnp.bfloat16)


# ----------------------------- Pallas kernels --------------------------------
def _patch_embed_kernel(x_ref, w_ref, b_ref, g_ref, bt_ref, o_ref):
    """im2col patches @ conv-weight + bias, then LayerNorm."""
    t = jnp.dot(_bf16(x_ref[...]), w_ref[...],
                preferred_element_type=jnp.float32) + b_ref[...]
    o_ref[...] = _ln(t, g_ref[...], bt_ref[...]).astype(o_ref.dtype)


def _attn_block_kernel(xw_ref, valid_ref, n1g_ref, n1b_ref, qkvw_ref, qkvb_ref,
                       bias_ref, projw_ref, projb_ref, o_ref, *, num_heads, scale):
    """Fused norm1 + qkv + window attention (+combined bias) + softmax + @v + proj.

    One grid step == one image; its nW windows are processed together.
    bias_ref is the precombined (rel-pos-bias [+ shift-mask]) of shape (H, nW, N, N).
    """
    nW, N, C = xw_ref.shape[1], xw_ref.shape[2], xw_ref.shape[3]
    d = C // num_heads

    x = xw_ref[0]                                             # (nW, N, C) f32
    # norm1 on real tokens; padded tokens forced to 0 (matches LN-before-pad).
    xn = _ln(x, n1g_ref[...], n1b_ref[...]) * valid_ref[...]

    qkv = jnp.dot(_bf16(xn.reshape(nW * N, C)), qkvw_ref[...],
                  preferred_element_type=jnp.float32) + qkvb_ref[...]
    qkv = qkv.reshape(nW, N, 3 * C)

    heads = []
    for hh in range(num_heads):                               # static unroll (2 or 4)
        q = qkv[:, :, hh * d:(hh + 1) * d] * scale
        k = qkv[:, :, C + hh * d:C + (hh + 1) * d]
        v = qkv[:, :, 2 * C + hh * d:2 * C + (hh + 1) * d]
        s = jnp.einsum('wnd,wmd->wnm', _bf16(q), _bf16(k),
                       preferred_element_type=jnp.float32)    # (nW, N, N)
        s = s + bias_ref[hh]                                  # rel-pos bias (+mask)
        s = s - jnp.max(s, axis=-1, keepdims=True)
        p = jnp.exp(s)
        p = p * pl.reciprocal(jnp.sum(p, axis=-1, keepdims=True), approx=True)
        heads.append(jnp.einsum('wnm,wmd->wnd', _bf16(p), _bf16(v),
                                preferred_element_type=jnp.float32))
    attn = jnp.concatenate(heads, axis=-1)                    # (nW, N, C)

    proj = jnp.dot(_bf16(attn.reshape(nW * N, C)), projw_ref[...],
                   preferred_element_type=jnp.float32) + projb_ref[...]
    o_ref[0] = proj.reshape(nW, N, C).astype(o_ref.dtype)


def _mlp_block_kernel(x_ref, a_ref, g_ref, b_ref, w1_ref, b1_ref, w2_ref, b2_ref, o_ref):
    """Fused: y = x + attn;  out = y + fc2(GELU(fc1(LN(y))))."""
    y = x_ref[...] + a_ref[...]
    yn = _ln(y, g_ref[...], b_ref[...])
    h = jnp.dot(_bf16(yn), w1_ref[...],
                preferred_element_type=jnp.float32) + b1_ref[...]
    h = _gelu_exact(h)
    h2 = jnp.dot(_bf16(h), w2_ref[...],
                 preferred_element_type=jnp.float32) + b2_ref[...]
    o_ref[...] = (y + h2).astype(o_ref.dtype)


def _merge_kernel(x_ref, g_ref, b_ref, w_ref, o_ref):
    """PatchMerging: LayerNorm(4C) + Linear(4C -> 2C, no bias)."""
    xn = _ln(x_ref[...], g_ref[...], b_ref[...])
    o_ref[...] = jnp.dot(_bf16(xn), w_ref[...],
                         preferred_element_type=jnp.float32).astype(o_ref.dtype)


def _head_kernel(x_ref, g_ref, b_ref, w_ref, hb_ref, o_ref):
    """Final LayerNorm + token-mean pool (AdaptiveAvgPool1d(1)) + classifier."""
    x = x_ref[...]                                            # (B, L, C)
    xn = _ln(x, g_ref[...], b_ref[...])
    B = x_ref.shape[0]
    rows = [jnp.mean(xn[b], axis=0, keepdims=True) for b in range(B)]   # (1, C) each
    pooled = jnp.concatenate(rows, axis=0)                    # (B, C)
    o_ref[...] = (jnp.dot(_bf16(pooled), w_ref[...],
                          preferred_element_type=jnp.float32)
                  + hb_ref[...]).astype(o_ref.dtype)


# ----------------------------- kernel wrappers -------------------------------
def patch_embed_call(patches, wmat, bias, gamma, beta):
    M, K = patches.shape
    E = wmat.shape[1]
    return pl.pallas_call(
        _patch_embed_kernel,
        out_shape=jax.ShapeDtypeStruct((M, E), jnp.float32),
        grid=(1,),
        in_specs=[pl.BlockSpec((M, K), lambda i: (0, 0)),
                  pl.BlockSpec((K, E), lambda i: (0, 0)),
                  pl.BlockSpec((1, E), lambda i: (0, 0)),
                  pl.BlockSpec((1, E), lambda i: (0, 0)),
                  pl.BlockSpec((1, E), lambda i: (0, 0))],
        out_specs=pl.BlockSpec((M, E), lambda i: (0, 0)),
    )(patches, wmat, bias.reshape(1, E), gamma.reshape(1, E), beta.reshape(1, E))


def fused_window_attention(xw, valid, bias, blk, num_heads):
    """xw:(B,nW,N,C) f32, valid:(nW,N,1), bias:(H,nW,N,N) -> (B,nW,N,C)."""
    B, nW, N, C = xw.shape
    scale = (C // num_heads) ** (-0.5)
    kern = functools.partial(_attn_block_kernel, num_heads=num_heads, scale=scale)

    in_specs = [pl.BlockSpec((1, nW, N, C), lambda b: (b, 0, 0, 0)),
                pl.BlockSpec((nW, N, 1), lambda b: (0, 0, 0)),
                pl.BlockSpec((1, C), lambda b: (0, 0)),                # norm1 gamma
                pl.BlockSpec((1, C), lambda b: (0, 0)),                # norm1 beta
                pl.BlockSpec((C, 3 * C), lambda b: (0, 0)),            # qkv W (bf16)
                pl.BlockSpec((1, 3 * C), lambda b: (0, 0)),            # qkv b
                pl.BlockSpec((num_heads, nW, N, N), lambda b: (0, 0, 0, 0)),  # bias
                pl.BlockSpec((C, C), lambda b: (0, 0)),                # proj W (bf16)
                pl.BlockSpec((1, C), lambda b: (0, 0))]                # proj b
    args = [xw, valid,
            blk['norm1_g'].reshape(1, C), blk['norm1_b'].reshape(1, C),
            blk['qkv_w'], blk['qkv_b'].reshape(1, 3 * C),
            bias, blk['proj_w'], blk['proj_b'].reshape(1, C)]

    return pl.pallas_call(
        kern,
        out_shape=jax.ShapeDtypeStruct((B, nW, N, C), jnp.float32),
        grid=(B,),
        in_specs=in_specs,
        out_specs=pl.BlockSpec((1, nW, N, C), lambda b: (b, 0, 0, 0)),
        compiler_params=pltpu.CompilerParams(dimension_semantics=("parallel",)),
    )(*args)


def fused_mlp(x2d, attn2d, blk):
    M, C = x2d.shape
    Hd = blk['fc1_w'].shape[1]
    return pl.pallas_call(
        _mlp_block_kernel,
        out_shape=jax.ShapeDtypeStruct((M, C), jnp.float32),
        grid=(1,),
        in_specs=[pl.BlockSpec((M, C), lambda i: (0, 0)),
                  pl.BlockSpec((M, C), lambda i: (0, 0)),
                  pl.BlockSpec((1, C), lambda i: (0, 0)),
                  pl.BlockSpec((1, C), lambda i: (0, 0)),
                  pl.BlockSpec((C, Hd), lambda i: (0, 0)),
                  pl.BlockSpec((1, Hd), lambda i: (0, 0)),
                  pl.BlockSpec((Hd, C), lambda i: (0, 0)),
                  pl.BlockSpec((1, C), lambda i: (0, 0))],
        out_specs=pl.BlockSpec((M, C), lambda i: (0, 0)),
    )(x2d, attn2d,
      blk['norm2_g'].reshape(1, C), blk['norm2_b'].reshape(1, C),
      blk['fc1_w'], blk['fc1_b'].reshape(1, Hd),
      blk['fc2_w'], blk['fc2_b'].reshape(1, C))


def fused_norm_pool_head(x, g, b, w, hb):
    B, L, C = x.shape
    Ncls = w.shape[1]
    return pl.pallas_call(
        _head_kernel,
        out_shape=jax.ShapeDtypeStruct((B, Ncls), jnp.float32),
        grid=(1,),
        in_specs=[pl.BlockSpec((B, L, C), lambda i: (0, 0, 0)),
                  pl.BlockSpec((1, C), lambda i: (0, 0)),
                  pl.BlockSpec((1, C), lambda i: (0, 0)),
                  pl.BlockSpec((C, Ncls), lambda i: (0, 0)),
                  pl.BlockSpec((1, Ncls), lambda i: (0, 0))],
        out_specs=pl.BlockSpec((B, Ncls), lambda i: (0, 0)),
    )(x, g.reshape(1, C), b.reshape(1, C), w, hb.reshape(1, Ncls))


# ----------------------------- plain-JAX glue --------------------------------
def window_partition(x, ws):
    B, H, W, C = x.shape
    x = x.reshape(B, H // ws, ws, W // ws, ws, C)
    return x.transpose(0, 1, 3, 2, 4, 5).reshape(-1, ws, ws, C)


def window_reverse(windows, ws, H, W):
    B = windows.shape[0] // (H * W // ws // ws)
    x = windows.reshape(B, H // ws, W // ws, ws, ws, -1)
    return x.transpose(0, 1, 3, 2, 4, 5).reshape(B, H, W, -1)


def create_mask(H, W, ws, shift):
    Hp = int(np.ceil(H / ws)) * ws
    Wp = int(np.ceil(W / ws)) * ws
    img_mask = np.zeros((1, Hp, Wp, 1), np.float32)
    h_slices = (slice(0, -ws), slice(-ws, -shift), slice(-shift, None))
    w_slices = (slice(0, -ws), slice(-ws, -shift), slice(-shift, None))
    cnt = 0
    for h in h_slices:
        for w in w_slices:
            img_mask[:, h, w, :] = cnt
            cnt += 1
    mw = img_mask.reshape(1, Hp // ws, ws, Wp // ws, ws, 1)
    mw = mw.transpose(0, 1, 3, 2, 4, 5).reshape(-1, ws * ws)
    attn = mw[:, None, :] - mw[:, :, None]
    attn = np.where(attn != 0, np.float32(-100.0), np.float32(0.0))
    return jnp.asarray(attn, jnp.float32)                      # (nW, N, N) constant


def _window_valid(H, W, ws, shift):
    """Static 1/0 flag per windowed token marking real (non-padded) tokens."""
    Hp = int(np.ceil(H / ws)) * ws
    Wp = int(np.ceil(W / ws)) * ws
    v = np.zeros((Hp, Wp), np.float32)
    v[:H, :W] = 1.0
    if shift > 0:
        v = np.roll(v, shift=(-shift, -shift), axis=(0, 1))
    v = v.reshape(Hp // ws, ws, Wp // ws, ws).transpose(0, 2, 1, 3).reshape(-1, ws * ws)
    return jnp.asarray(v, jnp.float32)[:, :, None]             # (nW, N, 1) constant


def _relative_position_index(ws):
    coords = np.stack(np.meshgrid(np.arange(ws), np.arange(ws), indexing='ij'))
    cf = coords.reshape(2, -1)
    rel = cf[:, :, None] - cf[:, None, :]
    rel = rel.transpose(1, 2, 0).copy()
    rel[:, :, 0] += ws - 1
    rel[:, :, 1] += ws - 1
    rel[:, :, 0] *= 2 * ws - 1
    return rel.sum(-1)                                         # (N, N) int


REL_POS_INDEX = _relative_position_index(WINDOW_SIZE)


# ----------------------------- model pieces ----------------------------------
def patch_embed(x, p):
    # torch: x.unsqueeze(1).permute(0,3,1,2) -> (B, Cin, 1, S)
    B, S, Cin = x.shape
    x_nchw = jnp.transpose(x[:, None, :, :], (0, 3, 1, 2))     # (B, Cin, 1, S)
    H, W = 1, S
    if (H % PATCH_SIZE != 0) or (W % PATCH_SIZE != 0):
        pad_w = PATCH_SIZE - W % PATCH_SIZE                    # torch semantics: no outer %
        pad_h = PATCH_SIZE - H % PATCH_SIZE
        x_nchw = jnp.pad(x_nchw, ((0, 0), (0, 0), (0, pad_h), (0, pad_w)))
    _, _, Hp, Wp = x_nchw.shape
    Ho, Wo = Hp // PATCH_SIZE, Wp // PATCH_SIZE
    # stride==kernel conv -> im2col + matmul (exact)
    patches = x_nchw.reshape(B, Cin, Ho, PATCH_SIZE, Wo, PATCH_SIZE)
    patches = patches.transpose(0, 2, 4, 1, 3, 5).reshape(
        B * Ho * Wo, Cin * PATCH_SIZE * PATCH_SIZE)
    tok = patch_embed_call(patches, p['patch_wmat'], p['patch_b'],
                           p['patch_norm_g'], p['patch_norm_b'])
    return tok.reshape(B, Ho * Wo, EMBED_DIM), Ho, Wo


def swin_block(x, H, W, blk, num_heads, shift_size, attn_mask):
    B, L, C = x.shape
    ws = WINDOW_SIZE
    N = ws * ws
    shortcut = x

    # spatialize / pad / shift / window (cheap XLA layout ops on raw x; LN fused in kernel)
    xs = x.reshape(B, H, W, C)
    pad_r = (ws - W % ws) % ws
    pad_b = (ws - H % ws) % ws
    xs = jnp.pad(xs, ((0, 0), (0, pad_b), (0, pad_r), (0, 0)))
    Hp, Wp = H + pad_b, W + pad_r
    if shift_size > 0:
        xs = jnp.roll(xs, shift=(-shift_size, -shift_size), axis=(1, 2))
    nW = (Hp // ws) * (Wp // ws)
    xw = window_partition(xs, ws).reshape(B, nW, N, C)
    valid = _window_valid(H, W, ws, shift_size)                # (nW, N, 1) constant

    # Pre-combine rel-pos bias with the shift mask into one additive bias
    # (heads, nW, N, N).  Tiny constant/param add, done once under jit.
    bias = jnp.broadcast_to(blk['rel_bias'][:, None, :, :], (num_heads, nW, N, N))
    if shift_size > 0:
        bias = bias + attn_mask[None, :, :, :]

    attn_w = fused_window_attention(xw, valid, bias, blk, num_heads)   # (B, nW, N, C)

    attn_w = attn_w.reshape(-1, ws, ws, C)
    shifted_back = window_reverse(attn_w, ws, Hp, Wp)
    if shift_size > 0:
        xo = jnp.roll(shifted_back, shift=(shift_size, shift_size), axis=(1, 2))
    else:
        xo = shifted_back
    attn_out = xo[:, :H, :W, :].reshape(B, L, C)

    # fused residual + norm2 + MLP + residual  (DropPath/Dropout = identity in eval)
    out2d = fused_mlp(shortcut.reshape(B * L, C), attn_out.reshape(B * L, C), blk)
    return out2d.reshape(B, L, C)


def patch_merging(x, H, W, layer_p):
    B, L, C = x.shape
    xs = x.reshape(B, H, W, C)
    if H % 2 == 1 or W % 2 == 1:
        xs = jnp.pad(xs, ((0, 0), (0, H % 2), (0, W % 2), (0, 0)))
    x0 = xs[:, 0::2, 0::2, :]
    x1 = xs[:, 1::2, 0::2, :]
    x2 = xs[:, 0::2, 1::2, :]
    x3 = xs[:, 1::2, 1::2, :]
    xc = jnp.concatenate([x0, x1, x2, x3], -1)                 # (B, H2, W2, 4C)
    _, H2, W2, _ = xc.shape
    M = B * H2 * W2
    x2d = xc.reshape(M, 4 * C)
    out = pl.pallas_call(
        _merge_kernel,
        out_shape=jax.ShapeDtypeStruct((M, 2 * C), jnp.float32),
        grid=(1,),
        in_specs=[pl.BlockSpec((M, 4 * C), lambda i: (0, 0)),
                  pl.BlockSpec((1, 4 * C), lambda i: (0, 0)),
                  pl.BlockSpec((1, 4 * C), lambda i: (0, 0)),
                  pl.BlockSpec((4 * C, 2 * C), lambda i: (0, 0))],
        out_specs=pl.BlockSpec((M, 2 * C), lambda i: (0, 0)),
    )(x2d, layer_p['merge_norm_g'].reshape(1, 4 * C),
      layer_p['merge_norm_b'].reshape(1, 4 * C), layer_p['merge_red_w'])
    return out.reshape(B, H2 * W2, 2 * C)


def basic_layer(x, H, W, layer_p, i_layer):
    ws = WINDOW_SIZE
    shift = ws // 2
    attn_mask = create_mask(H, W, ws, shift)
    for i, blk in enumerate(layer_p['blocks']):
        x = swin_block(x, H, W, blk, NUM_HEADS[i_layer],
                       0 if i % 2 == 0 else shift, attn_mask)
    if 'merge_red_w' in layer_p:
        x = patch_merging(x, H, W, layer_p)
        H, W = (H + 1) // 2, (W + 1) // 2
    return x, H, W


def swin_forward(x, params):
    x, H, W = patch_embed(x, params)
    for i_layer, layer_p in enumerate(params['layers']):
        x, H, W = basic_layer(x, H, W, layer_p, i_layer)
    return fused_norm_pool_head(x, params['norm_g'], params['norm_b'],
                                params['head_w'], params['head_b'])


# ----------------------------- parameter init --------------------------------
def init_params(key):
    keys = iter(jax.random.split(key, 256))

    def nrm(shape, std=0.02):
        return std * jax.random.normal(next(keys), shape, jnp.float32)

    N = WINDOW_SIZE * WINDOW_SIZE
    rel_idx = REL_POS_INDEX.reshape(-1)

    # conv weight stored directly as an im2col matrix (Cin*k*k, E), bf16 for the MXU
    patch_w = nrm((EMBED_DIM, IN_CHANS, PATCH_SIZE, PATCH_SIZE))
    p = {
        'patch_wmat': patch_w.reshape(EMBED_DIM, -1).T.astype(jnp.bfloat16),
        'patch_b': jnp.zeros((EMBED_DIM,), jnp.float32),
        'patch_norm_g': jnp.ones((EMBED_DIM,), jnp.float32),
        'patch_norm_b': jnp.zeros((EMBED_DIM,), jnp.float32),
        'layers': [],
    }
    for i_layer, depth in enumerate(DEPTHS):
        dim = EMBED_DIM * (2 ** i_layer)
        h = NUM_HEADS[i_layer]
        hidden = int(dim * MLP_RATIO)
        blocks = []
        for _ in range(depth):
            table = nrm(((2 * WINDOW_SIZE - 1) ** 2, h))
            # precompute relative-position bias once: (heads, N, N)
            rel_bias = jnp.transpose(table[rel_idx].reshape(N, N, h), (2, 0, 1))
            blocks.append(dict(
                norm1_g=jnp.ones((dim,), jnp.float32), norm1_b=jnp.zeros((dim,), jnp.float32),
                rel_bias=rel_bias,
                qkv_w=nrm((dim, 3 * dim)).astype(jnp.bfloat16),
                qkv_b=jnp.zeros((3 * dim,), jnp.float32),
                proj_w=nrm((dim, dim)).astype(jnp.bfloat16),
                proj_b=jnp.zeros((dim,), jnp.float32),
                norm2_g=jnp.ones((dim,), jnp.float32), norm2_b=jnp.zeros((dim,), jnp.float32),
                fc1_w=nrm((dim, hidden)).astype(jnp.bfloat16),
                fc1_b=jnp.zeros((hidden,), jnp.float32),
                fc2_w=nrm((hidden, dim)).astype(jnp.bfloat16),
                fc2_b=jnp.zeros((dim,), jnp.float32),
            ))
        layer = dict(blocks=blocks)
        if i_layer < len(DEPTHS) - 1:
            layer['merge_norm_g'] = jnp.ones((4 * dim,), jnp.float32)
            layer['merge_norm_b'] = jnp.zeros((4 * dim,), jnp.float32)
            layer['merge_red_w'] = nrm((4 * dim, 2 * dim)).astype(jnp.bfloat16)
        p['layers'].append(layer)
    num_features = EMBED_DIM * (2 ** (len(DEPTHS) - 1))
    p['norm_g'] = jnp.ones((num_features,), jnp.float32)
    p['norm_b'] = jnp.zeros((num_features,), jnp.float32)
    p['head_w'] = nrm((num_features, NUM_CLASSES)).astype(jnp.bfloat16)
    p['head_b'] = jnp.zeros((NUM_CLASSES,), jnp.float32)
    return p


# ----------------------------- main -------------------------------------------
if __name__ == "__main__":
    key = jax.random.PRNGKey(0)
    k_x, k_p = jax.random.split(key)
    # Input implied by the module's forward: 3-D (B, S, in_chans).
    x = jax.random.normal(k_x, (2, 16, IN_CHANS), jnp.float32)
    params = init_params(k_p)

    fwd = jax.jit(swin_forward)
    logits = fwd(x, params)
    jax.block_until_ready(logits)
    assert logits.shape == (2, NUM_CLASSES), logits.shape
    assert bool(jnp.all(jnp.isfinite(logits)))
    print("KERNEL_OK")
</pallas_src>

<mosaic_0001>
module attributes {stable_mosaic.version = 11 : i64} {
  func.func @_patch_embed_kernel(%arg0: i32, %arg1: memref<10x256xf32, #tpu.memory_space<vmem>>, %arg2: memref<256x32xbf16, #tpu.memory_space<vmem>>, %arg3: memref<1x32xf32, #tpu.memory_space<vmem>>, %arg4: memref<1x32xf32, #tpu.memory_space<vmem>>, %arg5: memref<1x32xf32, #tpu.memory_space<vmem>>, %arg6: memref<10x32xf32, #tpu.memory_space<vmem>>) attributes {dimension_semantics = [#tpu.dimension_semantics<arbitrary>], iteration_bounds = array<i64: 1>, scalar_prefetch = 0 : i64, scratch_operands = 0 : i64, tpu.core_type = #tpu.core_type<tc>, window_params = [{pipeline_mode = #tpu.pipeline_mode<synchronous>, transform_indices = @transform_0, window_bounds = array<i64: 10, 256>}, {pipeline_mode = #tpu.pipeline_mode<synchronous>, transform_indices = @transform_1, window_bounds = array<i64: 256, 32>}, {pipeline_mode = #tpu.pipeline_mode<synchronous>, transform_indices = @transform_2, window_bounds = array<i64: 1, 32>}, {pipeline_mode = #tpu.pipeline_mode<synchronous>, transform_indices = @transform_3, window_bounds = array<i64: 1, 32>}, {pipeline_mode = #tpu.pipeline_mode<synchronous>, transform_indices = @transform_4, window_bounds = array<i64: 1, 32>}, {pipeline_mode = #tpu.pipeline_mode<synchronous>, transform_indices = @transform_5, window_bounds = array<i64: 10, 32>}]} {
    %c0 = arith.constant 0 : index
    %c0_0 = arith.constant 0 : index
    %0 = vector.load %arg1[%c0, %c0_0] : memref<10x256xf32, #tpu.memory_space<vmem>>, vector<10x256xf32>
    %1 = arith.truncf %0 : vector<10x256xf32> to vector<10x256xbf16>
    %c0_1 = arith.constant 0 : index
    %c0_2 = arith.constant 0 : index
    %2 = vector.load %arg2[%c0_1, %c0_2] : memref<256x32xbf16, #tpu.memory_space<vmem>>, vector<256x32xbf16>
    %cst = arith.constant dense<0.000000e+00> : vector<10x32xf32>
    %3 = tpu.matmul %1, %2, %cst {dimension_numbers = #tpu.dot_dimension_numbers<[1], [0], [0], [1], [0, 0, 1, 1], [], []>} : vector<10x256xbf16>, vector<256x32xbf16>, vector<10x32xf32> -> vector<10x32xf32>
    %c0_3 = arith.constant 0 : index
    %c0_4 = arith.constant 0 : index
    %4 = vector.load %arg3[%c0_3, %c0_4] : memref<1x32xf32, #tpu.memory_space<vmem>>, vector<1x32xf32>
    %5 = vector.broadcast %4 : vector<1x32xf32> to vector<10x32xf32>
    %6 = arith.addf %3, %5 : vector<10x32xf32>
    %c0_5 = arith.constant 0 : index
    %c0_6 = arith.constant 0 : index
    %7 = vector.load %arg4[%c0_5, %c0_6] : memref<1x32xf32, #tpu.memory_space<vmem>>, vector<1x32xf32>
    %c0_7 = arith.constant 0 : index
    %c0_8 = arith.constant 0 : index
    %8 = vector.load %arg5[%c0_7, %c0_8] : memref<1x32xf32, #tpu.memory_space<vmem>>, vector<1x32xf32>
    %cst_9 = arith.constant dense<0.000000e+00> : vector<10xf32>
    %9 = vector.multi_reduction <add>, %6, %cst_9 [1] : vector<10x32xf32> to vector<10xf32>
    %10 = vector.shape_cast %9 : vector<10xf32> to vector<10x1xf32>
    %cst_10 = arith.constant 3.200000e+01 : f32
    %11 = vector.broadcast %cst_10 : f32 to vector<10x1xf32>
    %12 = arith.divf %10, %11 : vector<10x1xf32>
    %13 = vector.broadcast %12 : vector<10x1xf32> to vector<10x32xf32>
    %14 = arith.subf %6, %13 : vector<10x32xf32>
    %15 = arith.mulf %14, %14 : vector<10x32xf32>
    %cst_11 = arith.constant dense<0.000000e+00> : vector<10xf32>
    %16 = vector.multi_reduction <add>, %15, %cst_11 [1] : vector<10x32xf32> to vector<10xf32>
    %17 = vector.shape_cast %16 : vector<10xf32> to vector<10x1xf32>
    %cst_12 = arith.constant 3.200000e+01 : f32
    %18 = vector.broadcast %cst_12 : f32 to vector<10x1xf32>
    %19 = arith.divf %17, %18 : vector<10x1xf32>
    %cst_13 = arith.constant 9.99999974E-6 : f32
    %20 = vector.broadcast %cst_13 : f32 to vector<10x1xf32>
    %21 = arith.addf %19, %20 : vector<10x1xf32>
    %22 = math.rsqrt %21 : vector<10x1xf32>
    %23 = vector.broadcast %22 : vector<10x1xf32> to vector<10x32xf32>
    %24 = arith.mulf %14, %23 : vector<10x32xf32>
    %25 = vector.broadcast %7 : vector<1x32xf32> to vector<10x32xf32>
    %26 = arith.mulf %24, %25 : vector<10x32xf32>
    %27 = vector.broadcast %8 : vector<1x32xf32> to vector<10x32xf32>
    %28 = arith.addf %26, %27 : vector<10x32xf32>
    %c0_14 = arith.constant 0 : index
    %c0_15 = arith.constant 0 : index
    %29 = vector.load %arg6[%c0_14, %c0_15] : memref<10x32xf32, #tpu.memory_space<vmem>>, vector<10x32xf32>
    tpu.vector_store %arg6[%c0_14, %c0_15], %28 {strides = array<i32>} : memref<10x32xf32, #tpu.memory_space<vmem>>, vector<10x32xf32>,
    return
  }
  func.func @transform_0(%arg0: i32) -> (i32, i32) {
    %c0_i32 = arith.constant 0 : i32
    %c0_i32_0 = arith.constant 0 : i32
    %c0_i32_1 = arith.constant 0 : i32
    return %c0_i32, %c0_i32_0 : i32, i32
  }
  func.func @transform_1(%arg0: i32) -> (i32, i32) {
    %c0_i32 = arith.constant 0 : i32
    %c0_i32_0 = arith.constant 0 : i32
    %c0_i32_1 = arith.constant 0 : i32
    return %c0_i32, %c0_i32_0 : i32, i32
  }
  func.func @transform_2(%arg0: i32) -> (i32, i32) {
    %c0_i32 = arith.constant 0 : i32
    %c0_i32_0 = arith.constant 0 : i32
    %c0_i32_1 = arith.constant 0 : i32
    return %c0_i32, %c0_i32_0 : i32, i32
  }
  func.func @transform_3(%arg0: i32) -> (i32, i32) {
    %c0_i32 = arith.constant 0 : i32
    %c0_i32_0 = arith.constant 0 : i32
    %c0_i32_1 = arith.constant 0 : i32
    return %c0_i32, %c0_i32_0 : i32, i32
  }
  func.func @transform_4(%arg0: i32) -> (i32, i32) {
    %c0_i32 = arith.constant 0 : i32
    %c0_i32_0 = arith.constant 0 : i32
    %c0_i32_1 = arith.constant 0 : i32
    return %c0_i32, %c0_i32_0 : i32, i32
  }
  func.func @transform_5(%arg0: i32) -> (i32, i32) {
    %c0_i32 = arith.constant 0 : i32
    %c0_i32_0 = arith.constant 0 : i32
    %c0_i32_1 = arith.constant 0 : i32
    return %c0_i32, %c0_i32_0 : i32, i32
  }
}

module attributes {stable_mosaic.version = 11 : i64} {
  func.func @_attn_block_kernel(%arg0: i32, %arg1: memref<1x2x16x32xf32, #tpu.memory_space<vmem>>, %arg2: memref<2x16x1xf32, #tpu.memory_space<vmem>>, %arg3: memref<1x32xf32, #tpu.memory_space<vmem>>, %arg4: memref<1x32xf32, #tpu.memory_space<vmem>>, %arg5: memref<32x96xbf16, #tpu.memory_space<vmem>>, %arg6: memref<1x96xf32, #tpu.memory_space<vmem>>, %arg7: memref<2x2x16x16xf32, #tpu.memory_space<vmem>>, %arg8: memref<32x32xbf16, #tpu.memory_space<vmem>>, %arg9: memref<1x32xf32, #tpu.memory_space<vmem>>, %arg10: memref<1x2x16x32xf32, #tpu.memory_space<vmem>>) attributes {dimension_semantics = [#tpu.dimension_semantics<parallel>], iteration_bounds = array<i64: 2>, scalar_prefetch = 0 : i64, scratch_operands = 0 : i64, tpu.core_type = #tpu.core_type<tc>, window_params = [{transform_indices = @transform_0, window_bounds = array<i64: 1, 2, 16, 32>}, {pipeline_mode = #tpu.pipeline_mode<synchronous>, transform_indices = @transform_1, window_bounds = array<i64: 2, 16, 1>}, {pipeline_mode = #tpu.pipeline_mode<synchronous>, transform_indices = @transform_2, window_bounds = array<i64: 1, 32>}, {pipeline_mode = #tpu.pipeline_mode<synchronous>, transform_indices = @transform_3, window_bounds = array<i64: 1, 32>}, {pipeline_mode = #tpu.pipeline_mode<synchronous>, transform_indices = @transform_4, window_bounds = array<i64: 32, 96>}, {pipeline_mode = #tpu.pipeline_mode<synchronous>, transform_indices = @transform_5, window_bounds = array<i64: 1, 96>}, {pipeline_mode = #tpu.pipeline_mode<synchronous>, transform_indices = @transform_6, window_bounds = array<i64: 2, 2, 16, 16>}, {pipeline_mode = #tpu.pipeline_mode<synchronous>, transform_indices = @transform_7, window_bounds = array<i64: 32, 32>}, {pipeline_mode = #tpu.pipeline_mode<synchronous>, transform_indices = @transform_8, window_bounds = array<i64: 1, 32>}, {transform_indices = @transform_9, window_bounds = array<i64: 1, 2, 16, 32>}]} {
    %c0 = arith.constant 0 : index
    %c0_0 = arith.constant 0 : index
    %c0_1 = arith.constant 0 : index
    %c0_2 = arith.constant 0 : index
    %0 = vector.load %arg1[%c0, %c0_0, %c0_1, %c0_2] : memref<1x2x16x32xf32, #tpu.memory_space<vmem>>, vector<1x2x16x32xf32>
    %1 = vector.shape_cast %0 : vector<1x2x16x32xf32> to vector<2x16x32xf32>
    %c0_3 = arith.constant 0 : index
    %c0_4 = arith.constant 0 : index
    %2 = vector.load %arg3[%c0_3, %c0_4] : memref<1x32xf32, #tpu.memory_space<vmem>>, vector<1x32xf32>
    %c0_5 = arith.constant 0 : index
    %c0_6 = arith.constant 0 : index
    %3 = vector.load %arg4[%c0_5, %c0_6] : memref<1x32xf32, #tpu.memory_space<vmem>>, vector<1x32xf32>
    %cst = arith.constant dense<0.000000e+00> : vector<2x16xf32>
    %4 = vector.multi_reduction <add>, %1, %cst [2] : vector<2x16x32xf32> to vector<2x16xf32>
    %5 = vector.shape_cast %4 : vector<2x16xf32> to vector<2x16x1xf32>
    %cst_7 = arith.constant 3.200000e+01 : f32
    %6 = vector.broadcast %cst_7 : f32 to vector<2x16x1xf32>
    %7 = arith.divf %5, %6 : vector<2x16x1xf32>
    %8 = vector.broadcast %7 : vector<2x16x1xf32> to vector<2x16x32xf32>
    %9 = arith.subf %1, %8 : vector<2x16x32xf32>
    %10 = arith.mulf %9, %9 : vector<2x16x32xf32>
    %cst_8 = arith.constant dense<0.000000e+00> : vector<2x16xf32>
    %11 = vector.multi_reduction <add>, %10, %cst_8 [2] : vector<2x16x32xf32> to vector<2x16xf32>
    %12 = vector.shape_cast %11 : vector<2x16xf32> to vector<2x16x1xf32>
    %cst_9 = arith.constant 3.200000e+01 : f32
    %13 = vector.broadcast %cst_9 : f32 to vector<2x16x1xf32>
    %14 = arith.divf %12, %13 : vector<2x16x1xf32>
    %cst_10 = arith.constant 9.99999974E-6 : f32
    %15 = vector.broadcast %cst_10 : f32 to vector<2x16x1xf32>
    %16 = arith.addf %14, %15 : vector<2x16x1xf32>
    %17 = math.rsqrt %16 : vector<2x16x1xf32>
    %18 = vector.broadcast %17 : vector<2x16x1xf32> to vector<2x16x32xf32>
    %19 = arith.mulf %9, %18 : vector<2x16x32xf32>
    %20 = vector.shape_cast %2 : vector<1x32xf32> to vector<1x1x32xf32>
    %21 = vector.broadcast %20 : vector<1x1x32xf32> to vector<2x16x32xf32>
    %22 = arith.mulf %19, %21 : vector<2x16x32xf32>
    %23 = vector.shape_cast %3 : vector<1x32xf32> to vector<1x1x32xf32>
    %24 = vector.broadcast %23 : vector<1x1x32xf32> to vector<2x16x32xf32>
    %25 = arith.addf %22, %24 : vector<2x16x32xf32>
    %c0_11 = arith.constant 0 : index
    %c0_12 = arith.constant 0 : index
    %c0_13 = arith.constant 0 : index
    %26 = vector.load %arg2[%c0_11, %c0_12, %c0_13] : memref<2x16x1xf32, #tpu.memory_space<vmem>>, vector<2x16x1xf32>
    %27 = vector.broadcast %26 : vector<2x16x1xf32> to vector<2x16x32xf32>
    %28 = arith.mulf %25, %27 : vector<2x16x32xf32>
    %29 = vector.shape_cast %28 : vector<2x16x32xf32> to vector<32x32xf32>
    %30 = arith.truncf %29 : vector<32x32xf32> to vector<32x32xbf16>
    %c0_14 = arith.constant 0 : index
    %c0_15 = arith.constant 0 : index
    %31 = vector.load %arg5[%c0_14, %c0_15] : memref<32x96xbf16, #tpu.memory_space<vmem>>, vector<32x96xbf16>
    %cst_16 = arith.constant dense<0.000000e+00> : vector<32x96xf32>
    %32 = tpu.matmul %30, %31, %cst_16 {dimension_numbers = #tpu.dot_dimension_numbers<[1], [0], [0], [1], [0, 0, 1, 1], [], []>} : vector<32x32xbf16>, vector<32x96xbf16>, vector<32x96xf32> -> vector<32x96xf32>
    %c0_17 = arith.constant 0 : index
    %c0_18 = arith.constant 0 : index
    %33 = vector.load %arg6[%c0_17, %c0_18] : memref<1x96xf32, #tpu.memory_space<vmem>>, vector<1x96xf32>
    %34 = vector.broadcast %33 : vector<1x96xf32> to vector<32x96xf32>
    %35 = arith.addf %32, %34 : vector<32x96xf32>
    %36 = vector.shape_cast %35 : vector<32x96xf32> to vector<2x16x96xf32>
    %37 = vector.extract_strided_slice %36 {offsets = [0, 0, 0], sizes = [2, 16, 16], strides = [1, 1, 1]} : vector<2x16x96xf32> to vector<2x16x16xf32>
    %cst_19 = arith.constant 2.500000e-01 : f32
    %38 = vector.broadcast %cst_19 : f32 to vector<2x16x16xf32>
    %39 = arith.mulf %37, %38 : vector<2x16x16xf32>
    %40 = vector.extract_strided_slice %36 {offsets = [0, 0, 32], sizes = [2, 16, 16], strides = [1, 1, 1]} : vector<2x16x96xf32> to vector<2x16x16xf32>
    %41 = vector.extract_strided_slice %36 {offsets = [0, 0, 64], sizes = [2, 16, 16], strides = [1, 1, 1]} : vector<2x16x96xf32> to vector<2x16x16xf32>
    %42 = arith.truncf %39 : vector<2x16x16xf32> to vector<2x16x16xbf16>
    %43 = arith.truncf %40 : vector<2x16x16xf32> to vector<2x16x16xbf16>
    "tpu.trace_start"() <{level = 10 : i32, message = "wnd,wmd->wnm"}> : () -> ()
    %cst_20 = arith.constant dense<0.000000e+00> : vector<2x16x16xf32>
    %44 = tpu.matmul %42, %43, %cst_20 {dimension_numbers = #tpu.dot_dimension_numbers<[2], [2], [1], [1], [0, 0, 0, 1, 1, 1], [0], [0]>} : vector<2x16x16xbf16>, vector<2x16x16xbf16>, vector<2x16x16xf32> -> vector<2x16x16xf32>
    "tpu.trace_stop"() : () -> ()
    %c0_21 = arith.constant 0 : index
    %c0_22 = arith.constant 0 : index
    %c0_23 = arith.constant 0 : index
    %c0_24 = arith.constant 0 : index
    %45 = vector.load %arg7[%c0_21, %c0_22, %c0_23, %c0_24] : memref<2x2x16x16xf32, #tpu.memory_space<vmem>>, vector<1x2x16x16xf32>
    %46 = vector.shape_cast %45 : vector<1x2x16x16xf32> to vector<2x16x16xf32>
    %47 = arith.addf %44, %46 : vector<2x16x16xf32>
    %cst_25 = arith.constant dense<0xFF800000> : vector<2x16xf32>
    %48 = vector.multi_reduction <maximumf>, %47, %cst_25 [2] : vector<2x16x16xf32> to vector<2x16xf32>
    %49 = vector.shape_cast %48 : vector<2x16xf32> to vector<2x16x1xf32>
    %50 = vector.broadcast %49 : vector<2x16x1xf32> to vector<2x16x16xf32>
    %51 = arith.subf %47, %50 : vector<2x16x16xf32>
    %52 = math.exp %51 : vector<2x16x16xf32>
    %cst_26 = arith.constant dense<0.000000e+00> : vector<2x16xf32>
    %53 = vector.multi_reduction <add>, %52, %cst_26 [2] : vector<2x16x16xf32> to vector<2x16xf32>
    %54 = vector.shape_cast %53 : vector<2x16xf32> to vector<2x16x1xf32>
    %55 = tpu.reciprocal %54 {approx = true} : vector<2x16x1xf32> -> vector<2x16x1xf32>
    %56 = vector.broadcast %55 : vector<2x16x1xf32> to vector<2x16x16xf32>
    %57 = arith.mulf %52, %56 : vector<2x16x16xf32>
    %58 = arith.truncf %57 : vector<2x16x16xf32> to vector<2x16x16xbf16>
    %59 = arith.truncf %41 : vector<2x16x16xf32> to vector<2x16x16xbf16>
    "tpu.trace_start"() <{level = 10 : i32, message = "wnm,wmd->wnd"}> : () -> ()
    %cst_27 = arith.constant dense<0.000000e+00> : vector<2x16x16xf32>
    %60 = tpu.matmul %58, %59, %cst_27 {dimension_numbers = #tpu.dot_dimension_numbers<[2], [1], [1], [2], [0, 0, 0, 1, 1, 2], [0], [0]>} : vector<2x16x16xbf16>, vector<2x16x16xbf16>, vector<2x16x16xf32> -> vector<2x16x16xf32>
    "tpu.trace_stop"() : () -> ()
    %61 = vector.extract_strided_slice %36 {offsets = [0, 0, 16], sizes = [2, 16, 16], strides = [1, 1, 1]} : vector<2x16x96xf32> to vector<2x16x16xf32>
    %cst_28 = arith.constant 2.500000e-01 : f32
    %62 = vector.broadcast %cst_28 : f32 to vector<2x16x16xf32>
    %63 = arith.mulf %61, %62 : vector<2x16x16xf32>
    %64 = vector.extract_strided_slice %36 {offsets = [0, 0, 48], sizes = [2, 16, 16], strides = [1, 1, 1]} : vector<2x16x96xf32> to vector<2x16x16xf32>
    %65 = vector.extract_strided_slice %36 {offsets = [0, 0, 80], sizes = [2, 16, 16], strides = [1, 1, 1]} : vector<2x16x96xf32> to vector<2x16x16xf32>
    %66 = arith.truncf %63 : vector<2x16x16xf32> to vector<2x16x16xbf16>
    %67 = arith.truncf %64 : vector<2x16x16xf32> to vector<2x16x16xbf16>
    "tpu.trace_start"() <{level = 10 : i32, message = "wnd,wmd->wnm"}> : () -> ()
    %cst_29 = arith.constant dense<0.000000e+00> : vector<2x16x16xf32>
    %68 = tpu.matmul %66, %67, %cst_29 {dimension_numbers = #tpu.dot_dimension_numbers<[2], [2], [1], [1], [0, 0, 0, 1, 1, 1], [0], [0]>} : vector<2x16x16xbf16>, vector<2x16x16xbf16>, vector<2x16x16xf32> -> vector<2x16x16xf32>
    "tpu.trace_stop"() : () -> ()
    %c1 = arith.constant 1 : index
    %c0_30 = arith.constant 0 : index
    %c0_31 = arith.constant 0 : index
    %c0_32 = arith.constant 0 : index
    %69 = vector.load %arg7[%c1, %c0_30, %c0_31, %c0_32] : memref<2x2x16x16xf32, #tpu.memory_space<vmem>>, vector<1x2x16x16xf32>
    %70 = vector.shape_cast %69 : vector<1x2x16x16xf32> to vector<2x16x16xf32>
    %71 = arith.addf %68, %70 : vector<2x16x16xf32>
    %cst_33 = arith.constant dense<0xFF800000> : vector<2x16xf32>
    %72 = vector.multi_reduction <maximumf>, %71, %cst_33 [2] : vector<2x16x16xf32> to vector<2x16xf32>
    %73 = vector.shape_cast %72 : vector<2x16xf32> to vector<2x16x1xf32>
    %74 = vector.broadcast %73 : vector<2x16x1xf32> to vector<2x16x16xf32>
    %75 = arith.subf %71, %74 : vector<2x16x16xf32>
    %76 = math.exp %75 : vector<2x16x16xf32>
    %cst_34 = arith.constant dense<0.000000e+00> : vector<2x16xf32>
    %77 = vector.multi_reduction <add>, %76, %cst_34 [2] : vector<2x16x16xf32> to vector<2x16xf32>
    %78 = vector.shape_cast %77 : vector<2x16xf32> to vector<2x16x1xf32>
    %79 = tpu.reciprocal %78 {approx = true} : vector<2x16x1xf32> -> vector<2x16x1xf32>
    %80 = vector.broadcast %79 : vector<2x16x1xf32> to vector<2x16x16xf32>
    %81 = arith.mulf %76, %80 : vector<2x16x16xf32>
    %82 = arith.truncf %81 : vector<2x16x16xf32> to vector<2x16x16xbf16>
    %83 = arith.truncf %65 : vector<2x16x16xf32> to vector<2x16x16xbf16>
    "tpu.trace_start"() <{level = 10 : i32, message = "wnm,wmd->wnd"}> : () -> ()
    %cst_35 = arith.constant dense<0.000000e+00> : vector<2x16x16xf32>
    %84 = tpu.matmul %82, %83, %cst_35 {dimension_numbers = #tpu.dot_dimension_numbers<[2], [1], [1], [2], [0, 0, 0, 1, 1, 2], [0], [0]>} : vector<2x16x16xbf16>, vector<2x16x16xbf16>, vector<2x16x16xf32> -> vector<2x16x16xf32>
    "tpu.trace_stop"() : () -> ()
    %85 = tpu.concatenate %60, %84 in 2 : vector<2x16x16xf32>, vector<2x16x16xf32> -> vector<2x16x32xf32>
    %86 = vector.shape_cast %85 : vector<2x16x32xf32> to vector<32x32xf32>
    %87 = arith.truncf %86 : vector<32x32xf32> to vector<32x32xbf16>
    %c0_36 = arith.constant 0 : index
    %c0_37 = arith.constant 0 : index
    %88 = vector.load %arg8[%c0_36, %c0_37] : memref<32x32xbf16, #tpu.memory_space<vmem>>, vector<32x32xbf16>
    %cst_38 = arith.constant dense<0.000000e+00> : vector<32x32xf32>
    %89 = tpu.matmul %87, %88, %cst_38 {dimension_numbers = #tpu.dot_dimension_numbers<[1], [0], [0], [1], [0, 0, 1, 1], [], []>} : vector<32x32xbf16>, vector<32x32xbf16>, vector<32x32xf32> -> vector<32x32xf32>
    %c0_39 = arith.constant 0 : index
    %c0_40 = arith.constant 0 : index
    %90 = vector.load %arg9[%c0_39, %c0_40] : memref<1x32xf32, #tpu.memory_space<vmem>>, vector<1x32xf32>
    %91 = vector.broadcast %90 : vector<1x32xf32> to vector<32x32xf32>
    %92 = arith.addf %89, %91 : vector<32x32xf32>
    %93 = vector.shape_cast %92 : vector<32x32xf32> to vector<2x16x32xf32>
    %c0_41 = arith.constant 0 : index
    %c0_42 = arith.constant 0 : index
    %c0_43 = arith.constant 0 : index
    %c0_44 = arith.constant 0 : index
    %94 = vector.load %arg10[%c0_41, %c0_42, %c0_43, %c0_44] : memref<1x2x16x32xf32, #tpu.memory_space<vmem>>, vector<1x2x16x32xf32>
    %95 = vector.shape_cast %94 : vector<1x2x16x32xf32> to vector<2x16x32xf32>
    %96 = vector.shape_cast %93 : vector<2x16x32xf32> to vector<1x2x16x32xf32>
    tpu.vector_store %arg10[%c0_41, %c0_42, %c0_43, %c0_44], %96 {strides = array<i32>} : memref<1x2x16x32xf32, #tpu.memory_space<vmem>>, vector<1x2x16x32xf32>,
    return
  }
  func.func @transform_0(%arg0: i32) -> (i32, i32, i32, i32) {
    %c0_i32 = arith.constant 0 : i32
    %c0_i32_0 = arith.constant 0 : i32
    %c0_i32_1 = arith.constant 0 : i32
    %c0_i32_2 = arith.constant 0 : i32
    return %arg0, %c0_i32, %c0_i32_0, %c0_i32_1 : i32, i32, i32, i32
  }
  func.func @transform_1(%arg0: i32) -> (i32, i32, i32) {
    %c0_i32 = arith.constant 0 : i32
    %c0_i32_0 = arith.constant 0 : i32
    %c0_i32_1 = arith.constant 0 : i32
    %c0_i32_2 = arith.constant 0 : i32
    return %c0_i32, %c0_i32_0, %c0_i32_1 : i32, i32, i32
  }
  func.func @transform_2(%arg0: i32) -> (i32, i32) {
    %c0_i32 = arith.constant 0 : i32
    %c0_i32_0 = arith.constant 0 : i32
    %c0_i32_1 = arith.constant 0 : i32
    return %c0_i32, %c0_i32_0 : i32, i32
  }
  func.func @transform_3(%arg0: i32) -> (i32, i32) {
    %c0_i32 = arith.constant 0 : i32
    %c0_i32_0 = arith.constant 0 : i32
    %c0_i32_1 = arith.constant 0 : i32
    return %c0_i32, %c0_i32_0 : i32, i32
  }
  func.func @transform_4(%arg0: i32) -> (i32, i32) {
    %c0_i32 = arith.constant 0 : i32
    %c0_i32_0 = arith.constant 0 : i32
    %c0_i32_1 = arith.constant 0 : i32
    return %c0_i32, %c0_i32_0 : i32, i32
  }
  func.func @transform_5(%arg0: i32) -> (i32, i32) {
    %c0_i32 = arith.constant 0 : i32
    %c0_i32_0 = arith.constant 0 : i32
    %c0_i32_1 = arith.constant 0 : i32
    return %c0_i32, %c0_i32_0 : i32, i32
  }
  func.func @transform_6(%arg0: i32) -> (i32, i32, i32, i32) {
    %c0_i32 = arith.constant 0 : i32
    %c0_i32_0 = arith.constant 0 : i32
    %c0_i32_1 = arith.constant 0 : i32
    %c0_i32_2 = arith.constant 0 : i32
    %c0_i32_3 = arith.constant 0 : i32
    return %c0_i32, %c0_i32_0, %c0_i32_1, %c0_i32_2 : i32, i32, i32, i32
  }
  func.func @transform_7(%arg0: i32) -> (i32, i32) {
    %c0_i32 = arith.constant 0 : i32
    %c0_i32_0 = arith.constant 0 : i32
    %c0_i32_1 = arith.constant 0 : i32
    return %c0_i32, %c0_i32_0 : i32, i32
  }
  func.func @transform_8(%arg0: i32) -> (i32, i32) {
    %c0_i32 = arith.constant 0 : i32
    %c0_i32_0 = arith.constant 0 : i32
    %c0_i32_1 = arith.constant 0 : i32
    return %c0_i32, %c0_i32_0 : i32, i32
  }
  func.func @transform_9(%arg0: i32) -> (i32, i32, i32, i32) {
    %c0_i32 = arith.constant 0 : i32
    %c0_i32_0 = arith.constant 0 : i32
    %c0_i32_1 = arith.constant 0 : i32
    %c0_i32_2 = arith.constant 0 : i32
    return %arg0, %c0_i32, %c0_i32_0, %c0_i32_1 : i32, i32, i32, i32
  }
}

module attributes {stable_mosaic.version = 11 : i64} {
  func.func @_mlp_block_kernel(%arg0: i32, %arg1: memref<10x32xf32, #tpu.memory_space<vmem>>, %arg2: memref<10x32xf32, #tpu.memory_space<vmem>>, %arg3: memref<1x32xf32, #tpu.memory_space<vmem>>, %arg4: memref<1x32xf32, #tpu.memory_space<vmem>>, %arg5: memref<32x64xbf16, #tpu.memory_space<vmem>>, %arg6: memref<1x64xf32, #tpu.memory_space<vmem>>, %arg7: memref<64x32xbf16, #tpu.memory_space<vmem>>, %arg8: memref<1x32xf32, #tpu.memory_space<vmem>>, %arg9: memref<10x32xf32, #tpu.memory_space<vmem>>) attributes {dimension_semantics = [#tpu.dimension_semantics<arbitrary>], iteration_bounds = array<i64: 1>, scalar_prefetch = 0 : i64, scratch_operands = 0 : i64, tpu.core_type = #tpu.core_type<tc>, window_params = [{pipeline_mode = #tpu.pipeline_mode<synchronous>, transform_indices = @transform_0, window_bounds = array<i64: 10, 32>}, {pipeline_mode = #tpu.pipeline_mode<synchronous>, transform_indices = @transform_1, window_bounds = array<i64: 10, 32>}, {pipeline_mode = #tpu.pipeline_mode<synchronous>, transform_indices = @transform_2, window_bounds = array<i64: 1, 32>}, {pipeline_mode = #tpu.pipeline_mode<synchronous>, transform_indices = @transform_3, window_bounds = array<i64: 1, 32>}, {pipeline_mode = #tpu.pipeline_mode<synchronous>, transform_indices = @transform_4, window_bounds = array<i64: 32, 64>}, {pipeline_mode = #tpu.pipeline_mode<synchronous>, transform_indices = @transform_5, window_bounds = array<i64: 1, 64>}, {pipeline_mode = #tpu.pipeline_mode<synchronous>, transform_indices = @transform_6, window_bounds = array<i64: 64, 32>}, {pipeline_mode = #tpu.pipeline_mode<synchronous>, transform_indices = @transform_7, window_bounds = array<i64: 1, 32>}, {pipeline_mode = #tpu.pipeline_mode<synchronous>, transform_indices = @transform_8, window_bounds = array<i64: 10, 32>}]} {
    %c0 = arith.constant 0 : index
    %c0_0 = arith.constant 0 : index
    %0 = vector.load %arg1[%c0, %c0_0] : memref<10x32xf32, #tpu.memory_space<vmem>>, vector<10x32xf32>
    %c0_1 = arith.constant 0 : index
    %c0_2 = arith.constant 0 : index
    %1 = vector.load %arg2[%c0_1, %c0_2] : memref<10x32xf32, #tpu.memory_space<vmem>>, vector<10x32xf32>
    %2 = arith.addf %0, %1 : vector<10x32xf32>
    %c0_3 = arith.constant 0 : index
    %c0_4 = arith.constant 0 : index
    %3 = vector.load %arg3[%c0_3, %c0_4] : memref<1x32xf32, #tpu.memory_space<vmem>>, vector<1x32xf32>
    %c0_5 = arith.constant 0 : index
    %c0_6 = arith.constant 0 : index
    %4 = vector.load %arg4[%c0_5, %c0_6] : memref<1x32xf32, #tpu.memory_space<vmem>>, vector<1x32xf32>
    %cst = arith.constant dense<0.000000e+00> : vector<10xf32>
    %5 = vector.multi_reduction <add>, %2, %cst [1] : vector<10x32xf32> to vector<10xf32>
    %6 = vector.shape_cast %5 : vector<10xf32> to vector<10x1xf32>
    %cst_7 = arith.constant 3.200000e+01 : f32
    %7 = vector.broadcast %cst_7 : f32 to vector<10x1xf32>
    %8 = arith.divf %6, %7 : vector<10x1xf32>
    %9 = vector.broadcast %8 : vector<10x1xf32> to vector<10x32xf32>
    %10 = arith.subf %2, %9 : vector<10x32xf32>
    %11 = arith.mulf %10, %10 : vector<10x32xf32>
    %cst_8 = arith.constant dense<0.000000e+00> : vector<10xf32>
    %12 = vector.multi_reduction <add>, %11, %cst_8 [1] : vector<10x32xf32> to vector<10xf32>
    %13 = vector.shape_cast %12 : vector<10xf32> to vector<10x1xf32>
    %cst_9 = arith.constant 3.200000e+01 : f32
    %14 = vector.broadcast %cst_9 : f32 to vector<10x1xf32>
    %15 = arith.divf %13, %14 : vector<10x1xf32>
    %cst_10 = arith.constant 9.99999974E-6 : f32
    %16 = vector.broadcast %cst_10 : f32 to vector<10x1xf32>
    %17 = arith.addf %15, %16 : vector<10x1xf32>
    %18 = math.rsqrt %17 : vector<10x1xf32>
    %19 = vector.broadcast %18 : vector<10x1xf32> to vector<10x32xf32>
    %20 = arith.mulf %10, %19 : vector<10x32xf32>
    %21 = vector.broadcast %3 : vector<1x32xf32> to vector<10x32xf32>
    %22 = arith.mulf %20, %21 : vector<10x32xf32>
    %23 = vector.broadcast %4 : vector<1x32xf32> to vector<10x32xf32>
    %24 = arith.addf %22, %23 : vector<10x32xf32>
    %25 = arith.truncf %24 : vector<10x32xf32> to vector<10x32xbf16>
    %c0_11 = arith.constant 0 : index
    %c0_12 = arith.constant 0 : index
    %26 = vector.load %arg5[%c0_11, %c0_12] : memref<32x64xbf16, #tpu.memory_space<vmem>>, vector<32x64xbf16>
    %cst_13 = arith.constant dense<0.000000e+00> : vector<10x64xf32>
    %27 = tpu.matmul %25, %26, %cst_13 {dimension_numbers = #tpu.dot_dimension_numbers<[1], [0], [0], [1], [0, 0, 1, 1], [], []>} : vector<10x32xbf16>, vector<32x64xbf16>, vector<10x64xf32> -> vector<10x64xf32>
    %c0_14 = arith.constant 0 : index
    %c0_15 = arith.constant 0 : index
    %28 = vector.load %arg6[%c0_14, %c0_15] : memref<1x64xf32, #tpu.memory_space<vmem>>, vector<1x64xf32>
    %29 = vector.broadcast %28 : vector<1x64xf32> to vector<10x64xf32>
    %30 = arith.addf %27, %29 : vector<10x64xf32>
    %cst_16 = arith.constant 5.000000e-01 : f32
    %31 = vector.broadcast %cst_16 : f32 to vector<10x64xf32>
    %32 = arith.mulf %31, %30 : vector<10x64xf32>
    %cst_17 = arith.constant 0.707106769 : f32
    %33 = vector.broadcast %cst_17 : f32 to vector<10x64xf32>
    %34 = arith.mulf %30, %33 : vector<10x64xf32>
    %cst_18 = arith.constant 0.000000e+00 : f32
    %35 = vector.broadcast %cst_18 : f32 to vector<10x64xf32>
    %36 = arith.cmpf oge, %34, %35 : vector<10x64xf32>
    %cst_19 = arith.constant 1.000000e+00 : f32
    %cst_20 = arith.constant -1.000000e+00 : f32
    %37 = vector.broadcast %cst_19 : f32 to vector<10x64xf32>
    %38 = vector.broadcast %cst_20 : f32 to vector<10x64xf32>
    %39 = arith.select %36, %37, %38 : vector<10x64xi1>, vector<10x64xf32>
    %40 = math.absf %34 : vector<10x64xf32>
    %cst_21 = arith.constant 0.327591091 : f32
    %41 = vector.broadcast %cst_21 : f32 to vector<10x64xf32>
    %42 = arith.mulf %41, %40 : vector<10x64xf32>
    %cst_22 = arith.constant 1.000000e+00 : f32
    %43 = vector.broadcast %cst_22 : f32 to vector<10x64xf32>
    %44 = arith.addf %43, %42 : vector<10x64xf32>
    %cst_23 = arith.constant 1.000000e+00 : f32
    %45 = vector.broadcast %cst_23 : f32 to vector<10x64xf32>
    %46 = arith.divf %45, %44 : vector<10x64xf32>
    %cst_24 = arith.constant 1.06140542 : f32
    %47 = vector.broadcast %cst_24 : f32 to vector<10x64xf32>
    %48 = arith.mulf %47, %46 : vector<10x64xf32>
    %cst_25 = arith.constant -1.45315206 : f32
    %49 = vector.broadcast %cst_25 : f32 to vector<10x64xf32>
    %50 = arith.addf %48, %49 : vector<10x64xf32>
    %51 = arith.mulf %50, %46 : vector<10x64xf32>
    %cst_26 = arith.constant 1.42141378 : f32
    %52 = vector.broadcast %cst_26 : f32 to vector<10x64xf32>
    %53 = arith.addf %51, %52 : vector<10x64xf32>
    %54 = arith.mulf %53, %46 : vector<10x64xf32>
    %cst_27 = arith.constant -0.284496725 : f32
    %55 = vector.broadcast %cst_27 : f32 to vector<10x64xf32>
    %56 = arith.addf %54, %55 : vector<10x64xf32>
    %57 = arith.mulf %56, %46 : vector<10x64xf32>
    %cst_28 = arith.constant 0.254829586 : f32
    %58 = vector.broadcast %cst_28 : f32 to vector<10x64xf32>
    %59 = arith.addf %57, %58 : vector<10x64xf32>
    %60 = arith.mulf %59, %46 : vector<10x64xf32>
    %cst_29 = arith.constant 0.000000e+00 : f32
    %61 = vector.broadcast %cst_29 : f32 to vector<10x64xf32>
    %62 = arith.subf %61, %40 : vector<10x64xf32>
    %63 = arith.mulf %62, %40 : vector<10x64xf32>
    %64 = math.exp %63 : vector<10x64xf32>
    %65 = arith.mulf %60, %64 : vector<10x64xf32>
    %cst_30 = arith.constant 1.000000e+00 : f32
    %66 = vector.broadcast %cst_30 : f32 to vector<10x64xf32>
    %67 = arith.subf %66, %65 : vector<10x64xf32>
    %68 = arith.mulf %39, %67 : vector<10x64xf32>
    %cst_31 = arith.constant 1.000000e+00 : f32
    %69 = vector.broadcast %cst_31 : f32 to vector<10x64xf32>
    %70 = arith.addf %69, %68 : vector<10x64xf32>
    %71 = arith.mulf %32, %70 : vector<10x64xf32>
    %72 = arith.truncf %71 : vector<10x64xf32> to vector<10x64xbf16>
    %c0_32 = arith.constant 0 : index
    %c0_33 = arith.constant 0 : index
    %73 = vector.load %arg7[%c0_32, %c0_33] : memref<64x32xbf16, #tpu.memory_space<vmem>>, vector<64x32xbf16>
    %cst_34 = arith.constant dense<0.000000e+00> : vector<10x32xf32>
    %74 = tpu.matmul %72, %73, %cst_34 {dimension_numbers = #tpu.dot_dimension_numbers<[1], [0], [0], [1], [0, 0, 1, 1], [], []>} : vector<10x64xbf16>, vector<64x32xbf16>, vector<10x32xf32> -> vector<10x32xf32>
    %c0_35 = arith.constant 0 : index
    %c0_36 = arith.constant 0 : index
    %75 = vector.load %arg8[%c0_35, %c0_36] : memref<1x32xf32, #tpu.memory_space<vmem>>, vector<1x32xf32>
    %76 = vector.broadcast %75 : vector<1x32xf32> to vector<10x32xf32>
    %77 = arith.addf %74, %76 : vector<10x32xf32>
    %78 = arith.addf %2, %77 : vector<10x32xf32>
    %c0_37 = arith.constant 0 : index
    %c0_38 = arith.constant 0 : index
    %79 = vector.load %arg9[%c0_37, %c0_38] : memref<10x32xf32, #tpu.memory_space<vmem>>, vector<10x32xf32>
    tpu.vector_store %arg9[%c0_37, %c0_38], %78 {strides = array<i32>} : memref<10x32xf32, #tpu.memory_space<vmem>>, vector<10x32xf32>,
    return
  }
  func.func @transform_0(%arg0: i32) -> (i32, i32) {
    %c0_i32 = arith.constant 0 : i32
    %c0_i32_0 = arith.constant 0 : i32
    %c0_i32_1 = arith.constant 0 : i32
    return %c0_i32, %c0_i32_0 : i32, i32
  }
  func.func @transform_1(%arg0: i32) -> (i32, i32) {
    %c0_i32 = arith.constant 0 : i32
    %c0_i32_0 = arith.constant 0 : i32
    %c0_i32_1 = arith.constant 0 : i32
    return %c0_i32, %c0_i32_0 : i32, i32
  }
  func.func @transform_2(%arg0: i32) -> (i32, i32) {
    %c0_i32 = arith.constant 0 : i32
    %c0_i32_0 = arith.constant 0 : i32
    %c0_i32_1 = arith.constant 0 : i32
    return %c0_i32, %c0_i32_0 : i32, i32
  }
  func.func @transform_3(%arg0: i32) -> (i32, i32) {
    %c0_i32 = arith.constant 0 : i32
    %c0_i32_0 = arith.constant 0 : i32
    %c0_i32_1 = arith.constant 0 : i32
    return %c0_i32, %c0_i32_0 : i32, i32
  }
  func.func @transform_4(%arg0: i32) -> (i32, i32) {
    %c0_i32 = arith.constant 0 : i32
    %c0_i32_0 = arith.constant 0 : i32
    %c0_i32_1 = arith.constant 0 : i32
    return %c0_i32, %c0_i32_0 : i32, i32
  }
  func.func @transform_5(%arg0: i32) -> (i32, i32) {
    %c0_i32 = arith.constant 0 : i32
    %c0_i32_0 = arith.constant 0 : i32
    %c0_i32_1 = arith.constant 0 : i32
    return %c0_i32, %c0_i32_0 : i32, i32
  }
  func.func @transform_6(%arg0: i32) -> (i32, i32) {
    %c0_i32 = arith.constant 0 : i32
    %c0_i32_0 = arith.constant 0 : i32
    %c0_i32_1 = arith.constant 0 : i32
    return %c0_i32, %c0_i32_0 : i32, i32
  }
  func.func @transform_7(%arg0: i32) -> (i32, i32) {
    %c0_i32 = arith.constant 0 : i32
    %c0_i32_0 = arith.constant 0 : i32
    %c0_i32_1 = arith.constant 0 : i32
    return %c0_i32, %c0_i32_0 : i32, i32
  }
  func.func @transform_8(%arg0: i32) -> (i32, i32) {
    %c0_i32 = arith.constant 0 : i32
    %c0_i32_0 = arith.constant 0 : i32
    %c0_i32_1 = arith.constant 0 : i32
    return %c0_i32, %c0_i32_0 : i32, i32
  }
}

module attributes {stable_mosaic.version = 11 : i64} {
  func.func @_merge_kernel(%arg0: i32, %arg1: memref<6x128xf32, #tpu.memory_space<vmem>>, %arg2: memref<1x128xf32, #tpu.memory_space<vmem>>, %arg3: memref<1x128xf32, #tpu.memory_space<vmem>>, %arg4: memref<128x64xbf16, #tpu.memory_space<vmem>>, %arg5: memref<6x64xf32, #tpu.memory_space<vmem>>) attributes {dimension_semantics = [#tpu.dimension_semantics<arbitrary>], iteration_bounds = array<i64: 1>, scalar_prefetch = 0 : i64, scratch_operands = 0 : i64, tpu.core_type = #tpu.core_type<tc>, window_params = [{pipeline_mode = #tpu.pipeline_mode<synchronous>, transform_indices = @transform_0, window_bounds = array<i64: 6, 128>}, {pipeline_mode = #tpu.pipeline_mode<synchronous>, transform_indices = @transform_1, window_bounds = array<i64: 1, 128>}, {pipeline_mode = #tpu.pipeline_mode<synchronous>, transform_indices = @transform_2, window_bounds = array<i64: 1, 128>}, {pipeline_mode = #tpu.pipeline_mode<synchronous>, transform_indices = @transform_3, window_bounds = array<i64: 128, 64>}, {pipeline_mode = #tpu.pipeline_mode<synchronous>, transform_indices = @transform_4, window_bounds = array<i64: 6, 64>}]} {
    %c0 = arith.constant 0 : index
    %c0_0 = arith.constant 0 : index
    %0 = vector.load %arg1[%c0, %c0_0] : memref<6x128xf32, #tpu.memory_space<vmem>>, vector<6x128xf32>
    %c0_1 = arith.constant 0 : index
    %c0_2 = arith.constant 0 : index
    %1 = vector.load %arg2[%c0_1, %c0_2] : memref<1x128xf32, #tpu.memory_space<vmem>>, vector<1x128xf32>
    %c0_3 = arith.constant 0 : index
    %c0_4 = arith.constant 0 : index
    %2 = vector.load %arg3[%c0_3, %c0_4] : memref<1x128xf32, #tpu.memory_space<vmem>>, vector<1x128xf32>
    %cst = arith.constant dense<0.000000e+00> : vector<6xf32>
    %3 = vector.multi_reduction <add>, %0, %cst [1] : vector<6x128xf32> to vector<6xf32>
    %4 = vector.shape_cast %3 : vector<6xf32> to vector<6x1xf32>
    %cst_5 = arith.constant 1.280000e+02 : f32
    %5 = vector.broadcast %cst_5 : f32 to vector<6x1xf32>
    %6 = arith.divf %4, %5 : vector<6x1xf32>
    %7 = vector.broadcast %6 : vector<6x1xf32> to vector<6x128xf32>
    %8 = arith.subf %0, %7 : vector<6x128xf32>
    %9 = arith.mulf %8, %8 : vector<6x128xf32>
    %cst_6 = arith.constant dense<0.000000e+00> : vector<6xf32>
    %10 = vector.multi_reduction <add>, %9, %cst_6 [1] : vector<6x128xf32> to vector<6xf32>
    %11 = vector.shape_cast %10 : vector<6xf32> to vector<6x1xf32>
    %cst_7 = arith.constant 1.280000e+02 : f32
    %12 = vector.broadcast %cst_7 : f32 to vector<6x1xf32>
    %13 = arith.divf %11, %12 : vector<6x1xf32>
    %cst_8 = arith.constant 9.99999974E-6 : f32
    %14 = vector.broadcast %cst_8 : f32 to vector<6x1xf32>
    %15 = arith.addf %13, %14 : vector<6x1xf32>
    %16 = math.rsqrt %15 : vector<6x1xf32>
    %17 = vector.broadcast %16 : vector<6x1xf32> to vector<6x128xf32>
    %18 = arith.mulf %8, %17 : vector<6x128xf32>
    %19 = vector.broadcast %1 : vector<1x128xf32> to vector<6x128xf32>
    %20 = arith.mulf %18, %19 : vector<6x128xf32>
    %21 = vector.broadcast %2 : vector<1x128xf32> to vector<6x128xf32>
    %22 = arith.addf %20, %21 : vector<6x128xf32>
    %23 = arith.truncf %22 : vector<6x128xf32> to vector<6x128xbf16>
    %c0_9 = arith.constant 0 : index
    %c0_10 = arith.constant 0 : index
    %24 = vector.load %arg4[%c0_9, %c0_10] : memref<128x64xbf16, #tpu.memory_space<vmem>>, vector<128x64xbf16>
    %cst_11 = arith.constant dense<0.000000e+00> : vector<6x64xf32>
    %25 = tpu.matmul %23, %24, %cst_11 {dimension_numbers = #tpu.dot_dimension_numbers<[1], [0], [0], [1], [0, 0, 1, 1], [], []>} : vector<6x128xbf16>, vector<128x64xbf16>, vector<6x64xf32> -> vector<6x64xf32>
    %c0_12 = arith.constant 0 : index
    %c0_13 = arith.constant 0 : index
    %26 = vector.load %arg5[%c0_12, %c0_13] : memref<6x64xf32, #tpu.memory_space<vmem>>, vector<6x64xf32>
    tpu.vector_store %arg5[%c0_12, %c0_13], %25 {strides = array<i32>} : memref<6x64xf32, #tpu.memory_space<vmem>>, vector<6x64xf32>,
    return
  }
  func.func @transform_0(%arg0: i32) -> (i32, i32) {
    %c0_i32 = arith.constant 0 : i32
    %c0_i32_0 = arith.constant 0 : i32
    %c0_i32_1 = arith.constant 0 : i32
    return %c0_i32, %c0_i32_0 : i32, i32
  }
  func.func @transform_1(%arg0: i32) -> (i32, i32) {
    %c0_i32 = arith.constant 0 : i32
    %c0_i32_0 = arith.constant 0 : i32
    %c0_i32_1 = arith.constant 0 : i32
    return %c0_i32, %c0_i32_0 : i32, i32
  }
  func.func @transform_2(%arg0: i32) -> (i32, i32) {
    %c0_i32 = arith.constant 0 : i32
    %c0_i32_0 = arith.constant 0 : i32
    %c0_i32_1 = arith.constant 0 : i32
    return %c0_i32, %c0_i32_0 : i32, i32
  }
  func.func @transform_3(%arg0: i32) -> (i32, i32) {
    %c0_i32 = arith.constant 0 : i32
    %c0_i32_0 = arith.constant 0 : i32
    %c0_i32_1 = arith.constant 0 : i32
    return %c0_i32, %c0_i32_0 : i32, i32
  }
  func.func @transform_4(%arg0: i32) -> (i32, i32) {
    %c0_i32 = arith.constant 0 : i32
    %c0_i32_0 = arith.constant 0 : i32
    %c0_i32_1 = arith.constant 0 : i32
    return %c0_i32, %c0_i32_0 : i32, i32
  }
}

module attributes {stable_mosaic.version = 11 : i64} {
  func.func @_attn_block_kernel(%arg0: i32, %arg1: memref<1x1x16x64xf32, #tpu.memory_space<vmem>>, %arg2: memref<1x16x1xf32, #tpu.memory_space<vmem>>, %arg3: memref<1x64xf32, #tpu.memory_space<vmem>>, %arg4: memref<1x64xf32, #tpu.memory_space<vmem>>, %arg5: memref<64x192xbf16, #tpu.memory_space<vmem>>, %arg6: memref<1x192xf32, #tpu.memory_space<vmem>>, %arg7: memref<4x1x16x16xf32, #tpu.memory_space<vmem>>, %arg8: memref<64x64xbf16, #tpu.memory_space<vmem>>, %arg9: memref<1x64xf32, #tpu.memory_space<vmem>>, %arg10: memref<1x1x16x64xf32, #tpu.memory_space<vmem>>) attributes {dimension_semantics = [#tpu.dimension_semantics<parallel>], iteration_bounds = array<i64: 2>, scalar_prefetch = 0 : i64, scratch_operands = 0 : i64, tpu.core_type = #tpu.core_type<tc>, window_params = [{transform_indices = @transform_0, window_bounds = array<i64: 1, 1, 16, 64>}, {pipeline_mode = #tpu.pipeline_mode<synchronous>, transform_indices = @transform_1, window_bounds = array<i64: 1, 16, 1>}, {pipeline_mode = #tpu.pipeline_mode<synchronous>, transform_indices = @transform_2, window_bounds = array<i64: 1, 64>}, {pipeline_mode = #tpu.pipeline_mode<synchronous>, transform_indices = @transform_3, window_bounds = array<i64: 1, 64>}, {pipeline_mode = #tpu.pipeline_mode<synchronous>, transform_indices = @transform_4, window_bounds = array<i64: 64, 192>}, {pipeline_mode = #tpu.pipeline_mode<synchronous>, transform_indices = @transform_5, window_bounds = array<i64: 1, 192>}, {pipeline_mode = #tpu.pipeline_mode<synchronous>, transform_indices = @transform_6, window_bounds = array<i64: 4, 1, 16, 16>}, {pipeline_mode = #tpu.pipeline_mode<synchronous>, transform_indices = @transform_7, window_bounds = array<i64: 64, 64>}, {pipeline_mode = #tpu.pipeline_mode<synchronous>, transform_indices = @transform_8, window_bounds = array<i64: 1, 64>}, {transform_indices = @transform_9, window_bounds = array<i64: 1, 1, 16, 64>}]} {
    %c0 = arith.constant 0 : index
    %c0_0 = arith.constant 0 : index
    %c0_1 = arith.constant 0 : index
    %c0_2 = arith.constant 0 : index
    %0 = vector.load %arg1[%c0, %c0_0, %c0_1, %c0_2] : memref<1x1x16x64xf32, #tpu.memory_space<vmem>>, vector<1x1x16x64xf32>
    %1 = vector.shape_cast %0 : vector<1x1x16x64xf32> to vector<1x16x64xf32>
    %c0_3 = arith.constant 0 : index
    %c0_4 = arith.constant 0 : index
    %2 = vector.load %arg3[%c0_3, %c0_4] : memref<1x64xf32, #tpu.memory_space<vmem>>, vector<1x64xf32>
    %c0_5 = arith.constant 0 : index
    %c0_6 = arith.constant 0 : index
    %3 = vector.load %arg4[%c0_5, %c0_6] : memref<1x64xf32, #tpu.memory_space<vmem>>, vector<1x64xf32>
    %cst = arith.constant dense<0.000000e+00> : vector<1x16xf32>
    %4 = vector.multi_reduction <add>, %1, %cst [2] : vector<1x16x64xf32> to vector<1x16xf32>
    %5 = vector.shape_cast %4 : vector<1x16xf32> to vector<1x16x1xf32>
    %cst_7 = arith.constant 6.400000e+01 : f32
    %6 = vector.broadcast %cst_7 : f32 to vector<1x16x1xf32>
    %7 = arith.divf %5, %6 : vector<1x16x1xf32>
    %8 = vector.broadcast %7 : vector<1x16x1xf32> to vector<1x16x64xf32>
    %9 = arith.subf %1, %8 : vector<1x16x64xf32>
    %10 = arith.mulf %9, %9 : vector<1x16x64xf32>
    %cst_8 = arith.constant dense<0.000000e+00> : vector<1x16xf32>
    %11 = vector.multi_reduction <add>, %10, %cst_8 [2] : vector<1x16x64xf32> to vector<1x16xf32>
    %12 = vector.shape_cast %11 : vector<1x16xf32> to vector<1x16x1xf32>
    %cst_9 = arith.constant 6.400000e+01 : f32
    %13 = vector.broadcast %cst_9 : f32 to vector<1x16x1xf32>
    %14 = arith.divf %12, %13 : vector<1x16x1xf32>
    %cst_10 = arith.constant 9.99999974E-6 : f32
    %15 = vector.broadcast %cst_10 : f32 to vector<1x16x1xf32>
    %16 = arith.addf %14, %15 : vector<1x16x1xf32>
    %17 = math.rsqrt %16 : vector<1x16x1xf32>
    %18 = vector.broadcast %17 : vector<1x16x1xf32> to vector<1x16x64xf32>
    %19 = arith.mulf %9, %18 : vector<1x16x64xf32>
    %20 = vector.shape_cast %2 : vector<1x64xf32> to vector<1x1x64xf32>
    %21 = vector.broadcast %20 : vector<1x1x64xf32> to vector<1x16x64xf32>
    %22 = arith.mulf %19, %21 : vector<1x16x64xf32>
    %23 = vector.shape_cast %3 : vector<1x64xf32> to vector<1x1x64xf32>
    %24 = vector.broadcast %23 : vector<1x1x64xf32> to vector<1x16x64xf32>
    %25 = arith.addf %22, %24 : vector<1x16x64xf32>
    %c0_11 = arith.constant 0 : index
    %c0_12 = arith.constant 0 : index
    %c0_13 = arith.constant 0 : index
    %26 = vector.load %arg2[%c0_11, %c0_12, %c0_13] : memref<1x16x1xf32, #tpu.memory_space<vmem>>, vector<1x16x1xf32>
    %27 = vector.broadcast %26 : vector<1x16x1xf32> to vector<1x16x64xf32>
    %28 = arith.mulf %25, %27 : vector<1x16x64xf32>
    %29 = vector.shape_cast %28 : vector<1x16x64xf32> to vector<16x64xf32>
    %30 = arith.truncf %29 : vector<16x64xf32> to vector<16x64xbf16>
    %c0_14 = arith.constant 0 : index
    %c0_15 = arith.constant 0 : index
    %31 = vector.load %arg5[%c0_14, %c0_15] : memref<64x192xbf16, #tpu.memory_space<vmem>>, vector<64x192xbf16>
    %cst_16 = arith.constant dense<0.000000e+00> : vector<16x192xf32>
    %32 = tpu.matmul %30, %31, %cst_16 {dimension_numbers = #tpu.dot_dimension_numbers<[1], [0], [0], [1], [0, 0, 1, 1], [], []>} : vector<16x64xbf16>, vector<64x192xbf16>, vector<16x192xf32> -> vector<16x192xf32>
    %c0_17 = arith.constant 0 : index
    %c0_18 = arith.constant 0 : index
    %33 = vector.load %arg6[%c0_17, %c0_18] : memref<1x192xf32, #tpu.memory_space<vmem>>, vector<1x192xf32>
    %34 = vector.broadcast %33 : vector<1x192xf32> to vector<16x192xf32>
    %35 = arith.addf %32, %34 : vector<16x192xf32>
    %36 = vector.shape_cast %35 : vector<16x192xf32> to vector<1x16x192xf32>
    %37 = vector.extract_strided_slice %36 {offsets = [0, 0, 0], sizes = [1, 16, 16], strides = [1, 1, 1]} : vector<1x16x192xf32> to vector<1x16x16xf32>
    %cst_19 = arith.constant 2.500000e-01 : f32
    %38 = vector.broadcast %cst_19 : f32 to vector<1x16x16xf32>
    %39 = arith.mulf %37, %38 : vector<1x16x16xf32>
    %40 = vector.extract_strided_slice %36 {offsets = [0, 0, 64], sizes = [1, 16, 16], strides = [1, 1, 1]} : vector<1x16x192xf32> to vector<1x16x16xf32>
    %41 = vector.extract_strided_slice %36 {offsets = [0, 0, 128], sizes = [1, 16, 16], strides = [1, 1, 1]} : vector<1x16x192xf32> to vector<1x16x16xf32>
    %42 = arith.truncf %39 : vector<1x16x16xf32> to vector<1x16x16xbf16>
    %43 = arith.truncf %40 : vector<1x16x16xf32> to vector<1x16x16xbf16>
    "tpu.trace_start"() <{level = 10 : i32, message = "wnd,wmd->wnm"}> : () -> ()
    %cst_20 = arith.constant dense<0.000000e+00> : vector<1x16x16xf32>
    %44 = tpu.matmul %42, %43, %cst_20 {dimension_numbers = #tpu.dot_dimension_numbers<[2], [2], [1], [1], [0, 0, 0, 1, 1, 1], [0], [0]>} : vector<1x16x16xbf16>, vector<1x16x16xbf16>, vector<1x16x16xf32> -> vector<1x16x16xf32>
    "tpu.trace_stop"() : () -> ()
    %c0_21 = arith.constant 0 : index
    %c0_22 = arith.constant 0 : index
    %c0_23 = arith.constant 0 : index
    %c0_24 = arith.constant 0 : index
    %45 = vector.load %arg7[%c0_21, %c0_22, %c0_23, %c0_24] : memref<4x1x16x16xf32, #tpu.memory_space<vmem>>, vector<1x1x16x16xf32>
    %46 = vector.shape_cast %45 : vector<1x1x16x16xf32> to vector<1x16x16xf32>
    %47 = arith.addf %44, %46 : vector<1x16x16xf32>
    %cst_25 = arith.constant dense<0xFF800000> : vector<1x16xf32>
    %48 = vector.multi_reduction <maximumf>, %47, %cst_25 [2] : vector<1x16x16xf32> to vector<1x16xf32>
    %49 = vector.shape_cast %48 : vector<1x16xf32> to vector<1x16x1xf32>
    %50 = vector.broadcast %49 : vector<1x16x1xf32> to vector<1x16x16xf32>
    %51 = arith.subf %47, %50 : vector<1x16x16xf32>
    %52 = math.exp %51 : vector<1x16x16xf32>
    %cst_26 = arith.constant dense<0.000000e+00> : vector<1x16xf32>
    %53 = vector.multi_reduction <add>, %52, %cst_26 [2] : vector<1x16x16xf32> to vector<1x16xf32>
    %54 = vector.shape_cast %53 : vector<1x16xf32> to vector<1x16x1xf32>
    %55 = tpu.reciprocal %54 {approx = true} : vector<1x16x1xf32> -> vector<1x16x1xf32>
    %56 = vector.broadcast %55 : vector<1x16x1xf32> to vector<1x16x16xf32>
    %57 = arith.mulf %52, %56 : vector<1x16x16xf32>
    %58 = arith.truncf %57 : vector<1x16x16xf32> to vector<1x16x16xbf16>
    %59 = arith.truncf %41 : vector<1x16x16xf32> to vector<1x16x16xbf16>
    "tpu.trace_start"() <{level = 10 : i32, message = "wnm,wmd->wnd"}> : () -> ()
    %cst_27 = arith.constant dense<0.000000e+00> : vector<1x16x16xf32>
    %60 = tpu.matmul %58, %59, %cst_27 {dimension_numbers = #tpu.dot_dimension_numbers<[2], [1], [1], [2], [0, 0, 0, 1, 1, 2], [0], [0]>} : vector<1x16x16xbf16>, vector<1x16x16xbf16>, vector<1x16x16xf32> -> vector<1x16x16xf32>
    "tpu.trace_stop"() : () -> ()
    %61 = vector.extract_strided_slice %36 {offsets = [0, 0, 16], sizes = [1, 16, 16], strides = [1, 1, 1]} : vector<1x16x192xf32> to vector<1x16x16xf32>
    %cst_28 = arith.constant 2.500000e-01 : f32
    %62 = vector.broadcast %cst_28 : f32 to vector<1x16x16xf32>
    %63 = arith.mulf %61, %62 : vector<1x16x16xf32>
    %64 = vector.extract_strided_slice %36 {offsets = [0, 0, 80], sizes = [1, 16, 16], strides = [1, 1, 1]} : vector<1x16x192xf32> to vector<1x16x16xf32>
    %65 = vector.extract_strided_slice %36 {offsets = [0, 0, 144], sizes = [1, 16, 16], strides = [1, 1, 1]} : vector<1x16x192xf32> to vector<1x16x16xf32>
    %66 = arith.truncf %63 : vector<1x16x16xf32> to vector<1x16x16xbf16>
    %67 = arith.truncf %64 : vector<1x16x16xf32> to vector<1x16x16xbf16>
    "tpu.trace_start"() <{level = 10 : i32, message = "wnd,wmd->wnm"}> : () -> ()
    %cst_29 = arith.constant dense<0.000000e+00> : vector<1x16x16xf32>
    %68 = tpu.matmul %66, %67, %cst_29 {dimension_numbers = #tpu.dot_dimension_numbers<[2], [2], [1], [1], [0, 0, 0, 1, 1, 1], [0], [0]>} : vector<1x16x16xbf16>, vector<1x16x16xbf16>, vector<1x16x16xf32> -> vector<1x16x16xf32>
    "tpu.trace_stop"() : () -> ()
    %c1 = arith.constant 1 : index
    %c0_30 = arith.constant 0 : index
    %c0_31 = arith.constant 0 : index
    %c0_32 = arith.constant 0 : index
    %69 = vector.load %arg7[%c1, %c0_30, %c0_31, %c0_32] : memref<4x1x16x16xf32, #tpu.memory_space<vmem>>, vector<1x1x16x16xf32>
    %70 = vector.shape_cast %69 : vector<1x1x16x16xf32> to vector<1x16x16xf32>
    %71 = arith.addf %68, %70 : vector<1x16x16xf32>
    %cst_33 = arith.constant dense<0xFF800000> : vector<1x16xf32>
    %72 = vector.multi_reduction <maximumf>, %71, %cst_33 [2] : vector<1x16x16xf32> to vector<1x16xf32>
    %73 = vector.shape_cast %72 : vector<1x16xf32> to vector<1x16x1xf32>
    %74 = vector.broadcast %73 : vector<1x16x1xf32> to vector<1x16x16xf32>
    %75 = arith.subf %71, %74 : vector<1x16x16xf32>
    %76 = math.exp %75 : vector<1x16x16xf32>
    %cst_34 = arith.constant dense<0.000000e+00> : vector<1x16xf32>
    %77 = vector.multi_reduction <add>, %76, %cst_34 [2] : vector<1x16x16xf32> to vector<1x16xf32>
    %78 = vector.shape_cast %77 : vector<1x16xf32> to vector<1x16x1xf32>
    %79 = tpu.reciprocal %78 {approx = true} : vector<1x16x1xf32> -> vector<1x16x1xf32>
    %80 = vector.broadcast %79 : vector<1x16x1xf32> to vector<1x16x16xf32>
    %81 = arith.mulf %76, %80 : vector<1x16x16xf32>
    %82 = arith.truncf %81 : vector<1x16x16xf32> to vector<1x16x16xbf16>
    %83 = arith.truncf %65 : vector<1x16x16xf32> to vector<1x16x16xbf16>
    "tpu.trace_start"() <{level = 10 : i32, message = "wnm,wmd->wnd"}> : () -> ()
    %cst_35 = arith.constant dense<0.000000e+00> : vector<1x16x16xf32>
    %84 = tpu.matmul %82, %83, %cst_35 {dimension_numbers = #tpu.dot_dimension_numbers<[2], [1], [1], [2], [0, 0, 0, 1, 1, 2], [0], [0]>} : vector<1x16x16xbf16>, vector<1x16x16xbf16>, vector<1x16x16xf32> -> vector<1x16x16xf32>
    "tpu.trace_stop"() : () -> ()
    %85 = vector.extract_strided_slice %36 {offsets = [0, 0, 32], sizes = [1, 16, 16], strides = [1, 1, 1]} : vector<1x16x192xf32> to vector<1x16x16xf32>
    %cst_36 = arith.constant 2.500000e-01 : f32
    %86 = vector.broadcast %cst_36 : f32 to vector<1x16x16xf32>
    %87 = arith.mulf %85, %86 : vector<1x16x16xf32>
    %88 = vector.extract_strided_slice %36 {offsets = [0, 0, 96], sizes = [1, 16, 16], strides = [1, 1, 1]} : vector<1x16x192xf32> to vector<1x16x16xf32>
    %89 = vector.extract_strided_slice %36 {offsets = [0, 0, 160], sizes = [1, 16, 16], strides = [1, 1, 1]} : vector<1x16x192xf32> to vector<1x16x16xf32>
    %90 = arith.truncf %87 : vector<1x16x16xf32> to vector<1x16x16xbf16>
    %91 = arith.truncf %88 : vector<1x16x16xf32> to vector<1x16x16xbf16>
    "tpu.trace_start"() <{level = 10 : i32, message = "wnd,wmd->wnm"}> : () -> ()
    %cst_37 = arith.constant dense<0.000000e+00> : vector<1x16x16xf32>
    %92 = tpu.matmul %90, %91, %cst_37 {dimension_numbers = #tpu.dot_dimension_numbers<[2], [2], [1], [1], [0, 0, 0, 1, 1, 1], [0], [0]>} : vector<1x16x16xbf16>, vector<1x16x16xbf16>, vector<1x16x16xf32> -> vector<1x16x16xf32>
    "tpu.trace_stop"() : () -> ()
    %c2 = arith.constant 2 : index
    %c0_38 = arith.constant 0 : index
    %c0_39 = arith.constant 0 : index
    %c0_40 = arith.constant 0 : index
    %93 = vector.load %arg7[%c2, %c0_38, %c0_39, %c0_40] : memref<4x1x16x16xf32, #tpu.memory_space<vmem>>, vector<1x1x16x16xf32>
    %94 = vector.shape_cast %93 : vector<1x1x16x16xf32> to vector<1x16x16xf32>
    %95 = arith.addf %92, %94 : vector<1x16x16xf32>
    %cst_41 = arith.constant dense<0xFF800000> : vector<1x16xf32>
    %96 = vector.multi_reduction <maximumf>, %95, %cst_41 [2] : vector<1x16x16xf32> to vector<1x16xf32>
    %97 = vector.shape_cast %96 : vector<1x16xf32> to vector<1x16x1xf32>
    %98 = vector.broadcast %97 : vector<1x16x1xf32> to vector<1x16x16xf32>
    %99 = arith.subf %95, %98 : vector<1x16x16xf32>
    %100 = math.exp %99 : vector<1x16x16xf32>
    %cst_42 = arith.constant dense<0.000000e+00> : vector<1x16xf32>
    %101 = vector.multi_reduction <add>, %100, %cst_42 [2] : vector<1x16x16xf32> to vector<1x16xf32>
    %102 = vector.shape_cast %101 : vector<1x16xf32> to vector<1x16x1xf32>
    %103 = tpu.reciprocal %102 {approx = true} : vector<1x16x1xf32> -> vector<1x16x1xf32>
    %104 = vector.broadcast %103 : vector<1x16x1xf32> to vector<1x16x16xf32>
    %105 = arith.mulf %100, %104 : vector<1x16x16xf32>
    %106 = arith.truncf %105 : vector<1x16x16xf32> to vector<1x16x16xbf16>
    %107 = arith.truncf %89 : vector<1x16x16xf32> to vector<1x16x16xbf16>
    "tpu.trace_start"() <{level = 10 : i32, message = "wnm,wmd->wnd"}> : () -> ()
    %cst_43 = arith.constant dense<0.000000e+00> : vector<1x16x16xf32>
    %108 = tpu.matmul %106, %107, %cst_43 {dimension_numbers = #tpu.dot_dimension_numbers<[2], [1], [1], [2], [0, 0, 0, 1, 1, 2], [0], [0]>} : vector<1x16x16xbf16>, vector<1x16x16xbf16>, vector<1x16x16xf32> -> vector<1x16x16xf32>
    "tpu.trace_stop"() : () -> ()
    %109 = vector.extract_strided_slice %36 {offsets = [0, 0, 48], sizes = [1, 16, 16], strides = [1, 1, 1]} : vector<1x16x192xf32> to vector<1x16x16xf32>
    %cst_44 = arith.constant 2.500000e-01 : f32
    %110 = vector.broadcast %cst_44 : f32 to vector<1x16x16xf32>
    %111 = arith.mulf %109, %110 : vector<1x16x16xf32>
    %112 = vector.extract_strided_slice %36 {offsets = [0, 0, 112], sizes = [1, 16, 16], strides = [1, 1, 1]} : vector<1x16x192xf32> to vector<1x16x16xf32>
    %113 = vector.extract_strided_slice %36 {offsets = [0, 0, 176], sizes = [1, 16, 16], strides = [1, 1, 1]} : vector<1x16x192xf32> to vector<1x16x16xf32>
    %114 = arith.truncf %111 : vector<1x16x16xf32> to vector<1x16x16xbf16>
    %115 = arith.truncf %112 : vector<1x16x16xf32> to vector<1x16x16xbf16>
    "tpu.trace_start"() <{level = 10 : i32, message = "wnd,wmd->wnm"}> : () -> ()
    %cst_45 = arith.constant dense<0.000000e+00> : vector<1x16x16xf32>
    %116 = tpu.matmul %114, %115, %cst_45 {dimension_numbers = #tpu.dot_dimension_numbers<[2], [2], [1], [1], [0, 0, 0, 1, 1, 1], [0], [0]>} : vector<1x16x16xbf16>, vector<1x16x16xbf16>, vector<1x16x16xf32> -> vector<1x16x16xf32>
    "tpu.trace_stop"() : () -> ()
    %c3 = arith.constant 3 : index
    %c0_46 = arith.constant 0 : index
    %c0_47 = arith.constant 0 : index
    %c0_48 = arith.constant 0 : index
    %117 = vector.load %arg7[%c3, %c0_46, %c0_47, %c0_48] : memref<4x1x16x16xf32, #tpu.memory_space<vmem>>, vector<1x1x16x16xf32>
    %118 = vector.shape_cast %117 : vector<1x1x16x16xf32> to vector<1x16x16xf32>
    %119 = arith.addf %116, %118 : vector<1x16x16xf32>
    %cst_49 = arith.constant dense<0xFF800000> : vector<1x16xf32>
    %120 = vector.multi_reduction <maximumf>, %119, %cst_49 [2] : vector<1x16x16xf32> to vector<1x16xf32>
    %121 = vector.shape_cast %120 : vector<1x16xf32> to vector<1x16x1xf32>
    %122 = vector.broadcast %121 : vector<1x16x1xf32> to vector<1x16x16xf32>
    %123 = arith.subf %119, %122 : vector<1x16x16xf32>
    %124 = math.exp %123 : vector<1x16x16xf32>
    %cst_50 = arith.constant dense<0.000000e+00> : vector<1x16xf32>
    %125 = vector.multi_reduction <add>, %124, %cst_50 [2] : vector<1x16x16xf32> to vector<1x16xf32>
    %126 = vector.shape_cast %125 : vector<1x16xf32> to vector<1x16x1xf32>
    %127 = tpu.reciprocal %126 {approx = true} : vector<1x16x1xf32> -> vector<1x16x1xf32>
    %128 = vector.broadcast %127 : vector<1x16x1xf32> to vector<1x16x16xf32>
    %129 = arith.mulf %124, %128 : vector<1x16x16xf32>
    %130 = arith.truncf %129 : vector<1x16x16xf32> to vector<1x16x16xbf16>
    %131 = arith.truncf %113 : vector<1x16x16xf32> to vector<1x16x16xbf16>
    "tpu.trace_start"() <{level = 10 : i32, message = "wnm,wmd->wnd"}> : () -> ()
    %cst_51 = arith.constant dense<0.000000e+00> : vector<1x16x16xf32>
    %132 = tpu.matmul %130, %131, %cst_51 {dimension_numbers = #tpu.dot_dimension_numbers<[2], [1], [1], [2], [0, 0, 0, 1, 1, 2], [0], [0]>} : vector<1x16x16xbf16>, vector<1x16x16xbf16>, vector<1x16x16xf32> -> vector<1x16x16xf32>
    "tpu.trace_stop"() : () -> ()
    %133 = tpu.concatenate %60, %84, %108, %132 in 2 : vector<1x16x16xf32>, vector<1x16x16xf32>, vector<1x16x16xf32>, vector<1x16x16xf32> -> vector<1x16x64xf32>
    %134 = vector.shape_cast %133 : vector<1x16x64xf32> to vector<16x64xf32>
    %135 = arith.truncf %134 : vector<16x64xf32> to vector<16x64xbf16>
    %c0_52 = arith.constant 0 : index
    %c0_53 = arith.constant 0 : index
    %136 = vector.load %arg8[%c0_52, %c0_53] : memref<64x64xbf16, #tpu.memory_space<vmem>>, vector<64x64xbf16>
    %cst_54 = arith.constant dense<0.000000e+00> : vector<16x64xf32>
    %137 = tpu.matmul %135, %136, %cst_54 {dimension_numbers = #tpu.dot_dimension_numbers<[1], [0], [0], [1], [0, 0, 1, 1], [], []>} : vector<16x64xbf16>, vector<64x64xbf16>, vector<16x64xf32> -> vector<16x64xf32>
    %c0_55 = arith.constant 0 : index
    %c0_56 = arith.constant 0 : index
    %138 = vector.load %arg9[%c0_55, %c0_56] : memref<1x64xf32, #tpu.memory_space<vmem>>, vector<1x64xf32>
    %139 = vector.broadcast %138 : vector<1x64xf32> to vector<16x64xf32>
    %140 = arith.addf %137, %139 : vector<16x64xf32>
    %141 = vector.shape_cast %140 : vector<16x64xf32> to vector<1x16x64xf32>
    %c0_57 = arith.constant 0 : index
    %c0_58 = arith.constant 0 : index
    %c0_59 = arith.constant 0 : index
    %c0_60 = arith.constant 0 : index
    %142 = vector.load %arg10[%c0_57, %c0_58, %c0_59, %c0_60] : memref<1x1x16x64xf32, #tpu.memory_space<vmem>>, vector<1x1x16x64xf32>
    %143 = vector.shape_cast %142 : vector<1x1x16x64xf32> to vector<1x16x64xf32>
    %144 = vector.shape_cast %141 : vector<1x16x64xf32> to vector<1x1x16x64xf32>
    tpu.vector_store %arg10[%c0_57, %c0_58, %c0_59, %c0_60], %144 {strides = array<i32>} : memref<1x1x16x64xf32, #tpu.memory_space<vmem>>, vector<1x1x16x64xf32>,
    return
  }
  func.func @transform_0(%arg0: i32) -> (i32, i32, i32, i32) {
    %c0_i32 = arith.constant 0 : i32
    %c0_i32_0 = arith.constant 0 : i32
    %c0_i32_1 = arith.constant 0 : i32
    %c0_i32_2 = arith.constant 0 : i32
    return %arg0, %c0_i32, %c0_i32_0, %c0_i32_1 : i32, i32, i32, i32
  }
  func.func @transform_1(%arg0: i32) -> (i32, i32, i32) {
    %c0_i32 = arith.constant 0 : i32
    %c0_i32_0 = arith.constant 0 : i32
    %c0_i32_1 = arith.constant 0 : i32
    %c0_i32_2 = arith.constant 0 : i32
    return %c0_i32, %c0_i32_0, %c0_i32_1 : i32, i32, i32
  }
  func.func @transform_2(%arg0: i32) -> (i32, i32) {
    %c0_i32 = arith.constant 0 : i32
    %c0_i32_0 = arith.constant 0 : i32
    %c0_i32_1 = arith.constant 0 : i32
    return %c0_i32, %c0_i32_0 : i32, i32
  }
  func.func @transform_3(%arg0: i32) -> (i32, i32) {
    %c0_i32 = arith.constant 0 : i32
    %c0_i32_0 = arith.constant 0 : i32
    %c0_i32_1 = arith.constant 0 : i32
    return %c0_i32, %c0_i32_0 : i32, i32
  }
  func.func @transform_4(%arg0: i32) -> (i32, i32) {
    %c0_i32 = arith.constant 0 : i32
    %c0_i32_0 = arith.constant 0 : i32
    %c0_i32_1 = arith.constant 0 : i32
    return %c0_i32, %c0_i32_0 : i32, i32
  }
  func.func @transform_5(%arg0: i32) -> (i32, i32) {
    %c0_i32 = arith.constant 0 : i32
    %c0_i32_0 = arith.constant 0 : i32
    %c0_i32_1 = arith.constant 0 : i32
    return %c0_i32, %c0_i32_0 : i32, i32
  }
  func.func @transform_6(%arg0: i32) -> (i32, i32, i32, i32) {
    %c0_i32 = arith.constant 0 : i32
    %c0_i32_0 = arith.constant 0 : i32
    %c0_i32_1 = arith.constant 0 : i32
    %c0_i32_2 = arith.constant 0 : i32
    %c0_i32_3 = arith.constant 0 : i32
    return %c0_i32, %c0_i32_0, %c0_i32_1, %c0_i32_2 : i32, i32, i32, i32
  }
  func.func @transform_7(%arg0: i32) -> (i32, i32) {
    %c0_i32 = arith.constant 0 : i32
    %c0_i32_0 = arith.constant 0 : i32
    %c0_i32_1 = arith.constant 0 : i32
    return %c0_i32, %c0_i32_0 : i32, i32
  }
  func.func @transform_8(%arg0: i32) -> (i32, i32) {
    %c0_i32 = arith.constant 0 : i32
    %c0_i32_0 = arith.constant 0 : i32
    %c0_i32_1 = arith.constant 0 : i32
    return %c0_i32, %c0_i32_0 : i32, i32
  }
  func.func @transform_9(%arg0: i32) -> (i32, i32, i32, i32) {
    %c0_i32 = arith.constant 0 : i32
    %c0_i32_0 = arith.constant 0 : i32
    %c0_i32_1 = arith.constant 0 : i32
    %c0_i32_2 = arith.constant 0 : i32
    return %arg0, %c0_i32, %c0_i32_0, %c0_i32_1 : i32, i32, i32, i32
  }
}

module attributes {stable_mosaic.version = 11 : i64} {
  func.func @_mlp_block_kernel(%arg0: i32, %arg1: memref<6x64xf32, #tpu.memory_space<vmem>>, %arg2: memref<6x64xf32, #tpu.memory_space<vmem>>, %arg3: memref<1x64xf32, #tpu.memory_space<vmem>>, %arg4: memref<1x64xf32, #tpu.memory_space<vmem>>, %arg5: memref<64x128xbf16, #tpu.memory_space<vmem>>, %arg6: memref<1x128xf32, #tpu.memory_space<vmem>>, %arg7: memref<128x64xbf16, #tpu.memory_space<vmem>>, %arg8: memref<1x64xf32, #tpu.memory_space<vmem>>, %arg9: memref<6x64xf32, #tpu.memory_space<vmem>>) attributes {dimension_semantics = [#tpu.dimension_semantics<arbitrary>], iteration_bounds = array<i64: 1>, scalar_prefetch = 0 : i64, scratch_operands = 0 : i64, tpu.core_type = #tpu.core_type<tc>, window_params = [{pipeline_mode = #tpu.pipeline_mode<synchronous>, transform_indices = @transform_0, window_bounds = array<i64: 6, 64>}, {pipeline_mode = #tpu.pipeline_mode<synchronous>, transform_indices = @transform_1, window_bounds = array<i64: 6, 64>}, {pipeline_mode = #tpu.pipeline_mode<synchronous>, transform_indices = @transform_2, window_bounds = array<i64: 1, 64>}, {pipeline_mode = #tpu.pipeline_mode<synchronous>, transform_indices = @transform_3, window_bounds = array<i64: 1, 64>}, {pipeline_mode = #tpu.pipeline_mode<synchronous>, transform_indices = @transform_4, window_bounds = array<i64: 64, 128>}, {pipeline_mode = #tpu.pipeline_mode<synchronous>, transform_indices = @transform_5, window_bounds = array<i64: 1, 128>}, {pipeline_mode = #tpu.pipeline_mode<synchronous>, transform_indices = @transform_6, window_bounds = array<i64: 128, 64>}, {pipeline_mode = #tpu.pipeline_mode<synchronous>, transform_indices = @transform_7, window_bounds = array<i64: 1, 64>}, {pipeline_mode = #tpu.pipeline_mode<synchronous>, transform_indices = @transform_8, window_bounds = array<i64: 6, 64>}]} {
    %c0 = arith.constant 0 : index
    %c0_0 = arith.constant 0 : index
    %0 = vector.load %arg1[%c0, %c0_0] : memref<6x64xf32, #tpu.memory_space<vmem>>, vector<6x64xf32>
    %c0_1 = arith.constant 0 : index
    %c0_2 = arith.constant 0 : index
    %1 = vector.load %arg2[%c0_1, %c0_2] : memref<6x64xf32, #tpu.memory_space<vmem>>, vector<6x64xf32>
    %2 = arith.addf %0, %1 : vector<6x64xf32>
    %c0_3 = arith.constant 0 : index
    %c0_4 = arith.constant 0 : index
    %3 = vector.load %arg3[%c0_3, %c0_4] : memref<1x64xf32, #tpu.memory_space<vmem>>, vector<1x64xf32>
    %c0_5 = arith.constant 0 : index
    %c0_6 = arith.constant 0 : index
    %4 = vector.load %arg4[%c0_5, %c0_6] : memref<1x64xf32, #tpu.memory_space<vmem>>, vector<1x64xf32>
    %cst = arith.constant dense<0.000000e+00> : vector<6xf32>
    %5 = vector.multi_reduction <add>, %2, %cst [1] : vector<6x64xf32> to vector<6xf32>
    %6 = vector.shape_cast %5 : vector<6xf32> to vector<6x1xf32>
    %cst_7 = arith.constant 6.400000e+01 : f32
    %7 = vector.broadcast %cst_7 : f32 to vector<6x1xf32>
    %8 = arith.divf %6, %7 : vector<6x1xf32>
    %9 = vector.broadcast %8 : vector<6x1xf32> to vector<6x64xf32>
    %10 = arith.subf %2, %9 : vector<6x64xf32>
    %11 = arith.mulf %10, %10 : vector<6x64xf32>
    %cst_8 = arith.constant dense<0.000000e+00> : vector<6xf32>
    %12 = vector.multi_reduction <add>, %11, %cst_8 [1] : vector<6x64xf32> to vector<6xf32>
    %13 = vector.shape_cast %12 : vector<6xf32> to vector<6x1xf32>
    %cst_9 = arith.constant 6.400000e+01 : f32
    %14 = vector.broadcast %cst_9 : f32 to vector<6x1xf32>
    %15 = arith.divf %13, %14 : vector<6x1xf32>
    %cst_10 = arith.constant 9.99999974E-6 : f32
    %16 = vector.broadcast %cst_10 : f32 to vector<6x1xf32>
    %17 = arith.addf %15, %16 : vector<6x1xf32>
    %18 = math.rsqrt %17 : vector<6x1xf32>
    %19 = vector.broadcast %18 : vector<6x1xf32> to vector<6x64xf32>
    %20 = arith.mulf %10, %19 : vector<6x64xf32>
    %21 = vector.broadcast %3 : vector<1x64xf32> to vector<6x64xf32>
    %22 = arith.mulf %20, %21 : vector<6x64xf32>
    %23 = vector.broadcast %4 : vector<1x64xf32> to vector<6x64xf32>
    %24 = arith.addf %22, %23 : vector<6x64xf32>
    %25 = arith.truncf %24 : vector<6x64xf32> to vector<6x64xbf16>
    %c0_11 = arith.constant 0 : index
    %c0_12 = arith.constant 0 : index
    %26 = vector.load %arg5[%c0_11, %c0_12] : memref<64x128xbf16, #tpu.memory_space<vmem>>, vector<64x128xbf16>
    %cst_13 = arith.constant dense<0.000000e+00> : vector<6x128xf32>
    %27 = tpu.matmul %25, %26, %cst_13 {dimension_numbers = #tpu.dot_dimension_numbers<[1], [0], [0], [1], [0, 0, 1, 1], [], []>} : vector<6x64xbf16>, vector<64x128xbf16>, vector<6x128xf32> -> vector<6x128xf32>
    %c0_14 = arith.constant 0 : index
    %c0_15 = arith.constant 0 : index
    %28 = vector.load %arg6[%c0_14, %c0_15] : memref<1x128xf32, #tpu.memory_space<vmem>>, vector<1x128xf32>
    %29 = vector.broadcast %28 : vector<1x128xf32> to vector<6x128xf32>
    %30 = arith.addf %27, %29 : vector<6x128xf32>
    %cst_16 = arith.constant 5.000000e-01 : f32
    %31 = vector.broadcast %cst_16 : f32 to vector<6x128xf32>
    %32 = arith.mulf %31, %30 : vector<6x128xf32>
    %cst_17 = arith.constant 0.707106769 : f32
    %33 = vector.broadcast %cst_17 : f32 to vector<6x128xf32>
    %34 = arith.mulf %30, %33 : vector<6x128xf32>
    %cst_18 = arith.constant 0.000000e+00 : f32
    %35 = vector.broadcast %cst_18 : f32 to vector<6x128xf32>
    %36 = arith.cmpf oge, %34, %35 : vector<6x128xf32>
    %cst_19 = arith.constant 1.000000e+00 : f32
    %cst_20 = arith.constant -1.000000e+00 : f32
    %37 = vector.broadcast %cst_19 : f32 to vector<6x128xf32>
    %38 = vector.broadcast %cst_20 : f32 to vector<6x128xf32>
    %39 = arith.select %36, %37, %38 : vector<6x128xi1>, vector<6x128xf32>
    %40 = math.absf %34 : vector<6x128xf32>
    %cst_21 = arith.constant 0.327591091 : f32
    %41 = vector.broadcast %cst_21 : f32 to vector<6x128xf32>
    %42 = arith.mulf %41, %40 : vector<6x128xf32>
    %cst_22 = arith.constant 1.000000e+00 : f32
    %43 = vector.broadcast %cst_22 : f32 to vector<6x128xf32>
    %44 = arith.addf %43, %42 : vector<6x128xf32>
    %cst_23 = arith.constant 1.000000e+00 : f32
    %45 = vector.broadcast %cst_23 : f32 to vector<6x128xf32>
    %46 = arith.divf %45, %44 : vector<6x128xf32>
    %cst_24 = arith.constant 1.06140542 : f32
    %47 = vector.broadcast %cst_24 : f32 to vector<6x128xf32>
    %48 = arith.mulf %47, %46 : vector<6x128xf32>
    %cst_25 = arith.constant -1.45315206 : f32
    %49 = vector.broadcast %cst_25 : f32 to vector<6x128xf32>
    %50 = arith.addf %48, %49 : vector<6x128xf32>
    %51 = arith.mulf %50, %46 : vector<6x128xf32>
    %cst_26 = arith.constant 1.42141378 : f32
    %52 = vector.broadcast %cst_26 : f32 to vector<6x128xf32>
    %53 = arith.addf %51, %52 : vector<6x128xf32>
    %54 = arith.mulf %53, %46 : vector<6x128xf32>
    %cst_27 = arith.constant -0.284496725 : f32
    %55 = vector.broadcast %cst_27 : f32 to vector<6x128xf32>
    %56 = arith.addf %54, %55 : vector<6x128xf32>
    %57 = arith.mulf %56, %46 : vector<6x128xf32>
    %cst_28 = arith.constant 0.254829586 : f32
    %58 = vector.broadcast %cst_28 : f32 to vector<6x128xf32>
    %59 = arith.addf %57, %58 : vector<6x128xf32>
    %60 = arith.mulf %59, %46 : vector<6x128xf32>
    %cst_29 = arith.constant 0.000000e+00 : f32
    %61 = vector.broadcast %cst_29 : f32 to vector<6x128xf32>
    %62 = arith.subf %61, %40 : vector<6x128xf32>
    %63 = arith.mulf %62, %40 : vector<6x128xf32>
    %64 = math.exp %63 : vector<6x128xf32>
    %65 = arith.mulf %60, %64 : vector<6x128xf32>
    %cst_30 = arith.constant 1.000000e+00 : f32
    %66 = vector.broadcast %cst_30 : f32 to vector<6x128xf32>
    %67 = arith.subf %66, %65 : vector<6x128xf32>
    %68 = arith.mulf %39, %67 : vector<6x128xf32>
    %cst_31 = arith.constant 1.000000e+00 : f32
    %69 = vector.broadcast %cst_31 : f32 to vector<6x128xf32>
    %70 = arith.addf %69, %68 : vector<6x128xf32>
    %71 = arith.mulf %32, %70 : vector<6x128xf32>
    %72 = arith.truncf %71 : vector<6x128xf32> to vector<6x128xbf16>
    %c0_32 = arith.constant 0 : index
    %c0_33 = arith.constant 0 : index
    %73 = vector.load %arg7[%c0_32, %c0_33] : memref<128x64xbf16, #tpu.memory_space<vmem>>, vector<128x64xbf16>
    %cst_34 = arith.constant dense<0.000000e+00> : vector<6x64xf32>
    %74 = tpu.matmul %72, %73, %cst_34 {dimension_numbers = #tpu.dot_dimension_numbers<[1], [0], [0], [1], [0, 0, 1, 1], [], []>} : vector<6x128xbf16>, vector<128x64xbf16>, vector<6x64xf32> -> vector<6x64xf32>
    %c0_35 = arith.constant 0 : index
    %c0_36 = arith.constant 0 : index
    %75 = vector.load %arg8[%c0_35, %c0_36] : memref<1x64xf32, #tpu.memory_space<vmem>>, vector<1x64xf32>
    %76 = vector.broadcast %75 : vector<1x64xf32> to vector<6x64xf32>
    %77 = arith.addf %74, %76 : vector<6x64xf32>
    %78 = arith.addf %2, %77 : vector<6x64xf32>
    %c0_37 = arith.constant 0 : index
    %c0_38 = arith.constant 0 : index
    %79 = vector.load %arg9[%c0_37, %c0_38] : memref<6x64xf32, #tpu.memory_space<vmem>>, vector<6x64xf32>
    tpu.vector_store %arg9[%c0_37, %c0_38], %78 {strides = array<i32>} : memref<6x64xf32, #tpu.memory_space<vmem>>, vector<6x64xf32>,
    return
  }
  func.func @transform_0(%arg0: i32) -> (i32, i32) {
    %c0_i32 = arith.constant 0 : i32
    %c0_i32_0 = arith.constant 0 : i32
    %c0_i32_1 = arith.constant 0 : i32
    return %c0_i32, %c0_i32_0 : i32, i32
  }
  func.func @transform_1(%arg0: i32) -> (i32, i32) {
    %c0_i32 = arith.constant 0 : i32
    %c0_i32_0 = arith.constant 0 : i32
    %c0_i32_1 = arith.constant 0 : i32
    return %c0_i32, %c0_i32_0 : i32, i32
  }
  func.func @transform_2(%arg0: i32) -> (i32, i32) {
    %c0_i32 = arith.constant 0 : i32
    %c0_i32_0 = arith.constant 0 : i32
    %c0_i32_1 = arith.constant 0 : i32
    return %c0_i32, %c0_i32_0 : i32, i32
  }
  func.func @transform_3(%arg0: i32) -> (i32, i32) {
    %c0_i32 = arith.constant 0 : i32
    %c0_i32_0 = arith.constant 0 : i32
    %c0_i32_1 = arith.constant 0 : i32
    return %c0_i32, %c0_i32_0 : i32, i32
  }
  func.func @transform_4(%arg0: i32) -> (i32, i32) {
    %c0_i32 = arith.constant 0 : i32
    %c0_i32_0 = arith.constant 0 : i32
    %c0_i32_1 = arith.constant 0 : i32
    return %c0_i32, %c0_i32_0 : i32, i32
  }
  func.func @transform_5(%arg0: i32) -> (i32, i32) {
    %c0_i32 = arith.constant 0 : i32
    %c0_i32_0 = arith.constant 0 : i32
    %c0_i32_1 = arith.constant 0 : i32
    return %c0_i32, %c0_i32_0 : i32, i32
  }
  func.func @transform_6(%arg0: i32) -> (i32, i32) {
    %c0_i32 = arith.constant 0 : i32
    %c0_i32_0 = arith.constant 0 : i32
    %c0_i32_1 = arith.constant 0 : i32
    return %c0_i32, %c0_i32_0 : i32, i32
  }
  func.func @transform_7(%arg0: i32) -> (i32, i32) {
    %c0_i32 = arith.constant 0 : i32
    %c0_i32_0 = arith.constant 0 : i32
    %c0_i32_1 = arith.constant 0 : i32
    return %c0_i32, %c0_i32_0 : i32, i32
  }
  func.func @transform_8(%arg0: i32) -> (i32, i32) {
    %c0_i32 = arith.constant 0 : i32
    %c0_i32_0 = arith.constant 0 : i32
    %c0_i32_1 = arith.constant 0 : i32
    return %c0_i32, %c0_i32_0 : i32, i32
  }
}

module attributes {stable_mosaic.version = 11 : i64} {
  func.func @_head_kernel(%arg0: i32, %arg1: memref<2x3x64xf32, #tpu.memory_space<vmem>>, %arg2: memref<1x64xf32, #tpu.memory_space<vmem>>, %arg3: memref<1x64xf32, #tpu.memory_space<vmem>>, %arg4: memref<64x5xbf16, #tpu.memory_space<vmem>>, %arg5: memref<1x5xf32, #tpu.memory_space<vmem>>, %arg6: memref<2x5xf32, #tpu.memory_space<vmem>>) attributes {dimension_semantics = [#tpu.dimension_semantics<arbitrary>], iteration_bounds = array<i64: 1>, scalar_prefetch = 0 : i64, scratch_operands = 0 : i64, tpu.core_type = #tpu.core_type<tc>, window_params = [{pipeline_mode = #tpu.pipeline_mode<synchronous>, transform_indices = @transform_0, window_bounds = array<i64: 2, 3, 64>}, {pipeline_mode = #tpu.pipeline_mode<synchronous>, transform_indices = @transform_1, window_bounds = array<i64: 1, 64>}, {pipeline_mode = #tpu.pipeline_mode<synchronous>, transform_indices = @transform_2, window_bounds = array<i64: 1, 64>}, {pipeline_mode = #tpu.pipeline_mode<synchronous>, transform_indices = @transform_3, window_bounds = array<i64: 64, 5>}, {pipeline_mode = #tpu.pipeline_mode<synchronous>, transform_indices = @transform_4, window_bounds = array<i64: 1, 5>}, {pipeline_mode = #tpu.pipeline_mode<synchronous>, transform_indices = @transform_5, window_bounds = array<i64: 2, 5>}]} {
    %c0 = arith.constant 0 : index
    %c0_0 = arith.constant 0 : index
    %c0_1 = arith.constant 0 : index
    %0 = vector.load %arg1[%c0, %c0_0, %c0_1] : memref<2x3x64xf32, #tpu.memory_space<vmem>>, vector<2x3x64xf32>
    %c0_2 = arith.constant 0 : index
    %c0_3 = arith.constant 0 : index
    %1 = vector.load %arg2[%c0_2, %c0_3] : memref<1x64xf32, #tpu.memory_space<vmem>>, vector<1x64xf32>
    %c0_4 = arith.constant 0 : index
    %c0_5 = arith.constant 0 : index
    %2 = vector.load %arg3[%c0_4, %c0_5] : memref<1x64xf32, #tpu.memory_space<vmem>>, vector<1x64xf32>
    %cst = arith.constant dense<0.000000e+00> : vector<2x3xf32>
    %3 = vector.multi_reduction <add>, %0, %cst [2] : vector<2x3x64xf32> to vector<2x3xf32>
    %4 = vector.shape_cast %3 : vector<2x3xf32> to vector<2x3x1xf32>
    %cst_6 = arith.constant 6.400000e+01 : f32
    %5 = vector.broadcast %cst_6 : f32 to vector<2x3x1xf32>
    %6 = arith.divf %4, %5 : vector<2x3x1xf32>
    %7 = vector.broadcast %6 : vector<2x3x1xf32> to vector<2x3x64xf32>
    %8 = arith.subf %0, %7 : vector<2x3x64xf32>
    %9 = arith.mulf %8, %8 : vector<2x3x64xf32>
    %cst_7 = arith.constant dense<0.000000e+00> : vector<2x3xf32>
    %10 = vector.multi_reduction <add>, %9, %cst_7 [2] : vector<2x3x64xf32> to vector<2x3xf32>
    %11 = vector.shape_cast %10 : vector<2x3xf32> to vector<2x3x1xf32>
    %cst_8 = arith.constant 6.400000e+01 : f32
    %12 = vector.broadcast %cst_8 : f32 to vector<2x3x1xf32>
    %13 = arith.divf %11, %12 : vector<2x3x1xf32>
    %cst_9 = arith.constant 9.99999974E-6 : f32
    %14 = vector.broadcast %cst_9 : f32 to vector<2x3x1xf32>
    %15 = arith.addf %13, %14 : vector<2x3x1xf32>
    %16 = math.rsqrt %15 : vector<2x3x1xf32>
    %17 = vector.broadcast %16 : vector<2x3x1xf32> to vector<2x3x64xf32>
    %18 = arith.mulf %8, %17 : vector<2x3x64xf32>
    %19 = vector.shape_cast %1 : vector<1x64xf32> to vector<1x1x64xf32>
    %20 = vector.broadcast %19 : vector<1x1x64xf32> to vector<2x3x64xf32>
    %21 = arith.mulf %18, %20 : vector<2x3x64xf32>
    %22 = vector.shape_cast %2 : vector<1x64xf32> to vector<1x1x64xf32>
    %23 = vector.broadcast %22 : vector<1x1x64xf32> to vector<2x3x64xf32>
    %24 = arith.addf %21, %23 : vector<2x3x64xf32>
    %25 = vector.extract_strided_slice %24 {offsets = [0, 0, 0], sizes = [1, 3, 64], strides = [1, 1, 1]} : vector<2x3x64xf32> to vector<1x3x64xf32>
    %26 = vector.shape_cast %25 : vector<1x3x64xf32> to vector<3x64xf32>
    %cst_10 = arith.constant dense<0.000000e+00> : vector<64xf32>
    %27 = vector.multi_reduction <add>, %26, %cst_10 [0] : vector<3x64xf32> to vector<64xf32>
    %28 = vector.shape_cast %27 : vector<64xf32> to vector<1x64xf32>
    %cst_11 = arith.constant 3.000000e+00 : f32
    %29 = vector.broadcast %cst_11 : f32 to vector<1x64xf32>
    %30 = arith.divf %28, %29 : vector<1x64xf32>
    %31 = vector.extract_strided_slice %24 {offsets = [1, 0, 0], sizes = [1, 3, 64], strides = [1, 1, 1]} : vector<2x3x64xf32> to vector<1x3x64xf32>
    %32 = vector.shape_cast %31 : vector<1x3x64xf32> to vector<3x64xf32>
    %cst_12 = arith.constant dense<0.000000e+00> : vector<64xf32>
    %33 = vector.multi_reduction <add>, %32, %cst_12 [0] : vector<3x64xf32> to vector<64xf32>
    %34 = vector.shape_cast %33 : vector<64xf32> to vector<1x64xf32>
    %cst_13 = arith.constant 3.000000e+00 : f32
    %35 = vector.broadcast %cst_13 : f32 to vector<1x64xf32>
    %36 = arith.divf %34, %35 : vector<1x64xf32>
    %37 = tpu.concatenate %30, %36 in 0 : vector<1x64xf32>, vector<1x64xf32> -> vector<2x64xf32>
    %38 = arith.truncf %37 : vector<2x64xf32> to vector<2x64xbf16>
    %c0_14 = arith.constant 0 : index
    %c0_15 = arith.constant 0 : index
    %39 = vector.load %arg4[%c0_14, %c0_15] : memref<64x5xbf16, #tpu.memory_space<vmem>>, vector<64x5xbf16>
    %cst_16 = arith.constant dense<0.000000e+00> : vector<2x5xf32>
    %40 = tpu.matmul %38, %39, %cst_16 {dimension_numbers = #tpu.dot_dimension_numbers<[1], [0], [0], [1], [0, 0, 1, 1], [], []>} : vector<2x64xbf16>, vector<64x5xbf16>, vector<2x5xf32> -> vector<2x5xf32>
    %c0_17 = arith.constant 0 : index
    %c0_18 = arith.constant 0 : index
    %41 = vector.load %arg5[%c0_17, %c0_18] : memref<1x5xf32, #tpu.memory_space<vmem>>, vector<1x5xf32>
    %42 = vector.broadcast %41 : vector<1x5xf32> to vector<2x5xf32>
    %43 = arith.addf %40, %42 : vector<2x5xf32>
    %c0_19 = arith.constant 0 : index
    %c0_20 = arith.constant 0 : index
    %44 = vector.load %arg6[%c0_19, %c0_20] : memref<2x5xf32, #tpu.memory_space<vmem>>, vector<2x5xf32>
    tpu.vector_store %arg6[%c0_19, %c0_20], %43 {strides = array<i32>} : memref<2x5xf32, #tpu.memory_space<vmem>>, vector<2x5xf32>,
    return
  }
  func.func @transform_0(%arg0: i32) -> (i32, i32, i32) {
    %c0_i32 = arith.constant 0 : i32
    %c0_i32_0 = arith.constant 0 : i32
    %c0_i32_1 = arith.constant 0 : i32
    %c0_i32_2 = arith.constant 0 : i32
    return %c0_i32, %c0_i32_0, %c0_i32_1 : i32, i32, i32
  }
  func.func @transform_1(%arg0: i32) -> (i32, i32) {
    %c0_i32 = arith.constant 0 : i32
    %c0_i32_0 = arith.constant 0 : i32
    %c0_i32_1 = arith.constant 0 : i32
    return %c0_i32, %c0_i32_0 : i32, i32
  }
  func.func @transform_2(%arg0: i32) -> (i32, i32) {
    %c0_i32 = arith.constant 0 : i32
    %c0_i32_0 = arith.constant 0 : i32
    %c0_i32_1 = arith.constant 0 : i32
    return %c0_i32, %c0_i32_0 : i32, i32
  }
  func.func @transform_3(%arg0: i32) -> (i32, i32) {
    %c0_i32 = arith.constant 0 : i32
    %c0_i32_0 = arith.constant 0 : i32
    %c0_i32_1 = arith.constant 0 : i32
    return %c0_i32, %c0_i32_0 : i32, i32
  }
  func.func @transform_4(%arg0: i32) -> (i32, i32) {
    %c0_i32 = arith.constant 0 : i32
    %c0_i32_0 = arith.constant 0 : i32
    %c0_i32_1 = arith.constant 0 : i32
    return %c0_i32, %c0_i32_0 : i32, i32
  }
  func.func @transform_5(%arg0: i32) -> (i32, i32) {
    %c0_i32 = arith.constant 0 : i32
    %c0_i32_0 = arith.constant 0 : i32
    %c0_i32_1 = arith.constant 0 : i32
    return %c0_i32, %c0_i32_0 : i32, i32
  }
}

</mosaic_0001>

<bundles_post_ra>
// kernel: swin_forward.13
= control target key start
LH: loop header
LB: loop body
LE: loop exit
PB: predicated region body
PF: predicated region fallthrough
CT: control target
= control target key end

     0   :  { %vm38_vm0 = vcmask 261120   ;;  %vm42_vm1 = vcmask 254976   ;;  %v359_v19 = vmov 0.0   ;;  %vm360_vm2 = vmmov 0   ;;  %s472_s0 = inlined_call_operand.vmem [shape: f32[10,32], index: 0, kind: input, shape index: {}]   ;;  %s473_s1 = inlined_call_operand.vmem [shape: f32[10,32], index: 1, kind: input, shape index: {}]   ;;  %s474_s4 = inlined_call_operand.vmem [shape: bf16[32,64], index: 4, kind: input, shape index: {}]   ;;  %s475_s2 = inlined_call_operand.vmem [shape: f32[1,32], index: 2, kind: input, shape index: {}]   ;;  %s476_s3 = inlined_call_operand.vmem [shape: f32[1,32], index: 3, kind: input, shape index: {}]   ;;  %s477_s6 = inlined_call_operand.vmem [shape: bf16[64,32], index: 6, kind: input, shape index: {}]   ;;  %s478_s5 = inlined_call_operand.vmem [shape: f32[1,64], index: 5, kind: input, shape index: {}]   ;;  %s479_s7 = inlined_call_operand.vmem [shape: f32[1,32], index: 7, kind: input, shape index: {}]   ;;  %s480_s8 = inlined_call_operand.vmem [shape: f32[10,32], index: 8, kind: output, shape index: {}]  }
   0x1   :  { %v30_v0 = vld [vmem:[%s472_s0] sm:$0xff]  ;;  %v31_v2 = vld [vmem:[%s472_s0 + $0x8] sm:$0x3]  ;;  %318 = vmatprep.subr.bf16.mxu0 %v359_v19  ;;  %326 = vmatprep.subr.bf16.mxu1 %v359_v19  ;;  %v345_v40 = vld [vmem:[%s477_s6 + $0x10] sm:$0xff]   ;;  %vm245_vm5 = vcmask 523264  }
   0x2   :  { %v32_v1 = vld [vmem:[%s473_s1] sm:$0xff]  ;;  %v33_v4 = vld [vmem:[%s473_s1 + $0x8] sm:$0x3]  ;;  %322 = vmatprep.mubr.msk.bf16.mxu0 %vm360_vm2, %v359_v19  ;;  %334 = vmatprep.mubr.msk.bf16.mxu1 %vm360_vm2, %v359_v19  ;;  %v346_v41 = vld [vmem:[%s477_s6 + $0x18] sm:$0xff]  }
   0x3   :  { %v416_v3 = vadd.f32 %v32_v1, %v30_v0  ;;  %v421_v5 = vadd.f32 %v33_v4, %v31_v2  ;;  %v341_v18 = vld [vmem:[%s474_s4] sm:$0xff]   ;;  %v342_v20 = vld [vmem:[%s474_s4 + $0x8] sm:$0xff]  }
   0x4   :  { %319 = vmatpush3.bf16.msra.mxu0 %v341_v18  ;;  %v298_v29 = vld [vmem:[%s475_s2] ss:$0 sm:$0xff]  ;;  %v344_v39 = vld [vmem:[%s477_s6 + $0x8] sm:$0xff]  }
   0x5   :  { %v39_v6 = vsel %vm38_vm0, %v416_v3, 0.0  ;;  %v43_v7 = vsel %vm42_vm1, %v421_v5, 0.0  ;;  %320 = vmatprep.subr.bf16.mxu0 %v359_v19  ;;  %v299_v33 = vld [vmem:[%s476_s3] ss:$0 sm:$0xff] }
   0x6   :  { %40 = vadd.xlane.f32.xlu0 %v39_v6  ;;  %v343_v38 = vld [vmem:[%s477_s6] sm:$0xff]  }
   0x7   :  { %327 = vmatpush3.bf16.msra.mxu1 %v343_v38  ;;  %v300_v42 = vld [vmem:[%s478_s5] ss:$0 sm:$0xff] }
   0x8   :  { %321 = vmatpush3.bf16.msra.mxu0 %v342_v20  ;;  %328 = vmatprep.subr.bf16.mxu1 %v359_v19 }
   0xa   :  { %44 = vadd.xlane.f32.xlu0 %v43_v7 }
   0xb   :  { %329 = vmatpush3.bf16.msra.mxu1 %v344_v39  ;;  %v304_v39 = vld [vmem:[%s479_s7] ss:$0 sm:$0xff] }
   0xc   :  { %330 = vmatprep.subr.bf16.mxu1 %v359_v19 }
   0xf   :  { %331 = vmatpush3.bf16.msra.mxu1 %v345_v40 }
  0x10   :  { %332 = vmatprep.subr.bf16.mxu1 %v359_v19 }
  0x13   :  { %333 = vmatpush3.bf16.msra.mxu1 %v346_v41 }
  0x93   :  { %v41_v8 = vpop.xlane.xlu0 %40 }
  0x94   :  { %v47_v9 = vmul.f32 0.03125, %v41_v8 }
  0x96   :  { %v49_v10 = vsub.f32 %v416_v3, %v47_v9 }
  0x97   :  { %v45_v11 = vpop.xlane.xlu0 %44 }
  0x98   :  { %v48_v12 = vmul.f32 0.03125, %v45_v11  ;;  %v51_v13 = vmul.f32 %v49_v10, %v49_v10 }
  0x9a   :  { %v50_v14 = vsub.f32 %v421_v5, %v48_v12  ;;  %v53_v15 = vsel %vm38_vm0, %v51_v13, 0.0 }
  0x9b   :  { %54 = vadd.xlane.f32.xlu1 %v53_v15 }
  0x9c   :  { %v52_v16 = vmul.f32 %v50_v14, %v50_v14 }
  0x9e   :  { %v56_v17 = vsel %vm42_vm1, %v52_v16, 0.0 }
  0x9f   :  { %57 = vadd.xlane.f32.xlu1 %v56_v17 }
 0x128   :  { %v55_v21 = vpop.xlane.xlu1 %54 }
 0x129   :  { %v59_v22 = vmul.f32 0.03125, %v55_v21 }
 0x12b   :  { %v61_v23 = vadd.f32 1e-05, %v59_v22 }
 0x12c   :  { %v58_v24 = vpop.xlane.xlu1 %57 }
 0x12d   :  { %347 = vrsqrt.f32 %v61_v23  ;;  %v60_v25 = vmul.f32 0.03125, %v58_v24 }
 0x12f   :  { %v62_v26 = vadd.f32 1e-05, %v60_v25  ;;  %v361_v25 = vmov -1.0  }
 0x131   :  { %349 = vrsqrt.f32 %v62_v26 }
 0x137   :  { %v348_v27 = vpop.eup %347 }
 0x138   :  { %v65_v28 = vmul.f32 %v348_v27, %v49_v10 }
 0x13a   :  { %v73_v32 = vmul.f32 %v298_v29, %v65_v28 }
 0x13b   :  { %v350_v30 = vpop.eup %349 }
 0x13c   :  { %v66_v31 = vmul.f32 %v350_v30, %v50_v14  ;;  %v81_v35 = vadd.f32 %v299_v33, %v73_v32 }
 0x13e   :  { %v74_v34 = vmul.f32 %v298_v29, %v66_v31 }
 0x140   :  { %v82_v36 = vadd.f32 %v299_v33, %v74_v34 }
 0x142   :  { %v83_v37 = vpack.c.bf16 %v82_v36, %v81_v35 }
 0x144   :  { %323 = vmatmul.mubr.msk.bf16.vlgmr.msra.gmra.mrb[0].mxu0 %vm38_vm0, %v83_v37 }
 0x217   :  { %v144_v43 = vpop.f32.mrb[0].mxu0 }
 0x218   :  { %v145_v44 = vadd.f32 %v300_v42, %v144_v43  ;;  %v324_v45 = vpop.f32.mrb[1].mxu0 }
 0x219   :  { %v147_v46 = vpop.f32.mrb[2].mxu0 }
 0x21a   :  { %v153_v47 = vmul.f32 0.70710677, %v145_v44  ;;  %v148_v48 = vadd.f32 %v300_v42, %v147_v46  ;;  %v325_v49 = vpop.f32.mrb[3].mxu0  ;;  %v151_v33 = vmul.f32 0.5, %v145_v44 }
 0x21c   :  { %v159_v50 = vand.u32 2147483647, %v153_v47  ;;  %v154_v51 = vmul.f32 0.70710677, %v148_v48  ;;  %vm155_vm3 = vcmp.ge.f32.partialorder %v153_v47, 0.0  ;;  %v152_v34 = vmul.f32 0.5, %v148_v48 }
 0x21d   :  { %v157_v26 = vsel %vm155_vm3, 1.0, %v361_v25 }
 0x21e   :  { %v161_v52 = vmul.f32 0.3275911, %v159_v50  ;;  %v160_v53 = vand.u32 2147483647, %v154_v51  ;;  %v187_v57 = vsub.f32 0.0, %v159_v50  ;;  %vm156_vm4 = vcmp.ge.f32.partialorder %v154_v51, 0.0 }
 0x21f   :  { %v158_v30 = vsel %vm156_vm4, 1.0, %v361_v25 }
 0x220   :  { %v163_v54 = vadd.f32 1.0, %v161_v52  ;;  %v162_v55 = vmul.f32 0.3275911, %v160_v53  ;;  %v188_v58 = vsub.f32 0.0, %v160_v53  ;;  %v189_v60 = vmul.f32 %v187_v57, %v159_v50 }
 0x222   :  { %351 = vrcp.f32 %v163_v54  ;;  %v164_v56 = vadd.f32 1.0, %v162_v55  ;;  %v190_v0 = vmul.f32 %v188_v58, %v160_v53  ;;  %v191_v1 = vmul.f32 1.442695, %v189_v60 }
 0x224   :  { %353 = vrcp.f32 %v164_v56  ;;  %v193_v8 = vmul.f32 1.442695, %v190_v0 }
 0x225   :  { %355 = vpow2.f32 %v191_v1 }
 0x226   :  { %357 = vpow2.f32 %v193_v8 }
 0x22c   :  { %v352_v59 = vpop.eup %351 }
 0x22d   :  { %v169_v61 = vmul.f32 1.0614054, %v352_v59 }
 0x22e   :  { %v354_v62 = vpop.eup %353 }
 0x22f   :  { %v171_v63 = vadd.f32 -1.4531521, %v169_v61  ;;  %v170_v2 = vmul.f32 1.0614054, %v354_v62  ;;  %v356_v19 = vpop.eup %355 }
 0x230   :  { %v358_v23 = vpop.eup %357 }
 0x231   :  { %v173_v4 = vmul.f32 %v352_v59, %v171_v63  ;;  %v172_v6 = vadd.f32 -1.4531521, %v170_v2 }
 0x233   :  { %v175_v7 = vadd.f32 1.4214138, %v173_v4  ;;  %v174_v9 = vmul.f32 %v354_v62, %v172_v6 }
 0x235   :  { %v177_v10 = vmul.f32 %v352_v59, %v175_v7  ;;  %v176_v11 = vadd.f32 1.4214138, %v174_v9 }
 0x237   :  { %v179_v12 = vadd.f32 -0.28449672, %v177_v10  ;;  %v178_v13 = vmul.f32 %v354_v62, %v176_v11 }
 0x239   :  { %v181_v14 = vmul.f32 %v352_v59, %v179_v12  ;;  %v180_v15 = vadd.f32 -0.28449672, %v178_v13 }
 0x23b   :  { %v183_v16 = vadd.f32 0.2548296, %v181_v14  ;;  %v182_v17 = vmul.f32 %v354_v62, %v180_v15 }
 0x23d   :  { %v185_v18 = vmul.f32 %v352_v59, %v183_v16  ;;  %v184_v20 = vadd.f32 0.2548296, %v182_v17 }
 0x23f   :  { %v195_v21 = vmul.f32 %v356_v19, %v185_v18  ;;  %v186_v22 = vmul.f32 %v354_v62, %v184_v20 }
 0x241   :  { %v197_v24 = vsub.f32 1.0, %v195_v21  ;;  %v196_v27 = vmul.f32 %v358_v23, %v186_v22 }
 0x243   :  { %v199_v28 = vmul.f32 %v197_v24, %v157_v26  ;;  %v198_v29 = vsub.f32 1.0, %v196_v27 }
 0x245   :  { %v201_v31 = vadd.f32 1.0, %v199_v28  ;;  %v200_v32 = vmul.f32 %v198_v29, %v158_v30 }
 0x247   :  { %v202_v35 = vadd.f32 1.0, %v200_v32  ;;  %v203_v36 = vmul.f32 %v201_v31, %v151_v33 }
 0x249   :  { %v204_v37 = vmul.f32 %v202_v35, %v152_v34 }
 0x24b   :  { %v205_v38 = vpack.c.bf16 %v204_v37, %v203_v36 }
 0x24d   :  { %335 = vmatmul.mubr.msk.bf16.vlgmr.msra.gmra.mrb[0].mxu1 %vm245_vm5, %v205_v38 }
 0x320   :  { %v283_v40 = vpop.f32.mrb[0].mxu1 }
 0x321   :  { %v284_v41 = vadd.f32 %v304_v39, %v283_v40  ;;  %v336_v42 = vpop.f32.mrb[1].mxu1 }
 0x322   :  { %v286_v43 = vpop.f32.mrb[2].mxu1 }
 0x323   :  { %v290_v45 = vadd.f32 %v284_v41, %v416_v3  ;;  %v287_v46 = vadd.f32 %v304_v39, %v286_v43  ;;  %v337_v47 = vpop.f32.mrb[3].mxu1 }
 0x325   :  { %292 = vst.msk [vmem:[%s480_s8] sm:$0xff] %vm38_vm0, %v290_v45  ;;  %v291_v44 = vadd.f32 %v287_v46, %v421_v5 }
 0x327   :  { %293 = vst.msk [vmem:[%s480_s8 + $0x8] sm:$0x3] %vm42_vm1, %v291_v44 }

// kernel: swin_forward.11
= control target key start
LH: loop header
LB: loop body
LE: loop exit
PB: predicated region body
PF: predicated region fallthrough
CT: control target
= control target key end

     0   :  { %vm205_vm0 = vcmask 261120   ;;  %vm209_vm1 = vcmask 254976   ;;  %s428_s1 = inlined_call_operand.vmem [shape: bf16[256,32], index: 1, kind: input, shape index: {}]   ;;  %s429_s0 = inlined_call_operand.vmem [shape: f32[10,256], index: 0, kind: input, shape index: {}]   ;;  %s430_s2 = inlined_call_operand.vmem [shape: f32[1,32], index: 2, kind: input, shape index: {}]   ;;  %s431_s3 = inlined_call_operand.vmem [shape: f32[1,32], index: 3, kind: input, shape index: {}]   ;;  %s432_s4 = inlined_call_operand.vmem [shape: f32[1,32], index: 4, kind: input, shape index: {}]   ;;  %s433_s5 = inlined_call_operand.vmem [shape: f32[10,32], index: 5, kind: output, shape index: {}]  }
   0x1   :  { %v297_v0 = vld [vmem:[%s428_s1 + $0x40] sm:$0xff]   ;;  %v299_v2 = vld [vmem:[%s428_s1 + $0x48] sm:$0xff]   ;;  %v301_v4 = vld [vmem:[%s428_s1 + $0x50] sm:$0xff]  }
   0x2   :  { %v298_v1 = vld [vmem:[%s428_s1] sm:$0xff]   ;;  %275 = vmatprep.subr.bf16.mxu0 %v297_v0  ;;  %v300_v3 = vld [vmem:[%s428_s1 + $0x8] sm:$0xff]   ;;  %v302_v5 = vld [vmem:[%s428_s1 + $0x10] sm:$0xff]  }
   0x3   :  { %276 = vmatpush3.bf16.msra.mxu0 %v298_v1  ;;  %v303_v6 = vld [vmem:[%s428_s1 + $0x58] sm:$0xff]   ;;  %v305_v8 = vld [vmem:[%s428_s1 + $0x60] sm:$0xff]   ;;  %v307_v10 = vld [vmem:[%s428_s1 + $0x68] sm:$0xff]  }
   0x4   :  { %277 = vmatprep.subr.bf16.mxu0 %v299_v2  ;;  %v304_v7 = vld [vmem:[%s428_s1 + $0x18] sm:$0xff]   ;;  %v306_v9 = vld [vmem:[%s428_s1 + $0x20] sm:$0xff]   ;;  %v22_v11 = vld [vmem:[%s429_s0 + $0x8] sm:$0xff] }
   0x5   :  { %v24_v12 = vld [vmem:[%s429_s0 + $0x18] sm:$0x3]  ;;  %v308_v14 = vld [vmem:[%s428_s1 + $0x28] sm:$0xff]   ;;  %v309_v15 = vld [vmem:[%s428_s1 + $0x70] sm:$0xff]  }
   0x6   :  { %v26_v13 = vpack.c.bf16 %v24_v12, %v22_v11  ;;  %v310_v16 = vld [vmem:[%s428_s1 + $0x30] sm:$0xff]   ;;  %v311_v17 = vld [vmem:[%s428_s1 + $0x78] sm:$0xff]   ;;  %v21_v19 = vld [vmem:[%s429_s0] sm:$0xff] }
   0x7   :  { %278 = vmatpush3.bf16.msra.mxu0 %v300_v3  ;;  %v312_v18 = vld [vmem:[%s428_s1 + $0x38] sm:$0xff]   ;;  %v23_v20 = vld [vmem:[%s429_s0 + $0x10] sm:$0x3]  ;;  %v256_v24 = vld [vmem:[%s430_s2] ss:$0 sm:$0xff] }
   0x8   :  { %279 = vmatprep.subr.bf16.mxu0 %v301_v4  ;;  %194 = vmatprep.mubr.bf16.mxu0 %v26_v13  ;;  %v25_v21 = vpack.c.bf16 %v23_v20, %v21_v19  ;;  %v273_v50 = vld [vmem:[%s431_s3] ss:$0 sm:$0xff] }
   0x9   :  { %v274_v52 = vld [vmem:[%s432_s4] ss:$0 sm:$0xff] }
   0xb   :  { %280 = vmatpush3.bf16.msra.mxu0 %v302_v5 }
   0xc   :  { %281 = vmatprep.subr.bf16.mxu0 %v303_v6 }
   0xf   :  { %282 = vmatpush3.bf16.msra.mxu0 %v304_v7 }
  0x10   :  { %283 = vmatprep.subr.bf16.mxu0 %v305_v8 }
  0x13   :  { %284 = vmatpush3.bf16.msra.mxu0 %v306_v9 }
  0x14   :  { %285 = vmatprep.subr.bf16.mxu0 %v307_v10 }
  0x17   :  { %286 = vmatpush3.bf16.msra.mxu0 %v308_v14 }
  0x18   :  { %287 = vmatprep.subr.bf16.mxu0 %v309_v15 }
  0x1b   :  { %288 = vmatpush3.bf16.msra.mxu0 %v310_v16 }
  0x1c   :  { %289 = vmatprep.subr.bf16.mxu0 %v311_v17 }
  0x1f   :  { %290 = vmatpush3.bf16.msra.mxu0 %v312_v18 }
  0x22   :  { %195 = vmatmul.mubr.bf16.vlgmr.msra.gmra.mrb[0].mxu0 %v25_v21 }
  0xf5   :  { %v291_v22 = vpop.f32.mrb[0].mxu0 }
  0xf6   :  { %v292_v23 = vpop.f32.mrb[1].mxu0 }
  0xf7   :  { %v293_v25 = vadd.f32 %v292_v23, %v291_v22  ;;  %v294_v26 = vpop.f32.mrb[2].mxu0 }
  0xf8   :  { %v295_v27 = vpop.f32.mrb[3].mxu0 }
  0xf9   :  { %v296_v28 = vadd.f32 %v295_v27, %v294_v26  ;;  %v197_v29 = vadd.f32 %v293_v25, %v256_v24 }
  0xfb   :  { %v206_v30 = vsel %vm205_vm0, %v197_v29, 0.0  ;;  %v200_v31 = vadd.f32 %v296_v28, %v256_v24 }
  0xfc   :  { %207 = vadd.xlane.f32.xlu0 %v206_v30 }
  0xfd   :  { %v210_v32 = vsel %vm209_vm1, %v200_v31, 0.0 }
 0x100   :  { %211 = vadd.xlane.f32.xlu0 %v210_v32 }
 0x189   :  { %v208_v33 = vpop.xlane.xlu0 %207 }
 0x18a   :  { %v214_v34 = vmul.f32 0.03125, %v208_v33 }
 0x18c   :  { %v216_v35 = vsub.f32 %v197_v29, %v214_v34 }
 0x18d   :  { %v212_v36 = vpop.xlane.xlu0 %211 }
 0x18e   :  { %v215_v37 = vmul.f32 0.03125, %v212_v36  ;;  %v218_v38 = vmul.f32 %v216_v35, %v216_v35 }
 0x190   :  { %v217_v39 = vsub.f32 %v200_v31, %v215_v37  ;;  %v220_v40 = vsel %vm205_vm0, %v218_v38, 0.0 }
 0x191   :  { %221 = vadd.xlane.f32.xlu1 %v220_v40 }
 0x192   :  { %v219_v41 = vmul.f32 %v217_v39, %v217_v39 }
 0x194   :  { %v223_v42 = vsel %vm209_vm1, %v219_v41, 0.0 }
 0x195   :  { %224 = vadd.xlane.f32.xlu1 %v223_v42 }
 0x21e   :  { %v222_v43 = vpop.xlane.xlu1 %221 }
 0x21f   :  { %v226_v44 = vmul.f32 0.03125, %v222_v43 }
 0x221   :  { %v228_v45 = vadd.f32 1e-05, %v226_v44 }
 0x222   :  { %v225_v46 = vpop.xlane.xlu1 %224 }
 0x223   :  { %313 = vrsqrt.f32 %v228_v45  ;;  %v227_v47 = vmul.f32 0.03125, %v225_v46 }
 0x225   :  { %v229_v48 = vadd.f32 1e-05, %v227_v47 }
 0x227   :  { %315 = vrsqrt.f32 %v229_v48 }
 0x22d   :  { %v314_v49 = vpop.eup %313 }
 0x22e   :  { %v232_v51 = vmul.f32 %v314_v49, %v216_v35 }
 0x230   :  { %v240_v53 = vmul.f32 %v273_v50, %v232_v51 }
 0x231   :  { %v316_v54 = vpop.eup %315 }
 0x232   :  { %v248_v55 = vadd.f32 %v274_v52, %v240_v53  ;;  %v233_v56 = vmul.f32 %v316_v54, %v217_v39 }
 0x234   :  { %250 = vst.msk [vmem:[%s433_s5] sm:$0xff] %vm205_vm0, %v248_v55  ;;  %v241_v57 = vmul.f32 %v273_v50, %v233_v56 }
 0x236   :  { %v249_v58 = vadd.f32 %v274_v52, %v241_v57 }
 0x238   :  { %251 = vst.msk [vmem:[%s433_s5 + $0x8] sm:$0x3] %vm209_vm1, %v249_v58 }

// kernel: swin_forward.12
= control target key start
LH: loop header
LB: loop body
LE: loop exit
PB: predicated region body
PF: predicated region fallthrough
CT: control target
= control target key end

     0   :  { %s1448_s30 = smov 0   ;;  %s1641_s0 = inlined_call_operand.vmem [shape: f32[2,2,16,32], index: 0, kind: input, shape index: {}]   ;;  %s1642_s1 = inlined_call_operand.vmem [shape: f32[2,16,1], index: 1, kind: input, shape index: {}]   ;;  %s1643_s2 = inlined_call_operand.vmem [shape: f32[1,32], index: 2, kind: input, shape index: {}]   ;;  %s1644_s3 = inlined_call_operand.vmem [shape: f32[1,32], index: 3, kind: input, shape index: {}]   ;;  %s1645_s4 = inlined_call_operand.vmem [shape: bf16[32,96], index: 4, kind: input, shape index: {}]   ;;  %s1646_s5 = inlined_call_operand.vmem [shape: f32[1,96], index: 5, kind: input, shape index: {}]   ;;  %s1647_s6 = inlined_call_operand.vmem [shape: f32[2,2,16,16], index: 6, kind: input, shape index: {}]   ;;  %s1648_s7 = inlined_call_operand.vmem [shape: bf16[32,32], index: 7, kind: input, shape index: {}]   ;;  %s1649_s8 = inlined_call_operand.vmem [shape: f32[1,32], index: 8, kind: input, shape index: {}]   ;;  %s1650_s9 = inlined_call_operand.vmem [shape: f32[2,2,16,32], index: 9, kind: output, shape index: {}]  }
   0x1 LB: > { %s1183_s10 = sadd.s32 4294967295, %s1387_s30   ;;  %p1187_p0 = scmp.ge.s32.totalorder %s1387_s30, 1  ;;  %s1387_s30 = sphi %s1448_s30, %s19_s30  }
   0x2   : > { %p287_p1 = scmp.lt.s32.totalorder %s1387_s30, 3 }
   0x4   : > { %p288_p2 = pnand %p1187_p0, %p287_p1 }
   0x5   : > { %p323_p3 = scmp.lt.s32.totalorder (!%p288_p2), %s1183_s10, 1  ;;  %vm340_vm0 = vcmask (!%p288_p2), 261120   ;;  %v1389_v8 = vmov (!%p288_p2), 0   ;;  %v415_v24 = vld [vmem:[%s1642_s1 + $0x8] sm:$0xff] (!%p288_p2)  ;;  %v416_v25 = vld [vmem:[%s1642_s1 + $0x10] sm:$0xff] (!%p288_p2)  ;;  %v414_v26 = vld [vmem:[%s1642_s1] sm:$0xff] (!%p288_p2) }
   0x6   : > { %291 = sbr.rel (%p288_p2) target bundleno = 2382 (0x94e), region = 56  ;;  %1326 = vset.pattern.permute.xlu1 (!%p288_p2), %v1389_v8  ;;  %1325 = vset.pattern.permute.xlu0 (!%p288_p2), %v1389_v8  ;;  %v417_v32 = vld [vmem:[%s1642_s1 + $0x18] sm:$0xff] (!%p288_p2)  ;;  %v1337_v33 = vld [vmem:[%s1645_s4] sm:$0xff] (!%p288_p2)   ;;  %v1338_v34 = vld [vmem:[%s1645_s4 + $0x8] sm:$0xff] (!%p288_p2)   ;;  %vm1391_vm1 = vmmov (!%p288_p2), 0   ;;  %s1392_s15 = smov (!%p288_p2), 96  }
   0x7   : > { %1244 = vmatprep.subr.bf16.mxu0 (!%p288_p2), %v1337_v33  ;;  %v1192_v42 = vld [vmem:[%s1643_s2] ss:$0 sm:$0xff] (!%p288_p2)  ;;  %vm537_vm2 = vcmask (!%p288_p2), 130048   ;;  %s1393_s24 = smov (!%p288_p2), 64   ;;  %s1394_s25 = smov (!%p288_p2), 80  }
   0x8   : > { %1245 = vmatpush3.bf16.msra.mxu0 (!%p288_p2), %v1337_v33  ;;  %v1193_v47 = vld [vmem:[%s1644_s3] ss:$0 sm:$0xff] (!%p288_p2)  ;;  %s1395_s26 = smov (!%p288_p2), 112   ;;  %s1396_s17 = smov (!%p288_p2), 48  }
   0x9   : > { %1246 = vmatprep.subr.bf16.mxu0 (!%p288_p2), %v1338_v34  ;;  %v530_v33 = vld [vmem:[%s1647_s6] sm:$0xff] (!%p288_p2)  ;;  %s1397_s22 = smov (!%p288_p2), 16  }
   0xc   : > { %1247 = vmatpush3.bf16.msra.mxu0 (!%p288_p2), %v1338_v34 }
   0xd   : > { %s1652_s10 = smov (!%p323_p3, %s1183_s10), 1 }
   0xe   : > { %s1218_s11 = sshll.u32 %s1652_s10, 5 }
   0xf   : > { %s327_s14 = scalar_lea.vmem %s1641_s0, %s1218_s11  ;;  %s332_s27 = scalar_lea.vmem %s1650_s9, %s1218_s11 }
  0x10   : > { %v334_v0 = vld [vmem:[%s327_s14] sm:$0xff]  ;;  %v336_v1 = vld [vmem:[%s327_s14 + $0x10] sm:$0xff]  ;;  %v335_v2 = vld [vmem:[%s327_s14 + $0x8] sm:$0xff] }
  0x11   : > { %v341_v3 = vsel %vm340_vm0, %v334_v0, 0.0  ;;  %v347_v4 = vsel %vm340_vm0, %v336_v1, 0.0  ;;  %v337_v5 = vld [vmem:[%s327_s14 + $0x18] sm:$0xff]  ;;  %v344_v6 = vsel %vm340_vm0, %v335_v2, 0.0 }
  0x12   : > { %342 = vadd.xlane.f32.xlu0 %v341_v3  ;;  %348 = vadd.xlane.f32.xlu1 %v347_v4  ;;  %v350_v7 = vsel %vm340_vm0, %v337_v5, 0.0 }
  0x16   : > { %345 = vadd.xlane.f32.xlu0 %v344_v6  ;;  %351 = vadd.xlane.f32.xlu1 %v350_v7 }
  0x9f   : > { %v343_v9 = vpop.xlane.xlu0 %342  ;;  %v349_v10 = vpop.xlane.xlu1 %348 }
  0xa0   : > { %v354_v11 = vmul.f32 0.03125, %v343_v9  ;;  %v356_v12 = vmul.f32 0.03125, %v349_v10 }
  0xa2   : > { %v358_v13 = vsub.f32 %v334_v0, %v354_v11  ;;  %v1468_v14 = vsub.f32 %v336_v1, %v356_v12  ;;  %v1390_v11 = vmov 0.0   ;;  %v1194_v12 = vld [vmem:[%s1646_s5] ss:$0 sm:$0xff] }
  0xa3   : > { %v346_v15 = vpop.xlane.xlu0 %345  ;;  %v352_v27 = vpop.xlane.xlu1 %351  ;;  %1252 = vmatprep.subr.bf16.mxu1 %v1390_v11  ;;  %1258 = vmatprep.subr.bf16.mxu0 %v1390_v11 }
  0xa4   : > { %v355_v16 = vmul.f32 0.03125, %v346_v15  ;;  %v362_v17 = vmul.f32 %v358_v13, %v358_v13  ;;  %v364_v18 = vmul.f32 %v1468_v14, %v1468_v14  ;;  %v357_v28 = vmul.f32 0.03125, %v352_v27  ;;  %1254 = vmatprep.mubr.msk.bf16.mxu1 %vm1391_vm1, %v1390_v11 }
  0xa6   : > { %v359_v19 = vsub.f32 %v335_v2, %v355_v16  ;;  %v366_v20 = vsel %vm340_vm0, %v362_v17, 0.0  ;;  %v372_v21 = vsel %vm340_vm0, %v364_v18, 0.0  ;;  %v361_v29 = vsub.f32 %v337_v5, %v357_v28 }
  0xa7   : > { %367 = vadd.xlane.f32.xlu0 %v366_v20 }
  0xa8   : > { %v363_v22 = vmul.f32 %v359_v19, %v359_v19  ;;  %v365_v30 = vmul.f32 %v361_v29, %v361_v29 }
  0xaa   : > { %v369_v23 = vsel %vm340_vm0, %v363_v22, 0.0  ;;  %v375_v31 = vsel %vm340_vm0, %v365_v30, 0.0 }
  0xab   : > { %373 = vadd.xlane.f32.xlu0 %v372_v21  ;;  %370 = vadd.xlane.f32.xlu1 %v369_v23 }
  0xbc   : > { %425 = vperm.xlu1 %1326, %v415_v24  }
  0xc0   : > { %430 = vperm.xlu1 %1326, %v416_v25  }
  0xc1   : > { %420 = vperm.xlu0 %1325, %v414_v26  }
  0xe4   : > { %376 = vadd.xlane.f32.xlu1 %v375_v31 }
  0xf5   : > { %435 = vperm.xlu1 %1326, %v417_v32  }
 0x134   : > { %v368_v35 = vpop.xlane.xlu0 %367 }
 0x135   : > { %v378_v36 = vmul.f32 0.03125, %v368_v35  ;;  %v531_v35 = vld [vmem:[%s1647_s6 + $0x8] sm:$0xff] }
 0x137   : > { %v382_v37 = vadd.f32 1e-05, %v378_v36 }
 0x138   : > { %v371_v38 = vpop.xlane.xlu1 %370  ;;  %v374_v46 = vpop.xlane.xlu0 %373 }
 0x139   : > { %1341 = vrsqrt.f32 %v382_v37  ;;  %v379_v39 = vmul.f32 0.03125, %v371_v38  ;;  %v380_v57 = vmul.f32 0.03125, %v374_v46 }
 0x13b   : > { %v383_v40 = vadd.f32 1e-05, %v379_v39  ;;  %v384_v58 = vadd.f32 1e-05, %v380_v57  ;;  %v532_v39 = vld [vmem:[%s1647_s6 + $0x10] sm:$0xff] }
 0x13c   : > { %v426_v53 = vpop.permute.xlu1 %425 }
 0x13d   : > { %1343 = vrsqrt.f32 %v383_v40 }
 0x13e   : > { %1345 = vrsqrt.f32 %v384_v58 }
 0x140   : > { %v421_v51 = vpop.permute.xlu0 %420  ;;  %v431_v59 = vpop.permute.xlu1 %430 }
 0x143   : > { %v1342_v41 = vpop.eup %1341 }
 0x144   : > { %v390_v43 = vmul.f32 %v1342_v41, %v358_v13 }
 0x146   : > { %v400_v44 = vmul.f32 %v1192_v42, %v390_v43 }
 0x147   : > { %v1344_v45 = vpop.eup %1343 }
 0x148   : > { %v391_v48 = vmul.f32 %v1344_v45, %v359_v19  ;;  %v410_v50 = vadd.f32 %v1193_v47, %v400_v44  ;;  %v1346_v63 = vpop.eup %1345  ;;  %v533_v44 = vld [vmem:[%s1647_s6 + $0x18] sm:$0xff] }
 0x149   : > { %v392_v0 = vmul.f32 %v1346_v63, %v1468_v14 }
 0x14a   : > { %v401_v49 = vmul.f32 %v1192_v42, %v391_v48  ;;  %v438_v55 = vmul.f32 %v421_v51, %v410_v50 }
 0x14b   : > { %v402_v1 = vmul.f32 %v1192_v42, %v392_v0 }
 0x14c   : > { %v411_v52 = vadd.f32 %v1193_v47, %v401_v49 }
 0x14d   : > { %v412_v4 = vadd.f32 %v1193_v47, %v402_v1 }
 0x14e   : > { %v439_v54 = vmul.f32 %v426_v53, %v411_v52 }
 0x14f   : > { %v440_v8 = vmul.f32 %v431_v59, %v412_v4 }
 0x150   : > { %v442_v56 = vpack.c.bf16 %v439_v54, %v438_v55 }
 0x152   : > { %1248 = vmatprep.mubr.msk.bf16.mxu0 %vm340_vm0, %v442_v56 }
 0x171   : > { %v377_v60 = vpop.xlane.xlu1 %376 }
 0x172   : > { %v381_v61 = vmul.f32 0.03125, %v377_v60 }
 0x174   : > { %v385_v62 = vadd.f32 1e-05, %v381_v61 }
 0x175   : > { %v436_v7 = vpop.permute.xlu1 %435 }
 0x176   : > { %1347 = vrsqrt.f32 %v385_v62 }
 0x180   : > { %v1348_v2 = vpop.eup %1347 }
 0x181   : > { %v393_v3 = vmul.f32 %v1348_v2, %v361_v29 }
 0x183   : > { %v403_v5 = vmul.f32 %v1192_v42, %v393_v3 }
 0x185   : > { %v413_v6 = vadd.f32 %v1193_v47, %v403_v5 }
 0x187   : > { %v441_v9 = vmul.f32 %v436_v7, %v413_v6 }
 0x189   : > { %v443_v10 = vpack.c.bf16 %v441_v9, %v440_v8 }
 0x18b   : > { %1249 = vmatmul.mubr.msk.bf16.vlgmr.msra.gmra.mrb[0].mxu0 %vm340_vm0, %v443_v10 }
 0x18c   : > { %1260 = vmatprep.mubr.msk.bf16.mxu0 %vm1391_vm1, %v1390_v11 }
 0x25e   : > { %v1250_v13 = vpop.f32.mrb[0].mxu0 }
 0x25f   : > { %v516_v14 = vadd.f32 %v1250_v13, %v1194_v12  ;;  %v507_v15 = vpop.f32.mrb[1].mxu0 }
 0x260   : > { %v508_v16 = vadd.f32 %v1194_v12, %v507_v15  ;;  %v1251_v17 = vpop.f32.mrb[2].mxu0 }
 0x261   : > { %v519_v18 = vadd.f32 %v1251_v17, %v1194_v12  ;;  %v510_v19 = vpop.f32.mrb[3].mxu0  ;;  %v524_v21 = vmul.f32 0.25, %v516_v14 }
 0x262   : > { %v511_v20 = vadd.f32 %v1194_v12, %v510_v19  ;;  %v522_v24 = vmul.f32 0.25, %v508_v16 }
 0x263   : > { %v525_v22 = vmul.f32 0.25, %v519_v18  ;;  %v1512_v23 = vpack.c.bf16 %v519_v18, %v516_v14 }
 0x264   : > { %v523_v25 = vmul.f32 0.25, %v511_v20  ;;  %v1514_v26 = vpack.c.bf16 %v511_v20, %v508_v16 }
 0x265   : > { %v1516_v27 = vpack.c.bf16 %v525_v22, %v524_v21 }
 0x266   : > { %v1518_v28 = vpack.c.bf16 %v523_v25, %v522_v24  ;;  %535 = vrot.lane.b32.xlu1 %v1514_v26, %s1392_s15 }
 0x26a   : > { %586 = vrot.lane.b32.xlu1 %v1512_v23, %s1392_s15 }
 0x2d8   : > { %v536_v29 = vpop.permute.xlu1 %535 }
 0x2d9   : > { %v542_v30 = vsel %vm537_vm2, %v536_v29, 0 }
 0x2da   : > { %1253 = vmatpush3.bf16.xpose.msra.mxu1 %v542_v30 }
 0x2db   : > { %1264 = vmatprep.subr.bf16.mxu1 %v1390_v11 }
 0x2dc   : > { %v587_v31 = vpop.permute.xlu1 %586 }
 0x2dd   : > { %v592_v32 = vsel %vm537_vm2, %v587_v31, 0 }
 0x2de   : > { %1259 = vmatpush3.bf16.xpose.msra.mxu0 %v592_v32 }
 0x2df   : > { %1270 = vmatprep.subr.bf16.mxu0 %v1390_v11 }
 0x2e1   : > { %1255 = vmatmul.mubr.msk.bf16.vlgmr.msra.gmra.mrb[0].mxu1 %vm537_vm2, %v1518_v28 }
 0x2e2   : > { %1266 = vmatprep.mubr.msk.bf16.mxu1 %vm1391_vm1, %v1390_v11 }
 0x2e5   : > { %1261 = vmatmul.mubr.msk.bf16.vlgmr.msra.gmra.mrb[4].mxu0 %vm537_vm2, %v1516_v27 }
 0x2e6   : > { %1272 = vmatprep.mubr.msk.bf16.mxu0 %vm1391_vm1, %v1390_v11 }
 0x3b4   : > { %v578_v34 = vpop.f32.mrb[0].mxu1 }
 0x3b5   : > { %v579_v36 = vadd.f32 %v578_v34, %v530_v33  ;;  %v1256_v37 = vpop.f32.mrb[1].mxu1 }
 0x3b6   : > { %v581_v38 = vpop.f32.mrb[2].mxu1 }
 0x3b7   : > { %v582_v40 = vadd.f32 %v581_v38, %v531_v35  ;;  %v1257_v41 = vpop.f32.mrb[3].mxu1  ;;  %v635_v42 = vsel %vm537_vm2, %v579_v36, -inf }
 0x3b8   : > { %v628_v43 = vpop.f32.mrb[4].mxu0  ;;  %636 = vmax.xlane.f32.xlu1 %v635_v42 }
 0x3b9   : > { %v629_v45 = vadd.f32 %v628_v43, %v532_v39  ;;  %v1262_v46 = vpop.f32.mrb[5].mxu0  ;;  %v638_v47 = vsel %vm537_vm2, %v582_v40, -inf }
 0x3ba   : > { %v631_v48 = vpop.f32.mrb[6].mxu0  ;;  %639 = vmax.xlane.f32.xlu0 %v638_v47  ;;  %v1206_v46 = vld [vmem:[%s1647_s6 + $0x38] sm:$0xff] }
 0x3bb   : > { %v632_v49 = vadd.f32 %v631_v48, %v533_v44  ;;  %v1263_v50 = vpop.f32.mrb[7].mxu0  ;;  %v641_v51 = vsel %vm537_vm2, %v629_v45, -inf  ;;  %v1204_v48 = vld [vmem:[%s1647_s6 + $0x28] sm:$0xff] }
 0x3bc   : > { %642 = vmax.xlane.f32.xlu1 %v641_v51  ;;  %v1205_v51 = vld [vmem:[%s1647_s6 + $0x30] sm:$0xff] }
 0x3bd   : > { %v644_v52 = vsel %vm537_vm2, %v632_v49, -inf }
 0x3c0   : > { %645 = vmax.xlane.f32.xlu1 %v644_v52 }
 0x3d0   : > { %681 = vrot.lane.b32.xlu0 %v1514_v26, %s1393_s24 }
 0x3d1   : > { %728 = vrot.lane.b32.xlu1 %v1512_v23, %s1393_s24 }
 0x445   : > { %v637_v53 = vpop.xlane.xlu1 %636 }
 0x446   : > { %v647_v55 = vsub.f32 %v579_v36, %v637_v53 }
 0x447   : > { %v640_v54 = vpop.xlane.xlu0 %639 }
 0x448   : > { %v651_v59 = vmul.f32 1.442695, %v647_v55  ;;  %v648_v60 = vsub.f32 %v582_v40, %v640_v54 }
 0x449   : > { %v643_v56 = vpop.xlane.xlu1 %642 }
 0x44a   : > { %v649_v57 = vsub.f32 %v629_v45, %v643_v56  ;;  %v653_v0 = vmul.f32 1.442695, %v648_v60  ;;  %v1203_v45 = vld [vmem:[%s1647_s6 + $0x20] sm:$0xff] }
 0x44b   : > { %v682_v58 = vpop.permute.xlu0 %681 }
 0x44c   : > { %v655_v61 = vmul.f32 1.442695, %v649_v57  ;;  %1265 = vmatpush3.bf16.msra.mxu1 %v682_v58 }
 0x44d   : > { %v646_v62 = vpop.xlane.xlu1 %645  ;;  %1276 = vmatprep.subr.bf16.mxu1 %v1390_v11 }
 0x44e   : > { %1349 = vpow2.f32 %v655_v61  ;;  %v650_v63 = vsub.f32 %v632_v49, %v646_v62 }
 0x44f   : > { %1351 = vpow2.f32 %v651_v59 }
 0x450   : > { %v657_v1 = vmul.f32 1.442695, %v650_v63 }
 0x451   : > { %v729_v2 = vpop.permute.xlu1 %728 }
 0x452   : > { %1353 = vpow2.f32 %v657_v1  ;;  %1271 = vmatpush3.bf16.msra.mxu0 %v729_v2 }
 0x453   : > { %1282 = vmatprep.subr.bf16.mxu0 %v1390_v11  ;;  %1355 = vpow2.f32 %v653_v0 }
 0x458   : > { %v1350_v3 = vpop.eup %1349 }
 0x459   : > { %v665_v4 = vsel %vm537_vm2, %v1350_v3, 0.0  ;;  %v1352_v5 = vpop.eup %1351 }
 0x45a   : > { %666 = vadd.xlane.f32.xlu0 %v665_v4  ;;  %v659_v8 = vsel %vm537_vm2, %v1352_v5, 0.0 }
 0x45c   : > { %v1354_v6 = vpop.eup %1353 }
 0x45d   : > { %v668_v7 = vsel %vm537_vm2, %v1354_v6, 0.0  ;;  %v1356_v9 = vpop.eup %1355 }
 0x45e   : > { %669 = vadd.xlane.f32.xlu1 %v668_v7  ;;  %660 = vadd.xlane.f32.xlu0 %v659_v8  ;;  %v662_v10 = vsel %vm537_vm2, %v1356_v9, 0.0 }
 0x462   : > { %663 = vadd.xlane.f32.xlu1 %v662_v10 }
 0x473   : > { %783 = vrot.lane.b32.xlu1 %v1514_v26, %s1394_s25 }
 0x474   : > { %835 = vrot.lane.b32.xlu0 %v1512_v23, %s1394_s25 }
 0x477   : > { %781 = vrot.lane.b32.xlu1 %v1518_v28, %s1395_s26 }
 0x478   : > { %833 = vrot.lane.b32.xlu0 %v1516_v27, %s1395_s26 }
 0x4e7   : > { %v667_v12 = vpop.xlane.xlu0 %666 }
 0x4e8   : > { %1357 = vrcp.f32 %v667_v12 }
 0x4eb   : > { %v670_v13 = vpop.xlane.xlu1 %669  ;;  %v661_v14 = vpop.xlane.xlu0 %660 }
 0x4ec   : > { %1359 = vrcp.f32 %v670_v13 }
 0x4ed   : > { %1361 = vrcp.f32 %v661_v14 }
 0x4ef   : > { %v664_v15 = vpop.xlane.xlu1 %663  ;;  %v836_v21 = vpop.permute.xlu0 %835 }
 0x4f0   : > { %1363 = vrcp.f32 %v664_v15  ;;  %v841_v27 = vsel %vm537_vm2, %v836_v21, 0 }
 0x4f2   : > { %v1358_v16 = vpop.eup %1357 }
 0x4f3   : > { %v677_v18 = vmul.f32 %v1358_v16, %v1350_v3  ;;  %v784_v29 = vpop.permute.xlu1 %783  ;;  %v834_v32 = vpop.permute.xlu0 %833 }
 0x4f4   : > { %v789_v31 = vsel %vm537_vm2, %v784_v29, 0 }
 0x4f6   : > { %v1360_v17 = vpop.eup %1359 }
 0x4f7   : > { %v678_v19 = vmul.f32 %v1360_v17, %v1354_v6  ;;  %v1362_v20 = vpop.eup %1361  ;;  %v782_v33 = vpop.permute.xlu1 %781 }
 0x4f8   : > { %v675_v25 = vmul.f32 %v1362_v20, %v1352_v5 }
 0x4f9   : > { %v680_v22 = vpack.c.bf16 %v678_v19, %v677_v18 }
 0x4fa   : > { %v1364_v24 = vpop.eup %1363 }
 0x4fb   : > { %v676_v28 = vmul.f32 %v1364_v24, %v1356_v9  ;;  %1273 = vmatmul.mubr.msk.bf16.vlgmr.msra.gmra.mrb[8].mxu0 %vm537_vm2, %v680_v22 }
 0x4fc   : > { %1283 = vmatpush3.bf16.xpose.msra.mxu0 %v841_v27  ;;  %1284 = vmatprep.mubr.msk.bf16.mxu0 %vm1391_vm1, %v1390_v11 }
 0x4fd   : > { %v679_v30 = vpack.c.bf16 %v676_v28, %v675_v25  ;;  %1294 = vmatprep.subr.bf16.mxu0 %v1390_v11 }
 0x4ff   : > { %1267 = vmatmul.mubr.msk.bf16.vlgmr.msra.gmra.mrb[4].mxu1 %vm537_vm2, %v679_v30 }
 0x500   : > { %1277 = vmatpush3.bf16.xpose.msra.mxu1 %v789_v31  ;;  %1278 = vmatprep.mubr.msk.bf16.mxu1 %vm1391_vm1, %v1390_v11 }
 0x501   : > { %1288 = vmatprep.subr.bf16.mxu1 %v1390_v11 }
 0x503   : > { %1285 = vmatmul.mubr.msk.bf16.vlgmr.msra.gmra.mrb[12].mxu0 %vm537_vm2, %v834_v32 }
 0x504   : > { %1296 = vmatprep.mubr.msk.bf16.mxu0 %vm1391_vm1, %v1390_v11 }
 0x507   : > { %1279 = vmatmul.mubr.msk.bf16.vlgmr.msra.gmra.mrb[8].mxu1 %vm537_vm2, %v782_v33 }
 0x508   : > { %1290 = vmatprep.mubr.msk.bf16.mxu1 %vm1391_vm1, %v1390_v11 }
 0x5ce   : > { %v1578_v34 = vpop.f32.mrb[8].mxu0 }
 0x5cf   : > { %v1274_v35 = vpop.f32.mrb[9].mxu0 }
 0x5d0   : > { %v1580_v36 = vpop.f32.mrb[10].mxu0  ;;  %v1339_v35 = vld [vmem:[%s1648_s7] sm:$0xff]  }
 0x5d1   : > { %v1275_v37 = vpop.f32.mrb[11].mxu0 }
 0x5d2   : > { %v1582_v38 = vpop.f32.mrb[4].mxu1  ;;  %v1340_v37 = vld [vmem:[%s1648_s7 + $0x8] sm:$0xff]  }
 0x5d3   : > { %v1268_v39 = vpop.f32.mrb[5].mxu1 }
 0x5d4   : > { %v1584_v40 = vpop.f32.mrb[6].mxu1 }
 0x5d5   : > { %v1269_v41 = vpop.f32.mrb[7].mxu1 }
 0x5d6   : > { %v877_v42 = vpop.f32.mrb[12].mxu0 }
 0x5d7   : > { %v1286_v43 = vpop.f32.mrb[13].mxu0  ;;  %v878_v57 = vadd.f32 %v1205_v51, %v877_v42 }
 0x5d8   : > { %v880_v44 = vpop.f32.mrb[14].mxu0 }
 0x5d9   : > { %v1287_v11 = vpop.f32.mrb[15].mxu0  ;;  %v881_v53 = vadd.f32 %v1206_v46, %v880_v44  ;;  %v890_v60 = vsel %vm537_vm2, %v878_v57, -inf }
 0x5da   : > { %v825_v47 = vpop.f32.mrb[8].mxu1 }
 0x5db   : > { %v826_v49 = vadd.f32 %v1203_v45, %v825_v47  ;;  %v1280_v50 = vpop.f32.mrb[9].mxu1  ;;  %v893_v59 = vsel %vm537_vm2, %v881_v53, -inf }
 0x5dc   : > { %v828_v52 = vpop.f32.mrb[10].mxu1 }
 0x5dd   : > { %v829_v54 = vadd.f32 %v1204_v48, %v828_v52  ;;  %v1281_v55 = vpop.f32.mrb[11].mxu1  ;;  %v884_v56 = vsel %vm537_vm2, %v826_v49, -inf }
 0x5de   : > { %885 = vmax.xlane.f32.xlu1 %v884_v56 }
 0x5df   : > { %v887_v58 = vsel %vm537_vm2, %v829_v54, -inf }
 0x5e0   : > { %888 = vmax.xlane.f32.xlu0 %v887_v58 }
 0x5e2   : > { %894 = vmax.xlane.f32.xlu1 %v893_v59 }
 0x5e4   : > { %891 = vmax.xlane.f32.xlu0 %v890_v60 }
 0x66b   : > { %v886_v61 = vpop.xlane.xlu1 %885 }
 0x66c   : > { %v896_v1 = vsub.f32 %v826_v49, %v886_v61 }
 0x66d   : > { %v889_v62 = vpop.xlane.xlu0 %888 }
 0x66e   : > { %v897_v63 = vsub.f32 %v829_v54, %v889_v62  ;;  %v900_v7 = vmul.f32 1.442695, %v896_v1 }
 0x66f   : > { %v895_v0 = vpop.xlane.xlu1 %894 }
 0x670   : > { %v899_v2 = vsub.f32 %v881_v53, %v895_v0  ;;  %v902_v3 = vmul.f32 1.442695, %v897_v63 }
 0x671   : > { %v892_v4 = vpop.xlane.xlu0 %891 }
 0x672   : > { %v906_v5 = vmul.f32 1.442695, %v899_v2  ;;  %v898_v6 = vsub.f32 %v878_v57, %v892_v4 }
 0x674   : > { %1365 = vpow2.f32 %v906_v5  ;;  %v904_v8 = vmul.f32 1.442695, %v898_v6 }
 0x675   : > { %1367 = vpow2.f32 %v902_v3 }
 0x676   : > { %1369 = vpow2.f32 %v904_v8 }
 0x677   : > { %1371 = vpow2.f32 %v900_v7 }
 0x67e   : > { %v1366_v9 = vpop.eup %1365 }
 0x67f   : > { %v1368_v10 = vpop.eup %1367  ;;  %v917_v12 = vsel %vm537_vm2, %v1366_v9, 0.0 }
 0x680   : > { %v1370_v13 = vpop.eup %1369  ;;  %918 = vadd.xlane.f32.xlu1 %v917_v12  ;;  %v911_v16 = vsel %vm537_vm2, %v1368_v10, 0.0 }
 0x681   : > { %v914_v14 = vsel %vm537_vm2, %v1370_v13, 0.0  ;;  %v1372_v15 = vpop.eup %1371 }
 0x682   : > { %915 = vadd.xlane.f32.xlu0 %v914_v14  ;;  %v908_v17 = vsel %vm537_vm2, %v1372_v15, 0.0 }
 0x684   : > { %912 = vadd.xlane.f32.xlu1 %v911_v16 }
 0x686   : > { %909 = vadd.xlane.f32.xlu0 %v908_v17 }
 0x695   : > { %977 = vrot.lane.b32.xlu1 %v1512_v23, %s1396_s17 }
 0x69c   : > { %930 = vrot.lane.b32.xlu0 %v1514_v26, %s1396_s17 }
 0x70d   : > { %v919_v18 = vpop.xlane.xlu1 %918 }
 0x70e   : > { %1373 = vrcp.f32 %v919_v18 }
 0x70f   : > { %v916_v19 = vpop.xlane.xlu0 %915 }
 0x710   : > { %1375 = vrcp.f32 %v916_v19 }
 0x711   : > { %v913_v20 = vpop.xlane.xlu1 %912 }
 0x712   : > { %1377 = vrcp.f32 %v913_v20 }
 0x713   : > { %v910_v21 = vpop.xlane.xlu0 %909 }
 0x714   : > { %1379 = vrcp.f32 %v910_v21 }
 0x715   : > { %v978_v22 = vpop.permute.xlu1 %977 }
 0x716   : > { %1295 = vmatpush3.bf16.msra.mxu0 %v978_v22 }
 0x717   : > { %v931_v24 = vpop.permute.xlu0 %930 }
 0x718   : > { %v1374_v25 = vpop.eup %1373  ;;  %1289 = vmatpush3.bf16.msra.mxu1 %v931_v24 }
 0x719   : > { %v927_v27 = vmul.f32 %v1374_v25, %v1366_v9  ;;  %1300 = vmatprep.subr.bf16.mxu1 %v1339_v35 }
 0x71a   : > { %v1376_v28 = vpop.eup %1375 }
 0x71b   : > { %v926_v29 = vmul.f32 %v1376_v28, %v1370_v13 }
 0x71c   : > { %v1378_v30 = vpop.eup %1377 }
 0x71d   : > { %v929_v23 = vpack.c.bf16 %v927_v27, %v926_v29  ;;  %v925_v26 = vmul.f32 %v1378_v30, %v1368_v10 }
 0x71e   : > { %v1380_v31 = vpop.eup %1379 }
 0x71f   : > { %v924_v32 = vmul.f32 %v1380_v31, %v1372_v15  ;;  %1297 = vmatmul.mubr.msk.bf16.vlgmr.msra.gmra.mrb[16].mxu0 %vm537_vm2, %v929_v23 }
 0x721   : > { %v928_v33 = vpack.c.bf16 %v925_v26, %v924_v32 }
 0x723   : > { %1291 = vmatmul.mubr.msk.bf16.vlgmr.msra.gmra.mrb[12].mxu1 %vm537_vm2, %v928_v33 }
 0x724   : > { %1301 = vmatpush3.bf16.msra.mxu1 %v1339_v35 }
 0x725   : > { %1302 = vmatprep.subr.bf16.mxu1 %v1340_v37 }
 0x728   : > { %1303 = vmatpush3.bf16.msra.mxu1 %v1340_v37 }
 0x7f2   : > { %v1017_v39 = vpop.f32.mrb[16].mxu0 }
 0x7f3   : > { %v1298_v41 = vpop.f32.mrb[17].mxu0 }
 0x7f4   : > { %v1020_v42 = vpop.f32.mrb[18].mxu0 }
 0x7f5   : > { %v1332_v43 = vpack.i.bf16 %v1020_v42, %v1017_v39  ;;  %v1299_v44 = vpop.f32.mrb[19].mxu0 }
 0x7f6   : > { %v970_v45 = vpop.f32.mrb[12].mxu1 }
 0x7f7   : > { %1333 = vrot.lane.b32.xlu0 %v1332_v43, %s1397_s22  ;;  %v1292_v11 = vpop.f32.mrb[13].mxu1 }
 0x7f8   : > { %v973_v46 = vpop.f32.mrb[14].mxu1 }
 0x7f9   : > { %v1327_v47 = vpack.i.bf16 %v973_v46, %v970_v45  ;;  %v1293_v48 = vpop.f32.mrb[15].mxu1 }
 0x7fb   : > { %1328 = vrot.lane.b32.xlu1 %v1327_v47, %s1397_s22 }
 0x869   : > { %v1334_v49 = vpop.permute.xlu0 %1333 }
 0x86a   : > { %v1336_v50 = vunpack.i.h.bf16 %v1334_v49  ;;  %v1335_v51 = vunpack.i.l.bf16 %v1334_v49 }
 0x86c   : > { %v1043_v52 = vsel %vm537_vm2, %v1580_v36, %v1336_v50  ;;  %v1042_v53 = vsel %vm537_vm2, %v1578_v34, %v1335_v51  ;;  %v1211_v36 = vld [vmem:[%s1649_s8] ss:$0 sm:$0xff] }
 0x86d   : > { %v1045_v54 = vpack.c.bf16 %v1043_v52, %v1042_v53  ;;  %v1329_v55 = vpop.permute.xlu1 %1328 }
 0x86e   : > { %v1331_v56 = vunpack.i.h.bf16 %v1329_v55  ;;  %v1330_v57 = vunpack.i.l.bf16 %v1329_v55 }
 0x870   : > { %v1041_v58 = vsel %vm537_vm2, %v1584_v40, %v1331_v56  ;;  %v1040_v59 = vsel %vm537_vm2, %v1582_v38, %v1330_v57 }
 0x871   : > { %v1044_v60 = vpack.c.bf16 %v1041_v58, %v1040_v59 }
 0x873   : > { %1304 = vmatprep.mubr.msk.bf16.mxu1 %vm340_vm0, %v1044_v60 }
 0x874   : > { %1305 = vmatmul.mubr.msk.bf16.vlgmr.msra.gmra.mrb[16].mxu1 %vm340_vm0, %v1045_v54 }
 0x947   : > { %v1306_v34 = vpop.f32.mrb[16].mxu1 }
 0x948   : > { %v1118_v61 = vadd.f32 %v1306_v34, %v1211_v36  ;;  %v1109_v40 = vpop.f32.mrb[17].mxu1 }
 0x949   : > { %v1110_v62 = vadd.f32 %v1211_v36, %v1109_v40  ;;  %v1307_v63 = vpop.f32.mrb[18].mxu1 }
 0x94a   : > { %1126 = vst.msk [vmem:[%s332_s27 + $0x10] sm:$0xff] %vm340_vm0, %v1118_v61  ;;  %v1121_v38 = vadd.f32 %v1307_v63, %v1211_v36  ;;  %v1112_v0 = vpop.f32.mrb[19].mxu1 }
 0x94b   : > { %1124 = vst.msk [vmem:[%s332_s27] sm:$0xff] %vm340_vm0, %v1110_v62  ;;  %v1113_v1 = vadd.f32 %v1211_v36, %v1112_v0 }
 0x94c   : > { %1127 = vst.msk [vmem:[%s332_s27 + $0x18] sm:$0xff] %vm340_vm0, %v1121_v38 }
 0x94d   : > { %1125 = vst.msk [vmem:[%s332_s27 + $0x8] sm:$0xff] %vm340_vm0, %v1113_v1 }
 0x94e PF: > { %s19_s30 = sadd.s32 1, %s1387_s30  }
 0x94f   : > { %p16_p4 = scmp.ge.s32.totalorder %s19_s30, 4  }
 0x951   :  { %18 = sbr.rel (!%p16_p4) target bundleno = 1 (0x1), region = 87 }

// kernel: swin_forward.16
= control target key start
LH: loop header
LB: loop body
LE: loop exit
PB: predicated region body
PF: predicated region fallthrough
CT: control target
= control target key end

     0   :  { %vm21_vm0 = vcmask 1045504   ;;  %v212_v2 = vmov 0.0   ;;  %vm213_vm1 = vmmov 0   ;;  %vm155_vm2 = vcmask 521216   ;;  %s277_s0 = inlined_call_operand.vmem [shape: f32[6,128], index: 0, kind: input, shape index: {}]   ;;  %s278_s3 = inlined_call_operand.vmem [shape: bf16[128,64], index: 3, kind: input, shape index: {}]   ;;  %s279_s1 = inlined_call_operand.vmem [shape: f32[1,128], index: 1, kind: input, shape index: {}]   ;;  %s280_s2 = inlined_call_operand.vmem [shape: f32[1,128], index: 2, kind: input, shape index: {}]   ;;  %s281_s4 = inlined_call_operand.vmem [shape: f32[6,64], index: 4, kind: output, shape index: {}]  }
   0x1   :  { %v18_v0 = vld [vmem:[%s277_s0] sm:$0x3f]  ;;  %180 = vmatprep.subr.bf16.mxu0 %v212_v2  ;;  %v203_v4 = vld [vmem:[%s278_s3 + $0x8] sm:$0xff]   ;;  %v204_v10 = vld [vmem:[%s278_s3 + $0x10] sm:$0xff]   ;;  %196 = vmatprep.mubr.msk.bf16.mxu0 %vm213_vm1, %v212_v2 }
   0x2   :  { %v22_v1 = vsel %vm21_vm0, %v18_v0, 0.0  ;;  %v202_v3 = vld [vmem:[%s278_s3] sm:$0xff]   ;;  %v205_v11 = vld [vmem:[%s278_s3 + $0x18] sm:$0xff]   ;;  %v207_v13 = vld [vmem:[%s278_s3 + $0x28] sm:$0xff]  }
   0x3   :  { %23 = vadd.xlane.f32.xlu0 %v22_v1  ;;  %181 = vmatpush3.bf16.msra.mxu0 %v202_v3  ;;  %v206_v12 = vld [vmem:[%s278_s3 + $0x20] sm:$0xff]   ;;  %v208_v14 = vld [vmem:[%s278_s3 + $0x30] sm:$0xff]   ;;  %v209_v15 = vld [vmem:[%s278_s3 + $0x38] sm:$0xff]  }
   0x4   :  { %182 = vmatprep.subr.bf16.mxu0 %v212_v2  ;;  %v161_v20 = vld [vmem:[%s279_s1] ss:$0 sm:$0xff] }
   0x5   :  { %v162_v22 = vld [vmem:[%s280_s2] ss:$0 sm:$0xff] }
   0x7   :  { %183 = vmatpush3.bf16.msra.mxu0 %v203_v4 }
   0x8   :  { %184 = vmatprep.subr.bf16.mxu0 %v212_v2 }
   0xb   :  { %185 = vmatpush3.bf16.msra.mxu0 %v204_v10 }
   0xc   :  { %186 = vmatprep.subr.bf16.mxu0 %v212_v2 }
   0xf   :  { %187 = vmatpush3.bf16.msra.mxu0 %v205_v11 }
  0x10   :  { %188 = vmatprep.subr.bf16.mxu0 %v212_v2 }
  0x13   :  { %189 = vmatpush3.bf16.msra.mxu0 %v206_v12 }
  0x14   :  { %190 = vmatprep.subr.bf16.mxu0 %v212_v2 }
  0x17   :  { %191 = vmatpush3.bf16.msra.mxu0 %v207_v13 }
  0x18   :  { %192 = vmatprep.subr.bf16.mxu0 %v212_v2 }
  0x1b   :  { %193 = vmatpush3.bf16.msra.mxu0 %v208_v14 }
  0x1c   :  { %194 = vmatprep.subr.bf16.mxu0 %v212_v2 }
  0x1f   :  { %195 = vmatpush3.bf16.msra.mxu0 %v209_v15 }
  0x90   :  { %v24_v5 = vpop.xlane.xlu0 %23 }
  0x91   :  { %v26_v6 = vmul.f32 0.0078125, %v24_v5 }
  0x93   :  { %v27_v7 = vsub.f32 %v18_v0, %v26_v6 }
  0x95   :  { %v28_v8 = vmul.f32 %v27_v7, %v27_v7 }
  0x97   :  { %v29_v9 = vsel %vm21_vm0, %v28_v8, 0.0 }
  0x98   :  { %30 = vadd.xlane.f32.xlu0 %v29_v9 }
 0x125   :  { %v31_v16 = vpop.xlane.xlu0 %30 }
 0x126   :  { %v32_v17 = vmul.f32 0.0078125, %v31_v16 }
 0x128   :  { %v33_v18 = vadd.f32 1e-05, %v32_v17 }
 0x12a   :  { %210 = vrsqrt.f32 %v33_v18 }
 0x134   :  { %v211_v19 = vpop.eup %210 }
 0x135   :  { %v35_v21 = vmul.f32 %v211_v19, %v27_v7 }
 0x137   :  { %v42_v23 = vmul.f32 %v161_v20, %v35_v21 }
 0x139   :  { %v49_v24 = vadd.f32 %v162_v22, %v42_v23 }
 0x13b   :  { %v50_v25 = vpack.c.bf16 %v49_v24, %v49_v24 }
 0x13d   :  { %197 = vmatmul.mubr.bf16.vlgmr.msra.gmra.mrb[0].mxu0 %v50_v25 }
 0x210   :  { %v149_v26 = vpop.f32.mrb[0].mxu0 }
 0x211   :  { %156 = vst.msk [vmem:[%s281_s4] sm:$0x3f] %vm155_vm2, %v149_v26  ;;  %v198_v27 = vpop.f32.mrb[1].mxu0 }
 0x212   :  { %v152_v28 = vpop.f32.mrb[2].mxu0 }
 0x213   :  { %v199_v29 = vpop.f32.mrb[3].mxu0 }

// kernel: swin_forward.18
= control target key start
LH: loop header
LB: loop body
LE: loop exit
PB: predicated region body
PF: predicated region fallthrough
CT: control target
= control target key end

     0   :  { %vm35_vm0 = vcmask 521216   ;;  %v377_v10 = vmov 0.0   ;;  %vm378_vm1 = vmmov 0   ;;  %vm104_vm2 = vcmask 523264   ;;  %s490_s0 = inlined_call_operand.vmem [shape: f32[6,64], index: 0, kind: input, shape index: {}]   ;;  %s491_s1 = inlined_call_operand.vmem [shape: f32[6,64], index: 1, kind: input, shape index: {}]   ;;  %s492_s4 = inlined_call_operand.vmem [shape: bf16[64,128], index: 4, kind: input, shape index: {}]   ;;  %s493_s2 = inlined_call_operand.vmem [shape: f32[1,64], index: 2, kind: input, shape index: {}]   ;;  %s494_s3 = inlined_call_operand.vmem [shape: f32[1,64], index: 3, kind: input, shape index: {}]   ;;  %s495_s6 = inlined_call_operand.vmem [shape: bf16[128,64], index: 6, kind: input, shape index: {}]   ;;  %s496_s5 = inlined_call_operand.vmem [shape: f32[1,128], index: 5, kind: input, shape index: {}]   ;;  %s497_s7 = inlined_call_operand.vmem [shape: f32[1,64], index: 7, kind: input, shape index: {}]   ;;  %s498_s8 = inlined_call_operand.vmem [shape: f32[6,64], index: 8, kind: output, shape index: {}]  }
   0x1   :  { %v30_v0 = vld [vmem:[%s490_s0] sm:$0x3f]  ;;  %324 = vmatprep.subr.bf16.mxu0 %v377_v10  ;;  %336 = vmatprep.subr.bf16.mxu1 %v377_v10  ;;  %v360_v11 = vld [vmem:[%s492_s4 + $0x8] sm:$0xff]   ;;  %v361_v12 = vld [vmem:[%s492_s4 + $0x10] sm:$0xff]   ;;  %v379_v58 = vmov -1.0  }
   0x2   :  { %v31_v1 = vld [vmem:[%s491_s1] sm:$0x3f]  ;;  %v362_v13 = vld [vmem:[%s492_s4 + $0x18] sm:$0xff]   ;;  %332 = vmatprep.mubr.msk.bf16.mxu0 %vm378_vm1, %v377_v10  ;;  %352 = vmatprep.mubr.msk.bf16.mxu1 %vm378_vm1, %v377_v10  ;;  %v364_v25 = vld [vmem:[%s495_s6 + $0x8] sm:$0xff]  }
   0x3   :  { %v431_v2 = vadd.f32 %v31_v1, %v30_v0  ;;  %v359_v9 = vld [vmem:[%s492_s4] sm:$0xff]   ;;  %v365_v26 = vld [vmem:[%s495_s6 + $0x10] sm:$0xff]   ;;  %v366_v27 = vld [vmem:[%s495_s6 + $0x18] sm:$0xff]  }
   0x4   :  { %325 = vmatpush3.bf16.msra.mxu0 %v359_v9  ;;  %v293_v18 = vld [vmem:[%s493_s2] ss:$0 sm:$0xff]  ;;  %v368_v29 = vld [vmem:[%s495_s6 + $0x28] sm:$0xff]   ;;  %v369_v30 = vld [vmem:[%s495_s6 + $0x30] sm:$0xff]  }
   0x5   :  { %v36_v3 = vsel %vm35_vm0, %v431_v2, 0.0  ;;  %326 = vmatprep.subr.bf16.mxu0 %v377_v10  ;;  %v294_v20 = vld [vmem:[%s494_s3] ss:$0 sm:$0xff]  ;;  %v370_v31 = vld [vmem:[%s495_s6 + $0x38] sm:$0xff]  }
   0x6   :  { %37 = vadd.xlane.f32.xlu0 %v36_v3  ;;  %v363_v24 = vld [vmem:[%s495_s6] sm:$0xff]  }
   0x7   :  { %337 = vmatpush3.bf16.msra.mxu1 %v363_v24  ;;  %v367_v28 = vld [vmem:[%s495_s6 + $0x20] sm:$0xff]  }
   0x8   :  { %327 = vmatpush3.bf16.msra.mxu0 %v360_v11  ;;  %338 = vmatprep.subr.bf16.mxu1 %v377_v10  ;;  %v295_v32 = vld [vmem:[%s496_s5] ss:$0 sm:$0xff] }
   0x9   :  { %328 = vmatprep.subr.bf16.mxu0 %v377_v10  ;;  %v301_v1 = vld [vmem:[%s497_s7] ss:$0 sm:$0xff] }
   0xb   :  { %339 = vmatpush3.bf16.msra.mxu1 %v364_v25 }
   0xc   :  { %329 = vmatpush3.bf16.msra.mxu0 %v361_v12  ;;  %340 = vmatprep.subr.bf16.mxu1 %v377_v10 }
   0xd   :  { %330 = vmatprep.subr.bf16.mxu0 %v377_v10 }
   0xf   :  { %341 = vmatpush3.bf16.msra.mxu1 %v365_v26 }
  0x10   :  { %331 = vmatpush3.bf16.msra.mxu0 %v362_v13  ;;  %342 = vmatprep.subr.bf16.mxu1 %v377_v10 }
  0x13   :  { %343 = vmatpush3.bf16.msra.mxu1 %v366_v27 }
  0x14   :  { %344 = vmatprep.subr.bf16.mxu1 %v377_v10 }
  0x17   :  { %345 = vmatpush3.bf16.msra.mxu1 %v367_v28 }
  0x18   :  { %346 = vmatprep.subr.bf16.mxu1 %v377_v10 }
  0x1b   :  { %347 = vmatpush3.bf16.msra.mxu1 %v368_v29 }
  0x1c   :  { %348 = vmatprep.subr.bf16.mxu1 %v377_v10 }
  0x1f   :  { %349 = vmatpush3.bf16.msra.mxu1 %v369_v30 }
  0x20   :  { %350 = vmatprep.subr.bf16.mxu1 %v377_v10 }
  0x23   :  { %351 = vmatpush3.bf16.msra.mxu1 %v370_v31 }
  0x93   :  { %v38_v4 = vpop.xlane.xlu0 %37 }
  0x94   :  { %v40_v5 = vmul.f32 0.015625, %v38_v4 }
  0x96   :  { %v41_v6 = vsub.f32 %v431_v2, %v40_v5 }
  0x98   :  { %v42_v7 = vmul.f32 %v41_v6, %v41_v6 }
  0x9a   :  { %v43_v8 = vsel %vm35_vm0, %v42_v7, 0.0 }
  0x9b   :  { %44 = vadd.xlane.f32.xlu0 %v43_v8 }
 0x128   :  { %v45_v14 = vpop.xlane.xlu0 %44 }
 0x129   :  { %v46_v15 = vmul.f32 0.015625, %v45_v14 }
 0x12b   :  { %v47_v16 = vadd.f32 1e-05, %v46_v15 }
 0x12d   :  { %371 = vrsqrt.f32 %v47_v16 }
 0x137   :  { %v372_v17 = vpop.eup %371 }
 0x138   :  { %v49_v19 = vmul.f32 %v372_v17, %v41_v6 }
 0x13a   :  { %v56_v21 = vmul.f32 %v293_v18, %v49_v19 }
 0x13c   :  { %v63_v22 = vadd.f32 %v294_v20, %v56_v21 }
 0x13e   :  { %v64_v23 = vpack.c.bf16 %v63_v22, %v63_v22 }
 0x140   :  { %333 = vmatmul.mubr.msk.bf16.vlgmr.msra.gmra.mrb[0].mxu0 %vm104_vm2, %v64_v23 }
 0x213   :  { %v142_v33 = vpop.f32.mrb[0].mxu0 }
 0x214   :  { %v143_v34 = vadd.f32 %v295_v32, %v142_v33  ;;  %v334_v35 = vpop.f32.mrb[1].mxu0 }
 0x215   :  { %v145_v36 = vpop.f32.mrb[2].mxu0 }
 0x216   :  { %v149_v37 = vmul.f32 0.70710677, %v143_v34  ;;  %v335_v38 = vpop.f32.mrb[3].mxu0  ;;  %v148_v61 = vmul.f32 0.5, %v143_v34 }
 0x218   :  { %v152_v39 = vand.u32 2147483647, %v149_v37  ;;  %vm150_vm3 = vcmp.ge.f32.partialorder %v149_v37, 0.0 }
 0x219   :  { %v151_v59 = vsel %vm150_vm3, 1.0, %v379_v58 }
 0x21a   :  { %v153_v40 = vmul.f32 0.3275911, %v152_v39  ;;  %v166_v42 = vsub.f32 0.0, %v152_v39 }
 0x21c   :  { %v154_v41 = vadd.f32 1.0, %v153_v40  ;;  %v167_v44 = vmul.f32 %v166_v42, %v152_v39 }
 0x21e   :  { %373 = vrcp.f32 %v154_v41  ;;  %v168_v47 = vmul.f32 1.442695, %v167_v44 }
 0x220   :  { %375 = vpow2.f32 %v168_v47 }
 0x228   :  { %v374_v43 = vpop.eup %373 }
 0x229   :  { %v157_v45 = vmul.f32 1.0614054, %v374_v43 }
 0x22a   :  { %v376_v55 = vpop.eup %375 }
 0x22b   :  { %v158_v46 = vadd.f32 -1.4531521, %v157_v45 }
 0x22d   :  { %v159_v48 = vmul.f32 %v374_v43, %v158_v46 }
 0x22f   :  { %v160_v49 = vadd.f32 1.4214138, %v159_v48 }
 0x231   :  { %v161_v50 = vmul.f32 %v374_v43, %v160_v49 }
 0x233   :  { %v162_v51 = vadd.f32 -0.28449672, %v161_v50 }
 0x235   :  { %v163_v52 = vmul.f32 %v374_v43, %v162_v51 }
 0x237   :  { %v164_v53 = vadd.f32 0.2548296, %v163_v52 }
 0x239   :  { %v165_v54 = vmul.f32 %v374_v43, %v164_v53 }
 0x23b   :  { %v170_v56 = vmul.f32 %v376_v55, %v165_v54 }
 0x23d   :  { %v171_v57 = vsub.f32 1.0, %v170_v56 }
 0x23f   :  { %v172_v60 = vmul.f32 %v171_v57, %v151_v59 }
 0x241   :  { %v173_v62 = vadd.f32 1.0, %v172_v60 }
 0x243   :  { %v174_v63 = vmul.f32 %v173_v62, %v148_v61 }
 0x245   :  { %v175_v0 = vpack.c.bf16 %v174_v63, %v174_v63 }
 0x247   :  { %353 = vmatmul.mubr.bf16.vlgmr.msra.gmra.mrb[0].mxu1 %v175_v0 }
 0x31a   :  { %v281_v3 = vpop.f32.mrb[0].mxu1 }
 0x31b   :  { %v282_v4 = vadd.f32 %v301_v1, %v281_v3  ;;  %v354_v5 = vpop.f32.mrb[1].mxu1 }
 0x31c   :  { %v284_v6 = vpop.f32.mrb[2].mxu1 }
 0x31d   :  { %v287_v7 = vadd.f32 %v282_v4, %v431_v2  ;;  %v355_v8 = vpop.f32.mrb[3].mxu1 }
 0x31f   :  { %288 = vst.msk [vmem:[%s498_s8] sm:$0x3f] %vm35_vm0, %v287_v7 }

// kernel: swin_forward.21
= control target key start
LH: loop header
LB: loop body
LE: loop exit
PB: predicated region body
PF: predicated region fallthrough
CT: control target
= control target key end

     0   :  { %vm26_vm0 = vcmask 518144   ;;  %s327_s0 = inlined_call_operand.vmem [shape: f32[2,3,64], index: 0, kind: input, shape index: {}]   ;;  %s328_s1 = inlined_call_operand.vmem [shape: f32[1,64], index: 1, kind: input, shape index: {}]   ;;  %s329_s2 = inlined_call_operand.vmem [shape: f32[1,64], index: 2, kind: input, shape index: {}]   ;;  %s330_s3 = inlined_call_operand.vmem [shape: bf16[64,5], index: 3, kind: input, shape index: {}]   ;;  %s331_s4 = inlined_call_operand.vmem [shape: f32[1,5], index: 4, kind: input, shape index: {}]   ;;  %s332_s5 = inlined_call_operand.hbm [shape: f32[2,5], index: 5, kind: output, shape index: {}]  }
   0x1   :  { %v22_v0 = vld [vmem:[%s327_s0] sm:$0x7]  ;;  %v23_v1 = vld [vmem:[%s327_s0 + $0x4] sm:$0x7] }
   0x2   :  { %v27_v2 = vsel %vm26_vm0, %v22_v0, 0.0  ;;  %v30_v3 = vsel %vm26_vm0, %v23_v1, 0.0 }
   0x3   :  { %28 = vadd.xlane.f32.xlu0 %v27_v2 }
   0x4   :  { %10 = vsyncpa [#allocation3], 0  ;;  %v217_v14 = vld [vmem:[%s330_s3] sm:$0xff]   ;;  %v249_v15 = vmov 0.0   ;;  %vm250_vm1 = vmmov 0   ;;  %v218_v16 = vld [vmem:[%s330_s3 + $0x8] sm:$0xff]  }
   0x5   :  { %202 = vmatprep.subr.bf16.mxu0 %v249_v15  ;;  %210 = vmatprep.mubr.msk.bf16.mxu0 %vm250_vm1, %v249_v15  ;;  %v219_v17 = vld [vmem:[%s330_s3 + $0x10] sm:$0xff]   ;;  %v220_v18 = vld [vmem:[%s330_s3 + $0x18] sm:$0xff]   ;;  %v189_v26 = vld [vmem:[%s328_s1] ss:$0 sm:$0xff]  ;;  %vm87_vm2 = vcmask 1040384   ;;  %vm129_vm3 = vcmask 523264  }
   0x6   :  { %203 = vmatpush3.bf16.msra.mxu0 %v217_v14  ;;  %v190_v28 = vld [vmem:[%s329_s2] ss:$0 sm:$0xff]  ;;  %s251_s3 = smov [#allocation2]   ;;  %vm173_vm4 = vcmask 33792  }
   0x7   :  { %31 = vadd.xlane.f32.xlu0 %v30_v3  ;;  %204 = vmatprep.subr.bf16.mxu0 %v249_v15  ;;  %v191_v53 = vld [vmem:[%s331_s4] ss:$0 sm:$0xff]  ;;  %s181_s8 = sshll.u32 %s251_s3, 4  ;;  %s182_s8 = int_to_ptr.vmem [resolvable:$true] %s181_s8 }
   0x8   :  { %s225_s9 = scalar_lea.vmem %s182_s8, 32  ;;  %p230_p1 = scmp.lt.s32.totalorder %s182_s8, %s182_s8 }
   0x9   :  { %p226_p0 = scmp.ne.s32.totalorder %s182_s8, %s225_s9  ;;  %p231_p2 = scmp.lt.s32.totalorder %s225_s9, %s225_s9 }
   0xa   :  { %205 = vmatpush3.bf16.msra.mxu0 %v218_v16 }
   0xb   :  { %206 = vmatprep.subr.bf16.mxu0 %v249_v15  ;;  %p232_p3 = por %p231_p2, %p230_p1 }
   0xd   :  { %p233_p4 = pnand %p232_p3, %p226_p0 }
   0xe   :  { %207 = vmatpush3.bf16.msra.mxu0 %v219_v17 }
   0xf   :  { %208 = vmatprep.subr.bf16.mxu0 %v249_v15 }
  0x12   :  { %209 = vmatpush3.bf16.msra.mxu0 %v220_v18 }
  0x90   :  { %v29_v4 = vpop.xlane.xlu0 %28 }
  0x91   :  { %v34_v5 = vmul.f32 0.015625, %v29_v4 }
  0x93   :  { %v36_v6 = vsub.f32 %v22_v0, %v34_v5 }
  0x94   :  { %v32_v7 = vpop.xlane.xlu0 %31 }
  0x95   :  { %v35_v8 = vmul.f32 0.015625, %v32_v7  ;;  %v38_v9 = vmul.f32 %v36_v6, %v36_v6 }
  0x97   :  { %v37_v10 = vsub.f32 %v23_v1, %v35_v8  ;;  %v40_v11 = vsel %vm26_vm0, %v38_v9, 0.0 }
  0x98   :  { %41 = vadd.xlane.f32.xlu1 %v40_v11 }
  0x99   :  { %v39_v12 = vmul.f32 %v37_v10, %v37_v10 }
  0x9b   :  { %v43_v13 = vsel %vm26_vm0, %v39_v12, 0.0 }
  0x9c   :  { %44 = vadd.xlane.f32.xlu1 %v43_v13 }
 0x125   :  { %v42_v19 = vpop.xlane.xlu1 %41 }
 0x126   :  { %v46_v20 = vmul.f32 0.015625, %v42_v19 }
 0x128   :  { %v48_v21 = vadd.f32 1e-05, %v46_v20 }
 0x129   :  { %v45_v22 = vpop.xlane.xlu1 %44 }
 0x12a   :  { %221 = vrsqrt.f32 %v48_v21  ;;  %v47_v23 = vmul.f32 0.015625, %v45_v22 }
 0x12c   :  { %v49_v24 = vadd.f32 1e-05, %v47_v23 }
 0x12e   :  { %223 = vrsqrt.f32 %v49_v24 }
 0x134   :  { %v222_v25 = vpop.eup %221 }
 0x135   :  { %v52_v27 = vmul.f32 %v222_v25, %v36_v6 }
 0x137   :  { %v60_v29 = vmul.f32 %v189_v26, %v52_v27 }
 0x138   :  { %v224_v30 = vpop.eup %223 }
 0x139   :  { %v68_v31 = vadd.f32 %v190_v28, %v60_v29  ;;  %v53_v32 = vmul.f32 %v224_v30, %v37_v10 }
 0x13b   :  { %v61_v33 = vmul.f32 %v189_v26, %v53_v32  ;;  %v70_v34 = vsel %vm26_vm0, %v68_v31, 0.0 }
 0x13c   :  { %v71_v35 = vrot.slane %v70_v34, 4 }
 0x13d   :  { %v69_v36 = vadd.f32 %v190_v28, %v61_v33 }
 0x13e   :  { %v72_v37 = vadd.f32 %v71_v35, %v70_v34 }
 0x13f   :  { %v79_v38 = vsel %vm26_vm0, %v69_v36, 0.0 }
 0x140   :  { %v73_v39 = vrot.slane %v72_v37, 2  ;;  %v80_v40 = vrot.slane %v79_v38, 4 }
 0x142   :  { %v74_v41 = vadd.f32 %v73_v39, %v72_v37  ;;  %v81_v42 = vadd.f32 %v80_v40, %v79_v38 }
 0x144   :  { %v75_v43 = vrot.slane %v74_v41, 1  ;;  %v82_v44 = vrot.slane %v81_v42, 2 }
 0x146   :  { %v83_v45 = vadd.f32 %v82_v44, %v81_v42  ;;  %v76_v46 = vadd.f32 %v75_v43, %v74_v41 }
 0x148   :  { %v84_v47 = vrot.slane %v83_v45, 1  ;;  %v78_v49 = vmul.f32 0.33333334, %v76_v46 }
 0x14a   :  { %v85_v48 = vadd.f32 %v84_v47, %v83_v45 }
 0x14c   :  { %v86_v50 = vmul.f32 0.33333334, %v85_v48 }
 0x14e   :  { %v88_v51 = vsel %vm87_vm2, %v78_v49, %v86_v50 }
 0x14f   :  { %v89_v52 = vpack.c.bf16 %v88_v51, %v88_v51 }
 0x151   :  { %211 = vmatmul.mubr.msk.bf16.vlgmr.msra.gmra.mrb[0].mxu0 %vm129_vm3, %v89_v52 }
 0x224   :  { %v167_v54 = vpop.f32.mrb[0].mxu0 }
 0x225   :  { %v168_v55 = vadd.f32 %v191_v53, %v167_v54  ;;  %v212_v56 = vpop.f32.mrb[1].mxu0 }
 0x226   :  { %v170_v57 = vpop.f32.mrb[2].mxu0 }
 0x227   :  { %v213_v58 = vpop.f32.mrb[3].mxu0  ;;  %174 = vst.msk [vmem:[#allocation2] sm:$0x3] %vm173_vm4, %v168_v55 }
 0x228   :  { %236 = shalt.err (!%p233_p4)
}
 0x229   :  { %s237_s4 = scalar_lea.hbm %s332_s5, 32 }
 0x22a   :  { %p238_p5 = scmp.ne.s32.totalorder %s332_s5, %s237_s4  ;;  %p241_p6 = scmp.lt.u32.totalorder %s237_s4, %s332_s5 }
 0x22c   :  { %p243_p7 = pnand %p241_p6, %p238_p5 }
 0x22e   :  { %246 = shalt.err (!%p243_p7)
}
 0x22f   :  { %184 = dma.vmem_to_hbm [thread:$0]  %s182_s8, 32, %s332_s5, [#allocation3]  }
 0x230   :  { %247 = dma.done.wait [#allocation3], 32  }
 0x231   :  { %248 = vsyncadd [#allocation3], 4294967264 }
 0x232   :  { %188 = vsyncpa [#allocation3], 1 }

// kernel: swin_forward.17
= control target key start
LH: loop header
LB: loop body
LE: loop exit
PB: predicated region body
PF: predicated region fallthrough
CT: control target
= control target key end

     0   :  { %s1455_s30 = smov 0   ;;  %s1649_s0 = inlined_call_operand.vmem [shape: f32[2,1,16,64], index: 0, kind: input, shape index: {}]   ;;  %s1650_s1 = inlined_call_operand.vmem [shape: f32[1,16,1], index: 1, kind: input, shape index: {}]   ;;  %s1651_s2 = inlined_call_operand.vmem [shape: f32[1,64], index: 2, kind: input, shape index: {}]   ;;  %s1652_s3 = inlined_call_operand.vmem [shape: f32[1,64], index: 3, kind: input, shape index: {}]   ;;  %s1653_s4 = inlined_call_operand.vmem [shape: bf16[64,192], index: 4, kind: input, shape index: {}]   ;;  %s1654_s5 = inlined_call_operand.vmem [shape: f32[1,192], index: 5, kind: input, shape index: {}]   ;;  %s1655_s6 = inlined_call_operand.vmem [shape: f32[4,1,16,16], index: 6, kind: input, shape index: {}]   ;;  %s1656_s7 = inlined_call_operand.vmem [shape: bf16[64,64], index: 7, kind: input, shape index: {}]   ;;  %s1657_s8 = inlined_call_operand.vmem [shape: f32[1,64], index: 8, kind: input, shape index: {}]   ;;  %s1658_s9 = inlined_call_operand.vmem [shape: f32[2,1,16,64], index: 9, kind: output, shape index: {}]  }
   0x1 LB: > { %s1175_s10 = sadd.s32 4294967295, %s1393_s30   ;;  %p1179_p0 = scmp.ge.s32.totalorder %s1393_s30, 1  ;;  %s1393_s30 = sphi %s1455_s30, %s19_s30  }
   0x2   : > { %p287_p1 = scmp.lt.s32.totalorder %s1393_s30, 3 }
   0x4   : > { %p288_p2 = pnand %p1179_p0, %p287_p1 }
   0x5   : > { %p323_p3 = scmp.lt.s32.totalorder (!%p288_p2), %s1175_s10, 1  ;;  %vm338_vm0 = vcmask (!%p288_p2), 523264   ;;  %v382_v4 = vld [vmem:[%s1650_s1] sm:$0xff] (!%p288_p2)  ;;  %v1395_v5 = vmov (!%p288_p2), 0   ;;  %v383_v16 = vld [vmem:[%s1650_s1 + $0x8] sm:$0xff] (!%p288_p2)  ;;  %v407_v46 = vlaneseq (!%p288_p2)  ;;  %v1396_v50 = vmov (!%p288_p2), 0.0  }
   0x6   : > { %291 = sbr.rel (%p288_p2) target bundleno = 2333 (0x91d), region = 56  ;;  %1318 = vset.pattern.permute.xlu0 (!%p288_p2), %v1395_v5  ;;  %1319 = vset.pattern.permute.xlu1 (!%p288_p2), %v1395_v5  ;;  %v1335_v17 = vld [vmem:[%s1653_s4 + $0x4] ss:$8 sps:$4 sm:$0xff] (!%p288_p2)   ;;  %v1337_v18 = vld [vmem:[%s1653_s4] ss:$8 sps:$4 sm:$0xff] (!%p288_p2)   ;;  %vm1397_vm1 = vmmov (!%p288_p2), 0  }
   0x7   : > { %492 = vmatprep.mubr.bf16.mxu0 (!%p288_p2), %v1395_v5  ;;  %v1338_v19 = vld [vmem:[%s1653_s4 + $0x14] ss:$8 sps:$4 sm:$0xff] (!%p288_p2)   ;;  %460 = vmatprep.subr.bf16.mxu0 (!%p288_p2), %v1335_v17  ;;  %v1340_v20 = vld [vmem:[%s1653_s4 + $0x10] ss:$8 sps:$4 sm:$0xff] (!%p288_p2)   ;;  %v1341_v21 = vld [vmem:[%s1653_s4 + $0x24] ss:$8 sps:$4 sm:$0xff] (!%p288_p2)  }
   0x8   : > { %461 = vmatpush1.bf16.msra.mxu0 (!%p288_p2), %v1337_v18  ;;  %v1343_v22 = vld [vmem:[%s1653_s4 + $0x20] ss:$8 sps:$4 sm:$0xff] (!%p288_p2)   ;;  %v1344_v23 = vld [vmem:[%s1653_s4 + $0x34] ss:$8 sps:$4 sm:$0xff] (!%p288_p2)   ;;  %v1346_v24 = vld [vmem:[%s1653_s4 + $0x30] ss:$8 sps:$4 sm:$0xff] (!%p288_p2)   ;;  %1240 = vmatprep.subr.bf16.mxu1 (!%p288_p2), %v1396_v50 }
   0x9   : > { %462 = vmatprep.subr.bf16.mxu0 (!%p288_p2), %v1338_v19  ;;  %v1184_v32 = vld [vmem:[%s1651_s2] ss:$0 sm:$0xff] (!%p288_p2)  ;;  %v408_v47 = vshrl.u32 (!%p288_p2), %v407_v46, 7  ;;  %1242 = vmatprep.mubr.msk.bf16.mxu1 (!%p288_p2), %vm1397_vm1, %v1396_v50  ;;  %s1398_s23 = smov (!%p288_p2), 64   ;;  %vm512_vm2 = vcmask (!%p288_p2), 130048   ;;  %s1399_s28 = smov (!%p288_p2), 112  }
   0xa   : > { %v1185_v36 = vld [vmem:[%s1652_s3] ss:$0 sm:$0xff] (!%p288_p2)  ;;  %s1400_s29 = smov (!%p288_p2), 48   ;;  %s1401_s12 = smov (!%p288_p2), 32   ;;  %vm1028_vm3 = vcmask (!%p288_p2), 261120   ;;  %vm1031_vm4 = vcmask (!%p288_p2), 392192  }
   0xb   : > { %v409_v48 = vsub.s32 (!%p288_p2), 0, %v408_v47  ;;  %v405_v49 = vld [vmem:[%s1654_s5] sm:$0x3] (!%p288_p2)  ;;  %v413_v51 = vsub.s32 (!%p288_p2), 1, %v408_v47  ;;  %s1402_s13 = smov (!%p288_p2), 96   ;;  %s1404_s15 = smov (!%p288_p2), 80  }
   0xc   : > { %463 = vmatpush1.bf16.msra.mxu0 (!%p288_p2), %v1340_v20  ;;  %v507_v5 = vld [vmem:[%s1655_s6] sm:$0xff] (!%p288_p2) }
   0xd   : > { %s1660_s10 = smov (!%p323_p3, %s1175_s10), 1  ;;  %464 = vmatprep.subr.bf16.mxu0 %v1341_v21  ;;  %v410_v52 = vrot.slane %v405_v49, %v409_v48  ;;  %v414_v54 = vrot.slane %v405_v49, %v413_v51  ;;  %v1197_v49 = vld [vmem:[%s1655_s6 + $0x10] sm:$0xff]  ;;  %v1201_v51 = vld [vmem:[%s1655_s6 + $0x20] sm:$0xff] }
   0xe   : > { %s1217_s11 = sshll.u32 %s1660_s10, 4 }
   0xf   : > { %s327_s14 = scalar_lea.vmem %s1649_s0, %s1217_s11  ;;  %s332_s22 = scalar_lea.vmem %s1658_s9, %s1217_s11 }
  0x10   : > { %v334_v0 = vld [vmem:[%s327_s14] sm:$0xff]  ;;  %v335_v1 = vld [vmem:[%s327_s14 + $0x8] sm:$0xff]  ;;  %465 = vmatpush1.bf16.msra.mxu0 %v1343_v22  ;;  %s1403_s14 = smov 16  }
  0x11   : > { %v339_v2 = vsel %vm338_vm0, %v334_v0, 0.0  ;;  %v342_v3 = vsel %vm338_vm0, %v335_v1, 0.0  ;;  %466 = vmatprep.subr.bf16.mxu0 %v1344_v23 }
  0x12   : > { %340 = vadd.xlane.f32.xlu0 %v339_v2 }
  0x14   : > { %467 = vmatpush1.bf16.msra.mxu0 %v1346_v24 }
  0x15   : > { %1264 = vmatprep.subr.bf16.mxu0 %v1396_v50 }
  0x16   : > { %343 = vadd.xlane.f32.xlu0 %v342_v3 }
  0x2c   : > { %386 = vperm.xlu0 %1318, %v382_v4  }
  0x9f   : > { %v341_v6 = vpop.xlane.xlu0 %340 }
  0xa0   : > { %v346_v7 = vmul.f32 0.015625, %v341_v6 }
  0xa2   : > { %v348_v8 = vsub.f32 %v334_v0, %v346_v7  ;;  %v508_v7 = vld [vmem:[%s1655_s6 + $0x8] sm:$0xff] }
  0xa3   : > { %v344_v9 = vpop.xlane.xlu0 %343 }
  0xa4   : > { %v347_v10 = vmul.f32 0.015625, %v344_v9  ;;  %v350_v11 = vmul.f32 %v348_v8, %v348_v8 }
  0xa6   : > { %v349_v12 = vsub.f32 %v335_v1, %v347_v10  ;;  %v352_v13 = vsel %vm338_vm0, %v350_v11, 0.0 }
  0xa7   : > { %353 = vadd.xlane.f32.xlu1 %v352_v13 }
  0xa8   : > { %v351_v14 = vmul.f32 %v349_v12, %v349_v12 }
  0xaa   : > { %v355_v15 = vsel %vm338_vm0, %v351_v14, 0.0 }
  0xab   : > { %356 = vadd.xlane.f32.xlu1 %v355_v15  ;;  %v387_v40 = vpop.permute.xlu0 %386 }
  0xbc   : > { %391 = vperm.xlu1 %1319, %v383_v16  }
 0x134   : > { %v354_v25 = vpop.xlane.xlu1 %353 }
 0x135   : > { %v358_v26 = vmul.f32 0.015625, %v354_v25 }
 0x137   : > { %v360_v27 = vadd.f32 1e-05, %v358_v26 }
 0x138   : > { %v357_v28 = vpop.xlane.xlu1 %356 }
 0x139   : > { %1351 = vrsqrt.f32 %v360_v27  ;;  %v359_v29 = vmul.f32 0.015625, %v357_v28 }
 0x13b   : > { %v361_v30 = vadd.f32 1e-05, %v359_v29 }
 0x13c   : > { %v392_v41 = vpop.permute.xlu1 %391 }
 0x13d   : > { %1353 = vrsqrt.f32 %v361_v30 }
 0x143   : > { %v1352_v31 = vpop.eup %1351 }
 0x144   : > { %v364_v33 = vmul.f32 %v1352_v31, %v348_v8 }
 0x146   : > { %v372_v34 = vmul.f32 %v1184_v32, %v364_v33 }
 0x147   : > { %v1354_v35 = vpop.eup %1353 }
 0x148   : > { %v365_v37 = vmul.f32 %v1354_v35, %v349_v12  ;;  %v380_v38 = vadd.f32 %v1185_v36, %v372_v34 }
 0x14a   : > { %v373_v39 = vmul.f32 %v1184_v32, %v365_v37  ;;  %v394_v43 = vmul.f32 %v387_v40, %v380_v38 }
 0x14c   : > { %v381_v42 = vadd.f32 %v1185_v36, %v373_v39 }
 0x14e   : > { %v395_v44 = vmul.f32 %v392_v41, %v381_v42 }
 0x150   : > { %v396_v45 = vpack.c.bf16 %v395_v44, %v394_v43 }
 0x152   : > { %1194 = vmatmul.mubr.msk.bf16.vlgmr.msra.gmra.mrb[0].mxu0 %vm338_vm0, %v396_v45 }
 0x153   : > { %1266 = vmatprep.mubr.msk.bf16.mxu0 %vm1397_vm1, %v1396_v50 }
 0x225   : > { %v494_v53 = vpop.f32.mrb[0].mxu0 }
 0x226   : > { %v495_v55 = vadd.f32 %v494_v53, %v410_v52  ;;  %v496_v56 = vpop.f32.mrb[1].mxu0  ;;  %v1198_v53 = vld [vmem:[%s1655_s6 + $0x18] sm:$0xff] }
 0x227   : > { %v498_v57 = vpop.f32.mrb[2].mxu0  ;;  %v497_v60 = vadd.f32 %v496_v56, %v414_v54 }
 0x228   : > { %v499_v58 = vadd.f32 %v498_v57, %v410_v52  ;;  %v500_v59 = vpop.f32.mrb[3].mxu0  ;;  %v503_v62 = vmul.f32 0.25, %v495_v55  ;;  %v1205_v57 = vld [vmem:[%s1655_s6 + $0x30] sm:$0xff] }
 0x229   : > { %v501_v61 = vadd.f32 %v500_v59, %v414_v54 }
 0x22a   : > { %v504_v63 = vmul.f32 0.25, %v499_v58  ;;  %v506_v0 = vpack.c.bf16 %v499_v58, %v495_v55 }
 0x22b   : > { %v1521_v1 = vpack.c.bf16 %v501_v61, %v497_v60 }
 0x22c   : > { %v505_v2 = vpack.c.bf16 %v504_v63, %v503_v62  ;;  %510 = vrot.lane.b32.xlu1 %v506_v0, %s1398_s23 }
 0x29e   : > { %v511_v3 = vpop.permute.xlu1 %510 }
 0x29f   : > { %v517_v4 = vsel %vm512_vm2, %v511_v3, 0 }
 0x2a0   : > { %1241 = vmatpush3.bf16.xpose.msra.mxu1 %v517_v4 }
 0x2a1   : > { %1246 = vmatprep.subr.bf16.mxu1 %v1396_v50 }
 0x2a7   : > { %1243 = vmatmul.mubr.msk.bf16.vlgmr.msra.gmra.mrb[0].mxu1 %vm512_vm2, %v505_v2 }
 0x2a8   : > { %1247 = vmatpush3.bf16.msra.mxu1 %v1521_v1  ;;  %1248 = vmatprep.mubr.msk.bf16.mxu1 %vm1397_vm1, %v1396_v50 }
 0x2a9   : > { %1252 = vmatprep.subr.bf16.mxu1 %v1396_v50 }
 0x37a   : > { %v553_v6 = vpop.f32.mrb[0].mxu1 }
 0x37b   : > { %v554_v8 = vadd.f32 %v553_v6, %v507_v5  ;;  %v1244_v9 = vpop.f32.mrb[1].mxu1 }
 0x37c   : > { %v556_v10 = vpop.f32.mrb[2].mxu1 }
 0x37d   : > { %v557_v11 = vadd.f32 %v556_v10, %v508_v7  ;;  %v1245_v12 = vpop.f32.mrb[3].mxu1  ;;  %v560_v13 = vsel %vm512_vm2, %v554_v8, -inf }
 0x37e   : > { %561 = vmax.xlane.f32.xlu1 %v560_v13 }
 0x37f   : > { %v563_v14 = vsel %vm512_vm2, %v557_v11, -inf }
 0x380   : > { %564 = vmax.xlane.f32.xlu0 %v563_v14 }
 0x396   : > { %632 = vrot.lane.b32.xlu0 %v505_v2, %s1399_s28 }
 0x40b   : > { %v562_v15 = vpop.xlane.xlu1 %561 }
 0x40c   : > { %v566_v16 = vsub.f32 %v554_v8, %v562_v15  ;;  %v1206_v8 = vld [vmem:[%s1655_s6 + $0x38] sm:$0xff] }
 0x40d   : > { %v565_v17 = vpop.xlane.xlu0 %564 }
 0x40e   : > { %v568_v18 = vmul.f32 1.442695, %v566_v16  ;;  %v567_v19 = vsub.f32 %v557_v11, %v565_v17 }
 0x410   : > { %1355 = vpow2.f32 %v568_v18  ;;  %v570_v20 = vmul.f32 1.442695, %v567_v19 }
 0x411   : > { %v633_v39 = vpop.permute.xlu0 %632 }
 0x412   : > { %1357 = vpow2.f32 %v570_v20 }
 0x41a   : > { %v1356_v21 = vpop.eup %1355 }
 0x41b   : > { %v572_v22 = vsel %vm512_vm2, %v1356_v21, 0.0 }
 0x41c   : > { %v1358_v23 = vpop.eup %1357  ;;  %573 = vadd.xlane.f32.xlu1 %v572_v22 }
 0x41d   : > { %v575_v24 = vsel %vm512_vm2, %v1358_v23, 0.0 }
 0x420   : > { %576 = vadd.xlane.f32.xlu1 %v575_v24 }
 0x431   : > { %634 = vrot.lane.b32.xlu1 %v506_v0, %s1400_s29 }
 0x435   : > { %759 = vrot.lane.b32.xlu1 %v506_v0, %s1401_s12 }
 0x439   : > { %757 = vrot.lane.b32.xlu1 %v505_v2, %s1402_s13 }
 0x43d   : > { %883 = vrot.lane.b32.xlu1 %v506_v0, %s1403_s14 }
 0x441   : > { %881 = vrot.lane.b32.xlu1 %v505_v2, %s1404_s15  ;;  %v1202_v2 = vld [vmem:[%s1655_s6 + $0x28] sm:$0xff] }
 0x4a9   : > { %v574_v25 = vpop.xlane.xlu1 %573 }
 0x4aa   : > { %1359 = vrcp.f32 %v574_v25 }
 0x4ad   : > { %v577_v26 = vpop.xlane.xlu1 %576 }
 0x4ae   : > { %1361 = vrcp.f32 %v577_v26 }
 0x4b1   : > { %v635_v27 = vpop.permute.xlu1 %634 }
 0x4b2   : > { %v640_v36 = vsel %vm512_vm2, %v635_v27, 0 }
 0x4b4   : > { %v1360_v29 = vpop.eup %1359 }
 0x4b5   : > { %v760_v28 = vpop.permute.xlu1 %759  ;;  %v580_v32 = vmul.f32 %v1360_v29, %v1356_v21 }
 0x4b6   : > { %v765_v30 = vsel %vm512_vm2, %v760_v28, 0 }
 0x4b7   : > { %1265 = vmatpush3.bf16.xpose.msra.mxu0 %v765_v30 }
 0x4b8   : > { %v1362_v31 = vpop.eup %1361  ;;  %1276 = vmatprep.subr.bf16.mxu0 %v1396_v50 }
 0x4b9   : > { %v581_v33 = vmul.f32 %v1362_v31, %v1358_v23  ;;  %v758_v34 = vpop.permute.xlu1 %757 }
 0x4bb   : > { %v582_v35 = vpack.c.bf16 %v581_v33, %v580_v32 }
 0x4bd   : > { %1249 = vmatmul.mubr.msk.bf16.vlgmr.msra.gmra.mrb[4].mxu1 %vm512_vm2, %v582_v35  ;;  %v884_v37 = vpop.permute.xlu1 %883 }
 0x4be   : > { %1253 = vmatpush3.bf16.xpose.msra.mxu1 %v640_v36  ;;  %v889_v38 = vsel %vm512_vm2, %v884_v37, 0  ;;  %1267 = vmatmul.mubr.msk.bf16.vlgmr.msra.gmra.mrb[4].mxu0 %vm512_vm2, %v758_v34 }
 0x4bf   : > { %1277 = vmatpush3.bf16.xpose.msra.mxu0 %v889_v38  ;;  %1254 = vmatprep.mubr.msk.bf16.mxu1 %vm1397_vm1, %v1396_v50 }
 0x4c0   : > { %1278 = vmatprep.mubr.msk.bf16.mxu0 %vm1397_vm1, %v1396_v50  ;;  %1258 = vmatprep.subr.bf16.mxu1 %v1396_v50 }
 0x4c1   : > { %1288 = vmatprep.subr.bf16.mxu0 %v1396_v50  ;;  %v882_v40 = vpop.permute.xlu1 %881 }
 0x4c5   : > { %1255 = vmatmul.mubr.msk.bf16.vlgmr.msra.gmra.mrb[8].mxu1 %vm512_vm2, %v633_v39 }
 0x4c6   : > { %1279 = vmatmul.mubr.msk.bf16.vlgmr.msra.gmra.mrb[8].mxu0 %vm512_vm2, %v882_v40  ;;  %1260 = vmatprep.mubr.msk.bf16.mxu1 %vm1397_vm1, %v1396_v50 }
 0x4c7   : > { %1296 = vmatprep.mubr.msk.bf16.mxu0 %vm1397_vm1, %v1396_v50 }
 0x590   : > { %v1564_v41 = vpop.f32.mrb[4].mxu1 }
 0x591   : > { %v1250_v42 = vpop.f32.mrb[5].mxu1  ;;  %v801_v43 = vpop.f32.mrb[4].mxu0 }
 0x592   : > { %v1566_v44 = vpop.f32.mrb[6].mxu1  ;;  %v1268_v45 = vpop.f32.mrb[5].mxu0  ;;  %v802_v60 = vadd.f32 %v1201_v51, %v801_v43 }
 0x593   : > { %v1251_v46 = vpop.f32.mrb[7].mxu1  ;;  %v804_v47 = vpop.f32.mrb[6].mxu0 }
 0x594   : > { %v1269_v48 = vpop.f32.mrb[7].mxu0  ;;  %v805_v6 = vadd.f32 %v1202_v2, %v804_v47  ;;  %v808_v7 = vsel %vm512_vm2, %v802_v60, -inf }
 0x596   : > { %v811_v11 = vsel %vm512_vm2, %v805_v6, -inf }
 0x598   : > { %v676_v52 = vpop.f32.mrb[8].mxu1 }
 0x599   : > { %v677_v54 = vadd.f32 %v1197_v49, %v676_v52  ;;  %v1256_v55 = vpop.f32.mrb[9].mxu1  ;;  %v925_v56 = vpop.f32.mrb[8].mxu0 }
 0x59a   : > { %v679_v58 = vpop.f32.mrb[10].mxu1  ;;  %v1280_v59 = vpop.f32.mrb[9].mxu0  ;;  %v926_v4 = vadd.f32 %v1205_v57, %v925_v56 }
 0x59b   : > { %v680_v61 = vadd.f32 %v1198_v53, %v679_v58  ;;  %v1257_v62 = vpop.f32.mrb[11].mxu1  ;;  %v928_v63 = vpop.f32.mrb[10].mxu0  ;;  %v683_v0 = vsel %vm512_vm2, %v677_v54, -inf }
 0x59c   : > { %v1281_v3 = vpop.f32.mrb[11].mxu0  ;;  %684 = vmax.xlane.f32.xlu0 %v683_v0  ;;  %v932_v9 = vsel %vm512_vm2, %v926_v4, -inf  ;;  %v929_v10 = vadd.f32 %v1206_v8, %v928_v63 }
 0x59d   : > { %v686_v5 = vsel %vm512_vm2, %v680_v61, -inf }
 0x59e   : > { %687 = vmax.xlane.f32.xlu1 %v686_v5  ;;  %v935_v12 = vsel %vm512_vm2, %v929_v10, -inf }
 0x5a0   : > { %809 = vmax.xlane.f32.xlu0 %v808_v7 }
 0x5a2   : > { %933 = vmax.xlane.f32.xlu1 %v932_v9  ;;  %v1348_v9 = vld [vmem:[%s1656_s7 + $0x8] sm:$0xff]  }
 0x5a4   : > { %812 = vmax.xlane.f32.xlu0 %v811_v11 }
 0x5a8   : > { %936 = vmax.xlane.f32.xlu0 %v935_v12 }
 0x629   : > { %v685_v13 = vpop.xlane.xlu0 %684 }
 0x62a   : > { %v689_v17 = vsub.f32 %v677_v54, %v685_v13  ;;  %v1349_v13 = vld [vmem:[%s1656_s7 + $0x10] sm:$0xff]  }
 0x62b   : > { %v688_v14 = vpop.xlane.xlu1 %687 }
 0x62c   : > { %v690_v19 = vsub.f32 %v680_v61, %v688_v14  ;;  %v691_v25 = vmul.f32 1.442695, %v689_v17 }
 0x62d   : > { %v810_v15 = vpop.xlane.xlu0 %809 }
 0x62e   : > { %v814_v16 = vsub.f32 %v802_v60, %v810_v15  ;;  %v693_v26 = vmul.f32 1.442695, %v690_v19 }
 0x62f   : > { %v934_v18 = vpop.xlane.xlu1 %933 }
 0x630   : > { %v816_v20 = vmul.f32 1.442695, %v814_v16  ;;  %v938_v21 = vsub.f32 %v926_v4, %v934_v18  ;;  %v1350_v16 = vld [vmem:[%s1656_s7 + $0x18] sm:$0xff]  }
 0x631   : > { %v813_v22 = vpop.xlane.xlu0 %812 }
 0x632   : > { %1363 = vpow2.f32 %v816_v20  ;;  %v940_v23 = vmul.f32 1.442695, %v938_v21  ;;  %v815_v24 = vsub.f32 %v805_v6, %v813_v22  ;;  %v1347_v6 = vld [vmem:[%s1656_s7] sm:$0xff]  }
 0x633   : > { %1289 = vmatpush3.bf16.msra.mxu0 %v1347_v6 }
 0x634   : > { %1365 = vpow2.f32 %v940_v23  ;;  %v818_v27 = vmul.f32 1.442695, %v815_v24  ;;  %1290 = vmatprep.subr.bf16.mxu0 %v1396_v50 }
 0x635   : > { %v937_v28 = vpop.xlane.xlu0 %936 }
 0x636   : > { %1367 = vpow2.f32 %v818_v27  ;;  %v939_v29 = vsub.f32 %v929_v10, %v937_v28 }
 0x637   : > { %1369 = vpow2.f32 %v691_v25  ;;  %1291 = vmatpush3.bf16.msra.mxu0 %v1348_v9 }
 0x638   : > { %1371 = vpow2.f32 %v693_v26  ;;  %v942_v30 = vmul.f32 1.442695, %v939_v29  ;;  %1292 = vmatprep.subr.bf16.mxu0 %v1396_v50 }
 0x63a   : > { %1373 = vpow2.f32 %v942_v30 }
 0x63b   : > { %1293 = vmatpush3.bf16.msra.mxu0 %v1349_v13 }
 0x63c   : > { %v1364_v31 = vpop.eup %1363  ;;  %1294 = vmatprep.subr.bf16.mxu0 %v1396_v50 }
 0x63d   : > { %v820_v32 = vsel %vm512_vm2, %v1364_v31, 0.0 }
 0x63e   : > { %v1366_v33 = vpop.eup %1365  ;;  %821 = vadd.xlane.f32.xlu1 %v820_v32 }
 0x63f   : > { %v944_v37 = vsel %vm512_vm2, %v1366_v33, 0.0  ;;  %1295 = vmatpush3.bf16.msra.mxu0 %v1350_v16 }
 0x640   : > { %v1368_v34 = vpop.eup %1367 }
 0x641   : > { %v1370_v35 = vpop.eup %1369  ;;  %v823_v36 = vsel %vm512_vm2, %v1368_v34, 0.0 }
 0x642   : > { %v1372_v38 = vpop.eup %1371  ;;  %824 = vadd.xlane.f32.xlu0 %v823_v36  ;;  %945 = vadd.xlane.f32.xlu1 %v944_v37  ;;  %v695_v40 = vsel %vm512_vm2, %v1370_v35, 0.0 }
 0x643   : > { %v698_v39 = vsel %vm512_vm2, %v1372_v38, 0.0 }
 0x644   : > { %v1374_v42 = vpop.eup %1373 }
 0x645   : > { %v947_v43 = vsel %vm512_vm2, %v1374_v42, 0.0 }
 0x646   : > { %699 = vadd.xlane.f32.xlu0 %v698_v39  ;;  %696 = vadd.xlane.f32.xlu1 %v695_v40  ;;  %v1209_v40 = vld [vmem:[%s1657_s8] ss:$0 sm:$0xff] }
 0x64a   : > { %948 = vadd.xlane.f32.xlu0 %v947_v43 }
 0x657   : > { %707 = vrot.lane.b32.xlu1 %v1521_v1, %s1399_s28 }
 0x65b   : > { %955 = vrot.lane.b32.xlu1 %v1521_v1, %s1404_s15 }
 0x660   : > { %831 = vrot.lane.b32.xlu0 %v1521_v1, %s1402_s13 }
 0x6cb   : > { %v822_v45 = vpop.xlane.xlu1 %821 }
 0x6cf   : > { %v825_v46 = vpop.xlane.xlu0 %824  ;;  %v946_v47 = vpop.xlane.xlu1 %945 }
 0x6d3   : > { %v700_v48 = vpop.xlane.xlu0 %699  ;;  %v697_v49 = vpop.xlane.xlu1 %696 }
 0x6d4   : > { %1375 = vrcp.f32 %v700_v48 }
 0x6d5   : > { %1377 = vrcp.f32 %v697_v49 }
 0x6d6   : > { %1379 = vrcp.f32 %v825_v46 }
 0x6d7   : > { %v708_v51 = vpop.permute.xlu1 %707  ;;  %1381 = vrcp.f32 %v822_v45  ;;  %v949_v53 = vpop.xlane.xlu0 %948 }
 0x6d8   : > { %1259 = vmatpush3.bf16.msra.mxu1 %v708_v51  ;;  %1383 = vrcp.f32 %v949_v53 }
 0x6d9   : > { %1270 = vmatprep.subr.bf16.mxu1 %v1396_v50  ;;  %1385 = vrcp.f32 %v946_v47 }
 0x6db   : > { %v832_v58 = vpop.permute.xlu0 %831  ;;  %v956_v0 = vpop.permute.xlu1 %955 }
 0x6de   : > { %v1376_v52 = vpop.eup %1375 }
 0x6df   : > { %v1378_v54 = vpop.eup %1377  ;;  %v704_v55 = vmul.f32 %v1376_v52, %v1372_v38 }
 0x6e0   : > { %v703_v56 = vmul.f32 %v1378_v54, %v1370_v35  ;;  %v1380_v57 = vpop.eup %1379 }
 0x6e1   : > { %v1382_v59 = vpop.eup %1381  ;;  %v829_v60 = vmul.f32 %v1380_v57, %v1368_v34 }
 0x6e2   : > { %v705_v1 = vpack.c.bf16 %v704_v55, %v703_v56  ;;  %v828_v61 = vmul.f32 %v1382_v59, %v1364_v31  ;;  %v1384_v63 = vpop.eup %1383 }
 0x6e3   : > { %v1386_v2 = vpop.eup %1385  ;;  %v953_v3 = vmul.f32 %v1384_v63, %v1374_v42 }
 0x6e4   : > { %1261 = vmatmul.mubr.msk.bf16.vlgmr.msra.gmra.mrb[12].mxu1 %vm512_vm2, %v705_v1  ;;  %v830_v62 = vpack.c.bf16 %v829_v60, %v828_v61  ;;  %v952_v4 = vmul.f32 %v1386_v2, %v1366_v33 }
 0x6e5   : > { %1271 = vmatpush3.bf16.msra.mxu1 %v832_v58  ;;  %1272 = vmatprep.mubr.msk.bf16.mxu1 %vm1397_vm1, %v1396_v50 }
 0x6e6   : > { %1282 = vmatprep.subr.bf16.mxu1 %v1396_v50  ;;  %v954_v5 = vpack.c.bf16 %v953_v3, %v952_v4 }
 0x6ec   : > { %1273 = vmatmul.mubr.msk.bf16.vlgmr.msra.gmra.mrb[16].mxu1 %vm512_vm2, %v830_v62 }
 0x6ed   : > { %1283 = vmatpush3.bf16.msra.mxu1 %v956_v0  ;;  %1284 = vmatprep.mubr.msk.bf16.mxu1 %vm1397_vm1, %v1396_v50 }
 0x6f4   : > { %1285 = vmatmul.mubr.msk.bf16.vlgmr.msra.gmra.mrb[20].mxu1 %vm512_vm2, %v954_v5 }
 0x7b7   : > { %v747_v7 = vpop.f32.mrb[12].mxu1 }
 0x7b8   : > { %v1262_v8 = vpop.f32.mrb[13].mxu1 }
 0x7b9   : > { %v750_v10 = vpop.f32.mrb[14].mxu1 }
 0x7ba   : > { %v1320_v11 = vpack.i.bf16 %v750_v10, %v747_v7  ;;  %v1263_v12 = vpop.f32.mrb[15].mxu1 }
 0x7bc   : > { %1321 = vrot.lane.b32.xlu1 %v1320_v11, %s1403_s14 }
 0x7bf   : > { %v871_v14 = vpop.f32.mrb[16].mxu1 }
 0x7c0   : > { %v1274_v15 = vpop.f32.mrb[17].mxu1 }
 0x7c1   : > { %v874_v17 = vpop.f32.mrb[18].mxu1 }
 0x7c2   : > { %v1325_v18 = vpack.i.bf16 %v874_v17, %v871_v14  ;;  %v1275_v19 = vpop.f32.mrb[19].mxu1 }
 0x7c4   : > { %1326 = vrot.lane.b32.xlu0 %v1325_v18, %s1401_s12 }
 0x7c7   : > { %v995_v20 = vpop.f32.mrb[20].mxu1 }
 0x7c8   : > { %v1286_v21 = vpop.f32.mrb[21].mxu1 }
 0x7c9   : > { %v998_v22 = vpop.f32.mrb[22].mxu1 }
 0x7ca   : > { %v1330_v23 = vpack.i.bf16 %v998_v22, %v995_v20  ;;  %v1287_v24 = vpop.f32.mrb[23].mxu1 }
 0x7cc   : > { %1331 = vrot.lane.b32.xlu1 %v1330_v23, %s1400_s29 }
 0x82e   : > { %v1322_v25 = vpop.permute.xlu1 %1321 }
 0x82f   : > { %v1324_v26 = vunpack.i.h.bf16 %v1322_v25  ;;  %v1323_v27 = vunpack.i.l.bf16 %v1322_v25 }
 0x831   : > { %v1027_v31 = vsel %vm512_vm2, %v1566_v44, %v1324_v26  ;;  %v1026_v32 = vsel %vm512_vm2, %v1564_v41, %v1323_v27 }
 0x836   : > { %v1327_v50 = vpop.permute.xlu0 %1326 }
 0x837   : > { %v1329_v28 = vunpack.i.h.bf16 %v1327_v50  ;;  %v1328_v29 = vunpack.i.l.bf16 %v1327_v50 }
 0x839   : > { %v1030_v35 = vsel %vm1028_vm3, %v1027_v31, %v1329_v28  ;;  %v1029_v36 = vsel %vm1028_vm3, %v1026_v32, %v1328_v29 }
 0x83e   : > { %v1332_v30 = vpop.permute.xlu1 %1331 }
 0x83f   : > { %v1334_v33 = vunpack.i.h.bf16 %v1332_v30  ;;  %v1333_v34 = vunpack.i.l.bf16 %v1332_v30 }
 0x841   : > { %v1033_v37 = vsel %vm1031_vm4, %v1030_v35, %v1334_v33  ;;  %v1032_v38 = vsel %vm1031_vm4, %v1029_v36, %v1333_v34 }
 0x842   : > { %v1034_v39 = vpack.c.bf16 %v1033_v37, %v1032_v38 }
 0x844   : > { %1297 = vmatmul.mubr.msk.bf16.vlgmr.msra.gmra.mrb[12].mxu0 %vm338_vm0, %v1034_v39 }
 0x917   : > { %v1111_v44 = vpop.f32.mrb[12].mxu0 }
 0x918   : > { %v1112_v41 = vadd.f32 %v1209_v40, %v1111_v44  ;;  %v1298_v42 = vpop.f32.mrb[13].mxu0 }
 0x919   : > { %v1114_v43 = vpop.f32.mrb[14].mxu0 }
 0x91a   : > { %1118 = vst.msk [vmem:[%s332_s22] sm:$0xff] %vm338_vm0, %v1112_v41  ;;  %v1115_v45 = vadd.f32 %v1209_v40, %v1114_v43  ;;  %v1299_v46 = vpop.f32.mrb[15].mxu0 }
 0x91c   : > { %1119 = vst.msk [vmem:[%s332_s22 + $0x8] sm:$0xff] %vm338_vm0, %v1115_v45 }
 0x91d PF: > { %s19_s30 = sadd.s32 1, %s1393_s30  }
 0x91e   : > { %p16_p4 = scmp.ge.s32.totalorder %s19_s30, 4  }
 0x920   :  { %18 = sbr.rel (!%p16_p4) target bundleno = 1 (0x1), region = 89 }

</bundles_post_ra>
